<compile_context>
chip_gen: v7x
topology: tpu7x:2x2x1
jax: 0.10.0
libtpu: 0.0.40
codegen_flags: <defaults>
</compile_context>

<pallas_src>
import functools

import jax
import jax.numpy as jnp
import numpy as np
from jax import lax
from jax.experimental import pallas as pl
from jax.experimental.pallas import tpu as pltpu


def _round_up(x, m):
    return (x + m - 1) // m * m


@functools.lru_cache(maxsize=16)
def _conv_matrix_np(w_bytes, K, H, W, HWp):
    """Fold a KxK 'SAME' (zero-pad) cross-correlation into an (HW, HWp) matrix
    M so that out_flat = in_flat @ M reproduces Conv2d(1,1,K,pad=K//2,bias=False).
    Built once on the host with NumPy and cached per (w, H, W)."""
    w = np.frombuffer(w_bytes, dtype=np.float32).reshape(K, K)
    pad = (K - 1) // 2
    HW = H * W
    ho = np.arange(H)[:, None, None, None]
    wo = np.arange(W)[None, :, None, None]
    kh = np.arange(K)[None, None, :, None]
    kw = np.arange(K)[None, None, None, :]
    hi = ho + kh - pad
    wi = wo + kw - pad
    valid = (hi >= 0) & (hi < H) & (wi >= 0) & (wi < W)                 # (H,W,K,K)
    p = np.clip(hi, 0, H - 1) * W + np.clip(wi, 0, W - 1)               # input flat idx
    q = np.broadcast_to(ho * W + wo, p.shape)                           # output flat idx
    vals = np.broadcast_to(w[None, None, :, :], p.shape).astype(np.float32)
    M = np.zeros((HW, HWp), np.float32)
    np.add.at(M, (p[valid], q[valid]), vals[valid])
    return M


def _spatial_attention_kernel(x_ref, m_ref, o_ref, max_ref, *, C, CB, mask_tail):
    # x_ref:   (NB, CB, HW)   input tile (true flattened spatial = full dim)
    # m_ref:   (HW, HWp)      folded conv matrix (constant across the grid)
    # o_ref:   (NB, 1, HWp)   output tile (lane-dense)
    # max_ref: (NB, HW) f32   running channel-max accumulator (persistent scratch)
    c = pl.program_id(1)

    @pl.when(c == 0)
    def _():
        max_ref[...] = jnp.full_like(max_ref, -jnp.inf)

    x = x_ref[...]                                                   # (NB, CB, HW)
    if mask_tail:
        # Partial channel edge block: padded channels must never win the max.
        ch = c * CB + lax.broadcasted_iota(jnp.int32, x.shape, 1)
        x = jnp.where(ch < C, x, -jnp.inf)
    # torch.max(x, dim=1): max is exact in the input dtype; accumulate in f32.
    max_ref[...] = jnp.maximum(max_ref[...], jnp.max(x, axis=1).astype(jnp.float32))

    @pl.when(c == pl.num_programs(1) - 1)
    def _():
        # Whole KxK conv as a single MXU matmul on the flattened map.
        y = jnp.dot(max_ref[...], m_ref[...],
                    preferred_element_type=jnp.float32,
                    precision=lax.Precision.HIGHEST)
        o_ref[...] = jax.nn.sigmoid(y).reshape(o_ref.shape).astype(o_ref.dtype)


def spatial_attention(x, w, kernel_size=7):
    """x: (N, C, H, W); w: (kernel_size, kernel_size). Returns (N, 1, H, W)."""
    assert kernel_size in (3, 7), "kernel size must be 3 or 7"
    N, C, H, W = x.shape
    HW = H * W
    HWp = _round_up(HW, 128)                 # lane-dense output / M column axis
    itemsize = jnp.dtype(x.dtype).itemsize

    # ---- tile sizing -------------------------------------------------------
    tile_budget = 4 << 20                    # bytes per x input buffer (x2 for double-buffer)

    # Batch tile: fill MXU rows for large N, but keep >=2 steps on the parallel
    # batch axis when N > 1 so both v7x TensorCores get work.
    NB = max(1, min(N, 256))
    if N > 1 and NB >= N:
        NB = -(-N // 2)
    min_cb = C if C < 8 else 8
    while NB > 1 and NB * min_cb * HW * itemsize > tile_budget:
        NB = -(-NB // 2)

    # Channel tile: sized so each grid step moves ~tile_budget bytes of x.
    # Must be a multiple of 8 (or == C) so the x block's sublane dim is legal.
    CB = min(C, max(1, tile_budget // (NB * HW * itemsize)))
    if CB < C:
        CB = max(8, (CB // 8) * 8)
        if CB >= C:
            CB = C
    mask_tail = (C % CB) != 0

    n_tiles_n = pl.cdiv(N, NB)
    n_tiles_c = pl.cdiv(C, CB)

    # ---- host-side conv-matrix prep (NumPy, cached) ------------------------
    w_np = np.asarray(w, dtype=np.float32).reshape(kernel_size, kernel_size)
    M = jnp.asarray(_conv_matrix_np(w_np.tobytes(), kernel_size, H, W, HWp))

    # ---- VMEM budget (per generation, with headroom) ------------------------
    need = (2 * NB * CB * HW * itemsize      # x tile, double-buffered
            + HW * HWp * 4                   # folded conv matrix, single-buffered
            + 2 * NB * HWp * itemsize        # output tile, double-buffered
            + NB * HW * 4)                   # running channel-max scratch
    try:
        vmem_cap = int(pltpu.get_tpu_info().vmem_capacity_bytes)
    except Exception:
        vmem_cap = 64 << 20                  # conservative (v7x per-TC size)
    usable = (vmem_cap * 7) // 8             # headroom for Mosaic's own scratch
    if need > usable:
        # TODO(synk): fall back to the block-banded conv formulation here.
        raise NotImplementedError(
            f"dense folded-conv path needs ~{need >> 20} MiB VMEM but only "
            f"~{usable >> 20} MiB is usable; block-banded path not implemented")
    vmem_limit = int(min(usable, max(32 << 20, need + HW * HWp * 4 + (4 << 20))))

    kernel = functools.partial(_spatial_attention_kernel,
                               C=C, CB=CB, mask_tail=mask_tail)
    x3 = x.reshape(N, C, HW)                 # free reshape, no HBM copy

    def run(m_pipeline_mode):
        if m_pipeline_mode is None:
            m_spec = pl.BlockSpec((HW, HWp), lambda n, c: (0, 0))
        else:
            m_spec = pl.BlockSpec((HW, HWp), lambda n, c: (0, 0),
                                  pipeline_mode=m_pipeline_mode)
        return pl.pallas_call(
            kernel,
            out_shape=jax.ShapeDtypeStruct((N, 1, HWp), x.dtype),
            grid_spec=pltpu.PrefetchScalarGridSpec(
                num_scalar_prefetch=0,
                grid=(n_tiles_n, n_tiles_c),
                in_specs=[
                    pl.BlockSpec((NB, CB, HW), lambda n, c: (n, c, 0)),
                    m_spec,
                ],
                out_specs=pl.BlockSpec((NB, 1, HWp), lambda n, c: (n, 0, 0)),
                scratch_shapes=[pltpu.VMEM((NB, HW), jnp.float32)],
            ),
            compiler_params=pltpu.CompilerParams(
                dimension_semantics=("parallel", "arbitrary"),
                vmem_limit_bytes=vmem_limit,
            ),
        )(x3, M)

    try:
        # M's index_map is constant -> single-buffer it (halves its VMEM cost).
        out = run(pl.Buffered(1))
    except Exception:
        # Fallback for environments without pipeline_mode/Buffered support.
        out = run(None)

    if HWp != HW:
        out = out[:, :, :HW]
    return out.reshape(N, 1, H, W)


def spatial_attention_ref(x, w):
    """Pure-JAX reference mirroring the PyTorch forward."""
    m = jnp.max(x, axis=1, keepdims=True)                            # (N,1,H,W)
    k = w[None, None, :, :]                                          # (O=1,I=1,kh,kw)
    y = lax.conv_general_dilated(
        m, k, window_strides=(1, 1), padding="SAME",
        dimension_numbers=("NCHW", "OIHW", "NCHW"))
    return jax.nn.sigmoid(y)


if __name__ == "__main__":
    key = jax.random.PRNGKey(0)
    kx, kw_key = jax.random.split(key)

    N, C, H, W = 2, 4, 16, 16
    ksize = 7

    x = jax.random.normal(kx, (N, C, H, W), dtype=jnp.float32)
    # Deterministic synthetic conv weight (Conv2d(1,1,7,7,bias=False) -> (7,7)).
    fan_in = ksize * ksize
    bound = 1.0 / np.sqrt(fan_in)
    w = jax.random.uniform(kw_key, (ksize, ksize), minval=-bound, maxval=bound,
                           dtype=jnp.float32)

    out = jax.block_until_ready(spatial_attention(x, w, kernel_size=ksize))
    ref = jax.block_until_ready(spatial_attention_ref(x, w))

    assert out.shape == (N, 1, H, W)
    np.testing.assert_allclose(np.asarray(out), np.asarray(ref), rtol=1e-5, atol=1e-5)

    print("KERNEL_OK")
</pallas_src>

<mosaic_0001>
module attributes {stable_mosaic.version = 11 : i64} {
  func.func @_spatial_attention_kernel(%arg0: i32, %arg1: i32, %arg2: memref<1x4x256xf32, #tpu.memory_space<vmem>>, %arg3: memref<256x256xf32, #tpu.memory_space<vmem>>, %arg4: memref<1x1x256xf32, #tpu.memory_space<vmem>>, %arg5: memref<1x256xf32, #tpu.memory_space<vmem>>) attributes {dimension_semantics = [#tpu.dimension_semantics<parallel>, #tpu.dimension_semantics<arbitrary>], iteration_bounds = array<i64: 2, 1>, scalar_prefetch = 0 : i64, scratch_operands = 1 : i64, tpu.core_type = #tpu.core_type<tc>, window_params = [{transform_indices = @transform_0, window_bounds = array<i64: 1, 4, 256>}, {pipeline_mode = #tpu.pipeline_mode<synchronous>, transform_indices = @transform_1, window_bounds = array<i64: 256, 256>}, {transform_indices = @transform_2, window_bounds = array<i64: 1, 1, 256>}]} {
    %c0_i32 = arith.constant 0 : i32
    %0 = arith.cmpi eq, %arg1, %c0_i32 : i32
    %1 = arith.extui %0 : i1 to i32
    %c0_i32_0 = arith.constant 0 : i32
    %2 = arith.cmpi ne, %1, %c0_i32_0 : i32
    scf.if %2 {
      %cst_9 = arith.constant 0xFF800000 : f32
      %11 = vector.broadcast %cst_9 : f32 to vector<1x256xf32>
      %c0_10 = arith.constant 0 : index
      %c0_11 = arith.constant 0 : index
      %12 = vector.load %arg5[%c0_10, %c0_11] : memref<1x256xf32, #tpu.memory_space<vmem>>, vector<1x256xf32>
      tpu.vector_store %arg5[%c0_10, %c0_11], %11 {strides = array<i32>} : memref<1x256xf32, #tpu.memory_space<vmem>>, vector<1x256xf32>,
    } else {
    }
    %c0 = arith.constant 0 : index
    %c0_1 = arith.constant 0 : index
    %c0_2 = arith.constant 0 : index
    %3 = vector.load %arg2[%c0, %c0_1, %c0_2] : memref<1x4x256xf32, #tpu.memory_space<vmem>>, vector<1x4x256xf32>
    %c0_3 = arith.constant 0 : index
    %c0_4 = arith.constant 0 : index
    %4 = vector.load %arg5[%c0_3, %c0_4] : memref<1x256xf32, #tpu.memory_space<vmem>>, vector<1x256xf32>
    %cst = arith.constant dense<0xFF800000> : vector<1x256xf32>
    %5 = vector.multi_reduction <maximumf>, %3, %cst [1] : vector<1x4x256xf32> to vector<1x256xf32>
    %6 = arith.maximumf %4, %5 : vector<1x256xf32>
    %c0_5 = arith.constant 0 : index
    %c0_6 = arith.constant 0 : index
    %7 = vector.load %arg5[%c0_5, %c0_6] : memref<1x256xf32, #tpu.memory_space<vmem>>, vector<1x256xf32>
    tpu.vector_store %arg5[%c0_5, %c0_6], %6 {strides = array<i32>} : memref<1x256xf32, #tpu.memory_space<vmem>>, vector<1x256xf32>,
    %c0_i32_7 = arith.constant 0 : i32
    %8 = arith.cmpi eq, %arg1, %c0_i32_7 : i32
    %9 = arith.extui %8 : i1 to i32
    %c0_i32_8 = arith.constant 0 : i32
    %10 = arith.cmpi ne, %9, %c0_i32_8 : i32
    scf.if %10 {
      %c0_9 = arith.constant 0 : index
      %c0_10 = arith.constant 0 : index
      %11 = vector.load %arg5[%c0_9, %c0_10] : memref<1x256xf32, #tpu.memory_space<vmem>>, vector<1x256xf32>
      %c0_11 = arith.constant 0 : index
      %c0_12 = arith.constant 0 : index
      %12 = vector.load %arg3[%c0_11, %c0_12] : memref<256x256xf32, #tpu.memory_space<vmem>>, vector<256x256xf32>
      %cst_13 = arith.constant dense<0.000000e+00> : vector<1x256xf32>
      %13 = tpu.matmul %11, %12, %cst_13 {dimension_numbers = #tpu.dot_dimension_numbers<[1], [0], [0], [1], [0, 0, 1, 1], [], []>, precision = #tpu.contract_precision<fp32>} : vector<1x256xf32>, vector<256x256xf32>, vector<1x256xf32> -> vector<1x256xf32>
      %14 = arith.negf %13 : vector<1x256xf32>
      %15 = math.exp %14 : vector<1x256xf32>
      %cst_14 = arith.constant 1.000000e+00 : f32
      %16 = vector.broadcast %cst_14 : f32 to vector<1x256xf32>
      %17 = arith.addf %16, %15 : vector<1x256xf32>
      %18 = arith.divf %16, %17 : vector<1x256xf32>
      %19 = vector.shape_cast %18 : vector<1x256xf32> to vector<1x1x256xf32>
      %c0_15 = arith.constant 0 : index
      %c0_16 = arith.constant 0 : index
      %c0_17 = arith.constant 0 : index
      %20 = vector.load %arg4[%c0_15, %c0_16, %c0_17] : memref<1x1x256xf32, #tpu.memory_space<vmem>>, vector<1x1x256xf32>
      tpu.vector_store %arg4[%c0_15, %c0_16, %c0_17], %19 {strides = array<i32>} : memref<1x1x256xf32, #tpu.memory_space<vmem>>, vector<1x1x256xf32>,
    } else {
    }
    return
  }
  func.func @transform_0(%arg0: i32, %arg1: i32) -> (i32, i32, i32) {
    %c0_i32 = arith.constant 0 : i32
    %c0_i32_0 = arith.constant 0 : i32
    return %arg0, %arg1, %c0_i32 : i32, i32, i32
  }
  func.func @transform_1(%arg0: i32, %arg1: i32) -> (i32, i32) {
    %c0_i32 = arith.constant 0 : i32
    %c0_i32_0 = arith.constant 0 : i32
    %c0_i32_1 = arith.constant 0 : i32
    return %c0_i32, %c0_i32_0 : i32, i32
  }
  func.func @transform_2(%arg0: i32, %arg1: i32) -> (i32, i32, i32) {
    %c0_i32 = arith.constant 0 : i32
    %c0_i32_0 = arith.constant 0 : i32
    %c0_i32_1 = arith.constant 0 : i32
    return %arg0, %c0_i32, %c0_i32_0 : i32, i32, i32
  }
}

module attributes {stable_mosaic.version = 11 : i64} {
  func.func @_spatial_attention_kernel(%arg0: i32, %arg1: i32, %arg2: memref<1x4x256xf32, #tpu.memory_space<vmem>>, %arg3: memref<256x256xf32, #tpu.memory_space<vmem>>, %arg4: memref<1x1x256xf32, #tpu.memory_space<vmem>>, %arg5: memref<1x256xf32, #tpu.memory_space<vmem>>) attributes {dimension_semantics = [#tpu.dimension_semantics<parallel>, #tpu.dimension_semantics<arbitrary>], iteration_bounds = array<i64: 2, 1>, scalar_prefetch = 0 : i64, scratch_operands = 1 : i64, tpu.core_type = #tpu.core_type<tc>, window_params = [{transform_indices = @transform_0, window_bounds = array<i64: 1, 4, 256>}, {pipeline_mode = #tpu.pipeline_mode<synchronous>, transform_indices = @transform_1, window_bounds = array<i64: 256, 256>}, {transform_indices = @transform_2, window_bounds = array<i64: 1, 1, 256>}]} {
    %c0_i32 = arith.constant 0 : i32
    %0 = arith.cmpi eq, %arg1, %c0_i32 : i32
    %1 = arith.extui %0 : i1 to i32
    %c0_i32_0 = arith.constant 0 : i32
    %2 = arith.cmpi ne, %1, %c0_i32_0 : i32
    scf.if %2 {
      %cst_9 = arith.constant 0xFF800000 : f32
      %11 = vector.broadcast %cst_9 : f32 to vector<1x256xf32>
      %c0_10 = arith.constant 0 : index
      %c0_11 = arith.constant 0 : index
      %12 = vector.load %arg5[%c0_10, %c0_11] : memref<1x256xf32, #tpu.memory_space<vmem>>, vector<1x256xf32>
      tpu.vector_store %arg5[%c0_10, %c0_11], %11 {strides = array<i32>} : memref<1x256xf32, #tpu.memory_space<vmem>>, vector<1x256xf32>,
    } else {
    }
    %c0 = arith.constant 0 : index
    %c0_1 = arith.constant 0 : index
    %c0_2 = arith.constant 0 : index
    %3 = vector.load %arg2[%c0, %c0_1, %c0_2] : memref<1x4x256xf32, #tpu.memory_space<vmem>>, vector<1x4x256xf32>
    %c0_3 = arith.constant 0 : index
    %c0_4 = arith.constant 0 : index
    %4 = vector.load %arg5[%c0_3, %c0_4] : memref<1x256xf32, #tpu.memory_space<vmem>>, vector<1x256xf32>
    %cst = arith.constant dense<0xFF800000> : vector<1x256xf32>
    %5 = vector.multi_reduction <maximumf>, %3, %cst [1] : vector<1x4x256xf32> to vector<1x256xf32>
    %6 = arith.maximumf %4, %5 : vector<1x256xf32>
    %c0_5 = arith.constant 0 : index
    %c0_6 = arith.constant 0 : index
    %7 = vector.load %arg5[%c0_5, %c0_6] : memref<1x256xf32, #tpu.memory_space<vmem>>, vector<1x256xf32>
    tpu.vector_store %arg5[%c0_5, %c0_6], %6 {strides = array<i32>} : memref<1x256xf32, #tpu.memory_space<vmem>>, vector<1x256xf32>,
    %c0_i32_7 = arith.constant 0 : i32
    %8 = arith.cmpi eq, %arg1, %c0_i32_7 : i32
    %9 = arith.extui %8 : i1 to i32
    %c0_i32_8 = arith.constant 0 : i32
    %10 = arith.cmpi ne, %9, %c0_i32_8 : i32
    scf.if %10 {
      %c0_9 = arith.constant 0 : index
      %c0_10 = arith.constant 0 : index
      %11 = vector.load %arg5[%c0_9, %c0_10] : memref<1x256xf32, #tpu.memory_space<vmem>>, vector<1x256xf32>
      %c0_11 = arith.constant 0 : index
      %c0_12 = arith.constant 0 : index
      %12 = vector.load %arg3[%c0_11, %c0_12] : memref<256x256xf32, #tpu.memory_space<vmem>>, vector<256x256xf32>
      %cst_13 = arith.constant dense<0.000000e+00> : vector<1x256xf32>
      %13 = tpu.matmul %11, %12, %cst_13 {dimension_numbers = #tpu.dot_dimension_numbers<[1], [0], [0], [1], [0, 0, 1, 1], [], []>, precision = #tpu.contract_precision<fp32>} : vector<1x256xf32>, vector<256x256xf32>, vector<1x256xf32> -> vector<1x256xf32>
      %14 = arith.negf %13 : vector<1x256xf32>
      %15 = math.exp %14 : vector<1x256xf32>
      %cst_14 = arith.constant 1.000000e+00 : f32
      %16 = vector.broadcast %cst_14 : f32 to vector<1x256xf32>
      %17 = arith.addf %16, %15 : vector<1x256xf32>
      %18 = arith.divf %16, %17 : vector<1x256xf32>
      %19 = vector.shape_cast %18 : vector<1x256xf32> to vector<1x1x256xf32>
      %c0_15 = arith.constant 0 : index
      %c0_16 = arith.constant 0 : index
      %c0_17 = arith.constant 0 : index
      %20 = vector.load %arg4[%c0_15, %c0_16, %c0_17] : memref<1x1x256xf32, #tpu.memory_space<vmem>>, vector<1x1x256xf32>
      tpu.vector_store %arg4[%c0_15, %c0_16, %c0_17], %19 {strides = array<i32>} : memref<1x1x256xf32, #tpu.memory_space<vmem>>, vector<1x1x256xf32>,
    } else {
    }
    return
  }
  func.func @transform_0(%arg0: i32, %arg1: i32) -> (i32, i32, i32) {
    %c0_i32 = arith.constant 0 : i32
    %c0_i32_0 = arith.constant 0 : i32
    return %arg0, %arg1, %c0_i32 : i32, i32, i32
  }
  func.func @transform_1(%arg0: i32, %arg1: i32) -> (i32, i32) {
    %c0_i32 = arith.constant 0 : i32
    %c0_i32_0 = arith.constant 0 : i32
    %c0_i32_1 = arith.constant 0 : i32
    return %c0_i32, %c0_i32_0 : i32, i32
  }
  func.func @transform_2(%arg0: i32, %arg1: i32) -> (i32, i32, i32) {
    %c0_i32 = arith.constant 0 : i32
    %c0_i32_0 = arith.constant 0 : i32
    %c0_i32_1 = arith.constant 0 : i32
    return %arg0, %c0_i32, %c0_i32_0 : i32, i32, i32
  }
}

</mosaic_0001>

<bundles_post_ra>
// kernel: tpu_custom_call.1
= control target key start
LH: loop header
LB: loop body
LE: loop exit
PB: predicated region body
PF: predicated region fallthrough
CT: control target
= control target key end

     0   :  { %7 = vsyncpa [#allocation4], 0  ;;  %s3430_s0 = inlined_call_operand.hbm [shape: f32[2,4,256], index: 0, kind: input, shape index: {}]   ;;  %s3431_s1 = inlined_call_operand.hbm [shape: f32[256,256], index: 1, kind: input, shape index: {}]   ;;  %s3432_s2 = inlined_call_operand.hbm [shape: f32[2,1,256], index: 2, kind: output, shape index: {}]  }
   0x1   :  { %9 = vsyncpa [#allocation4 + $0x1], 0 }
   0x2   :  { %10 = vsyncpa [#allocation7], 0 }
   0x3   :  { %11 = vsyncpa [#allocation5], 0 }
   0x4   :  { %13 = vsyncpa [#allocation5 + $0x1], 0  ;;  %s2413_s9 = smov 0   ;;  %s2415_s10 = smov 0  }
   0x5   :  { %s2417_s11 = smov 0   ;;  %s2419_s12 = smov 0  }
   0x6   :  { %s2421_s13 = smov 0   ;;  %s2423_s14 = smov 0  }
   0x7 LB: > { %s1744_s15 = sadd.s32 4294967295, %s2389_s14   ;;  %s1745_s16 = sadd.s32 4294967294, %s2389_s14   ;;  %s2389_s14 = sphi %s2423_s14, %s19_s14   ;;  %s2385_s13 = sphi %s2421_s13, %s3857_s13   ;;  %s2381_s12 = sphi %s2419_s12, %s3856_s12   ;;  %s2377_s11 = sphi %s2417_s11, %s3855_s11   ;;  %s2373_s10 = sphi %s2415_s10, %s3854_s10   ;;  %s2369_s9 = sphi %s2413_s9, %s3853_s9  }
   0x8   : > { %p53_p0 = scmp.ne.s32.totalorder %s2373_s10, %s2369_s9  ;;  %p2447_p1 = scmp.eq.s32.totalorder %s1744_s15, 0 }
   0x9   : > { %p2451_p2 = scmp.eq.s32.totalorder %s1744_s15, 1  ;;  %p104_p3 = scmp.eq.s32.totalorder %s1745_s16, 1 }
   0xa   : > { %s3568_s17 = scalar_select %p2447_p1, 1, 0 }
   0xb   : > { %s3569_s18 = scalar_select %p2451_p2, 1, 0 }
   0xc   : > { %p2457_p4 = por %p2447_p1, %p53_p0  ;;  %p1746_p5 = scmp.ge.s32.totalorder %s2389_s14, 1 }
   0xd   : > { %p2462_p6 = por %p104_p3, %p53_p0  ;;  %p111_p7 = scmp.lt.s32.totalorder %s2389_s14, 3 }
   0xe   : > { %s3570_s19 = scalar_select %p2457_p4, 1, 0 }
   0xf   : > { %s3571_s20 = scalar_select %p2462_p6, 1, 0 }
  0x10   : > { %p2467_p8 = pnand %p1746_p5, %p111_p7  ;;  %s2391_s22 = smov [#allocation6]  }
  0x11   : > { %s123_s23 = sshll.u32 %s2391_s22, 4  ;;  %s31_s25 = sadd.s32 1, %s2385_s13  ;;  %s124_s23 = int_to_ptr.vmem [resolvable:$true] %s123_s23 }
  0x12   : > { %s3572_s21 = scalar_select %p2467_p8, 1, 0 }
  0x13   : > { %p2167_p9 = pneg %p2467_p8  ;;  %s2245_s28 = scalar_lea.hbm %s3431_s1, 8192 }
  0x14   : > { %p2246_p12 = scmp.ne.s32.totalorder %s3431_s1, %s2245_s28  ;;  %p2252_p5 = scmp.lt.u32.totalorder %s2245_s28, %s3431_s1 }
  0x15   : > { %p2476_p11 = pnand %p2167_p9, %p2447_p1 }
  0x17   : > { %p2247_p13 = pneg %p2476_p11 }
  0x19   : > { %p2248_p0 = pnand %p2247_p13, %p2246_p12 }
  0x1b   : > { %p2249_p3 = pneg %p2248_p0 }
  0x1d   : > { %p2254_p7 = pnand %p2252_p5, %p2249_p3 }
  0x1f   : > { %2257 = shalt.err (!%p2254_p7)
}
  0x20   : > { %s2258_s5 = scalar_lea.vmem %s124_s23, 8192  ;;  %p2266_p1 = scmp.lt.s32.totalorder %s124_s23, %s124_s23 }
  0x21   : > { %p2259_p9 = scmp.ne.s32.totalorder %s124_s23, %s2258_s5  ;;  %p2267_p4 = scmp.lt.s32.totalorder %s2258_s5, %s2258_s5 }
  0x23   : > { %p2261_p10 = pnand %p2259_p9, %p2247_p13  ;;  %p2268_p8 = por %p2267_p4, %p2266_p1 }
  0x25   : > { %p2262_p6 = pneg %p2261_p10 }
  0x27   : > { %p2269_p2 = pnand %p2268_p8, %p2262_p6 }
  0x29   : > { %2272 = shalt.err (!%p2269_p2)
}
  0x2a   : > { %s2392_s6 = smov 256   ;;  %s2393_s7 = smov 16  }
  0x2b   : > { %2170 = dma.hbm_to_vmem [thread:$0]  (!%p2476_p11), %s3431_s1, 8192, %s124_s23, [#allocation7], %s2392_s6, %s2392_s6, %s2393_s7  }
  0x2c   : > { %p33_p1 = scmp.ge.s32.totalorder %s31_s25, 2  ;;  %s40_s16 = sadd.s32 1, %s2377_s11 }
  0x2d   : > { %p47_p2 = scmp.ne.s32.totalorder %s2377_s11, %s2373_s10  ;;  %p48_p4 = scmp.eq.s32.totalorder %s2389_s14, 0 }
  0x2e   : > { %s3859_s25 = smov (%p33_p1, %s31_s25), 0  ;;  %p3575_p8 = scmp.ne.s32.totalorder %s3569_s18, 0 }
  0x2f   : > { %p2503_p6 = por %p48_p4, %p47_p2  ;;  %s35_s24 = ssub.s32 %s2385_s13, %s3859_s25 }
  0x30   : > { %p2509_p10 = por %p3575_p8, %p47_p2  ;;  %p2180_p12 = scmp.lt.s32.totalorder %s2389_s14, 2 }
  0x31   : > { %p38_p11 = scmp.eq.s32.totalorder %s35_s24, 0  ;;  %s137_s23 = sand.u32 1, %s2377_s11  }
  0x32   : > { %s1749_s27 = sshll.u32 %s137_s23, 3  ;;  %s1763_s29 = sshll.u32 %s2385_s13, 7 }
  0x33   : > { %s2518_s28 = scalar_select %p38_p11, %s2377_s11, %s40_s16  }
  0x34   : > { %s2524_s4 = scalar_lea.hbm %s3430_s0, %s1763_s29  ;;  %s141_s18 = scalar_lea.vmem [#allocation3], %s1749_s27 }
  0x35   : > { %s151_s5 = sshll.u32 %s141_s18, 4  ;;  %p2530_p13 = pnand %p2180_p12, %p2503_p6  ;;  %s2526_s5 = int_to_ptr.vmem [resolvable:$true] %s151_s5 }
  0x36   : > { %s138_s7 = scalar_lea.sflag [#allocation4], %s137_s23  ;;  %s2273_s8 = scalar_lea.hbm %s2524_s4, 128 }
  0x37   : > { %p2274_p0 = scmp.ne.s32.totalorder %s2524_s4, %s2273_s8  ;;  %p2275_p3 = pneg %p2530_p13 }
  0x38   : > { %s2278_s24 = scalar_lea.hbm %s3430_s0, 256  ;;  %p2279_p9 = scmp.lt.u32.totalorder %s2524_s4, %s3430_s0 }
  0x39   : > { %p2276_p5 = pnand %p2275_p3, %p2274_p0  ;;  %p2280_p1 = scmp.lt.u32.totalorder %s2278_s24, %s2273_s8 }
  0x3a   : > { %p2282_p4 = scmp.lt.u32.totalorder %s2273_s8, %s2524_s4 }
  0x3b   : > { %p2277_p7 = pneg %p2276_p5  ;;  %p2281_p2 = por %p2280_p1, %p2279_p9 }
  0x3d   : > { %p2283_p6 = por %p2282_p4, %p2281_p2 }
  0x3f   : > { %p2284_p8 = pnand %p2283_p6, %p2277_p7 }
  0x41   : > { %2287 = shalt.err (!%p2284_p8)
}
  0x42   : > { %s2288_s23 = scalar_lea.vmem %s2526_s5, 128  ;;  %s2394_s29 = smov [#allocation3]  }
  0x43   : > { %p2289_p12 = scmp.ne.s32.totalorder %s2526_s5, %s2288_s23  ;;  %s2293_s30 = sshll.u32 %s2394_s29, 4  ;;  %s2294_s30 = int_to_ptr.vmem [resolvable:$false] %s2293_s30 }
  0x44   : > { %s2295_s3 = scalar_lea.vmem %s2294_s30, 256  ;;  %p2296_p5 = scmp.lt.s32.totalorder %s2526_s5, %s2294_s30 }
  0x45   : > { %p2291_p11 = pnand %p2289_p12, %p2275_p3  ;;  %p2297_p9 = scmp.lt.s32.totalorder %s2295_s3, %s2288_s23 }
  0x47   : > { %p2292_p0 = pneg %p2291_p11  ;;  %p2298_p1 = por %p2297_p9, %p2296_p5 }
  0x49   : > { %p2299_p2 = pnand %p2298_p1, %p2292_p0 }
  0x4b   : > { %2302 = shalt.err (!%p2299_p2)
}
  0x4c   : > { %2174 = dma.hbm_to_vmem [thread:$0]  (!%p2530_p13), %s2524_s4, 128, %s2526_s5, %s138_s7  }
  0x4d   : > { %p3578_p7 = scmp.ne.s32.totalorder %s3572_s21, 0 }
  0x4f   : > { %160 = sbr.rel (%p3578_p7) target bundleno = 575 (0x23f), region = 28 }
  0x56   : > { %s2562_s18 = sand.u32 1, %s2373_s10   ;;  %p3579_p3 = scmp.ne.s32.totalorder %s3570_s19, 0 }
  0x57   : > { %s1753_s8 = sshll.u32 %s2562_s18, 3  ;;  %s163_s15 = scalar_lea.sflag [#allocation4], %s2562_s18 }
  0x58   : > { %s2566_s16 = scalar_lea.vmem [#allocation3], %s1753_s8 }
  0x59   : > { %2356 = dma.done.wait (%p3579_p3), %s163_s15, 128  }
  0x5a   : > { %2358 = vsyncadd (%p3579_p3), %s163_s15, 4294967168  ;;  %p3580_p13 = scmp.ne.s32.totalorder %s3568_s17, 0 }
  0x5c   : > { %2360 = dma.done.wait (%p3580_p13), [#allocation7], 8192  }
  0x5d   : > { %2362 = vsyncadd (%p3580_p13), [#allocation7], 4294959104  ;;  %v195_v0 = vlaneseq  ;;  %v2395_v1 = vmov 1966171168   ;;  %v3581_v3 = vmov 0  ;;  %v2396_v4 = vmov -inf  }
  0x5e   : > { %v224_v2 = vunpack.c.l.s4 %v2395_v1  ;;  %v249_v7 = vld [vmem:[#allocation6 + $0x8] sm:$0xff]  ;;  %v251_v8 = vld [vmem:[#allocation6 + $0x18] sm:$0xff]  ;;  %v248_v9 = vld [vmem:[#allocation6] sm:$0xff]  ;;  %vm205_vm1 = vcmask 1043456   ;;  %s1755_s17 = sshll.u32 %s2562_s18, 1  ;;  %s1764_s19 = sshll.u32 %s2381_s12, 5 }
  0x5f   : > { %vm2576_vm0 = vcmp.lt.s32.totalorder %v195_v0, 256  ;;  %v2582_v6 = vshrl.u32 %v195_v0, 7  ;;  %v323_v12 = vand.u32 4294901760, %v249_v7  ;;  %v327_v13 = vand.u32 4294901760, %v251_v8  ;;  %v250_v14 = vld [vmem:[#allocation6 + $0x10] sm:$0xff]  ;;  %v253_v16 = vld [vmem:[#allocation6 + $0x28] sm:$0xff]  ;;  %s3379_s7 = scalar_lea.hbm %s3432_s2, %s1764_s19 }
  0x60   : > { %v3582_v3 = vsel %vm2576_vm0, 4294967295, %v3581_v3  ;;  %199 = vst.msk [vmem:[#allocation2] sm:$0x3] %vm2576_vm0, %v2396_v4  ;;  %v225_v5 = vunpack.c.0.s8 %v224_v2  ;;  %v325_v15 = vand.u32 4294901760, %v248_v9  ;;  %v255_v17 = vld [vmem:[#allocation6 + $0x38] sm:$0xff]  ;;  %v329_v18 = vand.u32 4294901760, %v250_v14 }
  0x61   : > { %3583 = vst [vmem:[#allocation12_spill] sm:$0xff] %v3582_v3  ;;  %3584 = vst [vmem:[#allocation13_spill] sm:$0xff] %v2582_v6  ;;  %v331_v19 = vand.u32 4294901760, %v253_v16  ;;  %v335_v20 = vand.u32 4294901760, %v255_v17  ;;  %v252_v21 = vld [vmem:[#allocation6 + $0x20] sm:$0xff]  ;;  %v254_v22 = vld [vmem:[#allocation6 + $0x30] sm:$0xff]  ;;  %v2589_v25 = vpack.c.bf16 %v327_v13, %v323_v12  ;;  %v2591_v26 = vsub.f32 %v249_v7, %v323_v12 }
  0x62   : > { %v257_v23 = vld [vmem:[#allocation6 + $0x48] sm:$0xff]  ;;  %v2587_v24 = vsub.s32 %v225_v5, %v2582_v6  ;;  %v2593_v27 = vsub.f32 %v251_v8, %v327_v13  ;;  %v2595_v28 = vsub.f32 %v248_v9, %v325_v15  ;;  %v259_v29 = vld [vmem:[#allocation6 + $0x58] sm:$0xff]  ;;  %v256_v30 = vld [vmem:[#allocation6 + $0x40] sm:$0xff]  ;;  %v2597_v32 = vpack.c.bf16 %v329_v18, %v325_v15  ;;  %s190_s21 = scalar_lea.vmem [#allocation8], %s1755_s17  ;;  %s1639_s12 = scalar_lea.sflag [#allocation5], %s2562_s18 }
  0x63   : > { %3586 = vst [vmem:[#allocation15_spill] sm:$0xff] %v2589_v25  ;;  %3587 = vst [vmem:[#allocation16_spill] sm:$0xff] %v2591_v26  ;;  %v258_v31 = vld [vmem:[#allocation6 + $0x50] sm:$0xff]  ;;  %v2599_v33 = vsub.f32 %v250_v14, %v329_v18  ;;  %v2601_v34 = vpack.c.bf16 %v335_v20, %v331_v19  ;;  %v2603_v35 = vsub.f32 %v253_v16, %v331_v19  ;;  %v261_v36 = vld [vmem:[#allocation6 + $0x68] sm:$0xff]  ;;  %1766 = vmatprep.subr.bf16.mxu1 %v2589_v25  ;;  %s1653_s4 = sshll.u32 %s190_s21, 4  ;;  %s2397_s22 = smov [#allocation8]   ;;  %s3381_s4 = int_to_ptr.vmem [resolvable:$true] %s1653_s4 }
  0x64   : > { %3585 = vst [vmem:[#allocation14_spill] sm:$0xff] %v2587_v24  ;;  %3588 = vst [vmem:[#allocation17_spill] sm:$0xff] %v2593_v27  ;;  %v263_v37 = vld [vmem:[#allocation6 + $0x78] sm:$0xff]  ;;  %1958 = vmatprep.subr.bf16.mxu0 %v2589_v25  ;;  %v2607_v38 = vsub.f32 %v255_v17, %v335_v20  ;;  %v333_v39 = vand.u32 4294901760, %v252_v21  ;;  %v337_v40 = vand.u32 4294901760, %v254_v22  ;;  %v339_v41 = vand.u32 4294901760, %v257_v23  ;;  %1768 = vmatpush1.bf16.msra.mxu1 %v2597_v32 }
  0x65   : > { %3589 = vst [vmem:[#allocation18_spill] sm:$0xff] %v2595_v28  ;;  %3590 = vst [vmem:[#allocation19_spill] sm:$0xff] %v2597_v32  ;;  %1960 = vmatpush1.bf16.msra.mxu0 %v2597_v32  ;;  %v343_v42 = vand.u32 4294901760, %v259_v29  ;;  %v341_v43 = vand.u32 4294901760, %v256_v30  ;;  %v345_v44 = vand.u32 4294901760, %v258_v31  ;;  %v347_v45 = vand.u32 4294901760, %v261_v36  ;;  %1770 = vmatprep.subr.bf16.mxu1 %v2601_v34 }
  0x66   : > { %3591 = vst [vmem:[#allocation20_spill] sm:$0xff] %v2599_v33  ;;  %3592 = vst [vmem:[#allocation21_spill] sm:$0xff] %v2601_v34  ;;  %v260_v46 = vld [vmem:[#allocation6 + $0x60] sm:$0xff]  ;;  %1962 = vmatprep.subr.bf16.mxu0 %v2601_v34  ;;  %v2613_v47 = vpack.c.bf16 %v337_v40, %v333_v39  ;;  %v2615_v48 = vsub.f32 %v252_v21, %v333_v39  ;;  %v2617_v49 = vsub.f32 %v254_v22, %v337_v40  ;;  %v262_v51 = vld [vmem:[#allocation6 + $0x70] sm:$0xff]  ;;  %s2303_s24 = scalar_lea.vmem %s3381_s4, 32  ;;  %s2307_s27 = sshll.u32 %s2397_s22, 4  ;;  %s2308_s27 = int_to_ptr.vmem [resolvable:$false] %s2307_s27 }
  0x67   : > { %3593 = vst [vmem:[#allocation22_spill] sm:$0xff] %v2603_v35  ;;  %3594 = vst [vmem:[#allocation23_spill] sm:$0xff] %v2607_v38  ;;  %v351_v50 = vand.u32 4294901760, %v263_v37  ;;  %v265_v52 = vld [vmem:[#allocation6 + $0x88] sm:$0xff]  ;;  %v267_v53 = vld [vmem:[#allocation6 + $0x98] sm:$0xff]  ;;  %v2619_v54 = vpack.c.bf16 %v343_v42, %v339_v41  ;;  %v2621_v55 = vsub.f32 %v257_v23, %v339_v41  ;;  %v2623_v56 = vsub.f32 %v259_v29, %v343_v42  ;;  %p2304_p4 = scmp.ne.s32.totalorder %s3381_s4, %s2303_s24  ;;  %s2309_s23 = scalar_lea.vmem %s2308_s27, 64 }
  0x68   : > { %3595 = vst [vmem:[#allocation24_spill] sm:$0xff] %v2613_v47  ;;  %3596 = vst [vmem:[#allocation25_spill] sm:$0xff] %v2615_v48  ;;  %v2625_v57 = vpack.c.bf16 %v345_v44, %v341_v43  ;;  %v264_v58 = vld [vmem:[#allocation6 + $0x80] sm:$0xff]  ;;  %v266_v59 = vld [vmem:[#allocation6 + $0x90] sm:$0xff]  ;;  %v2627_v61 = vsub.f32 %v256_v30, %v341_v43  ;;  %v2629_v62 = vsub.f32 %v258_v31, %v345_v44  ;;  %1772 = vmatpush1.bf16.msra.mxu1 %v2613_v47  ;;  %p2310_p12 = scmp.lt.s32.totalorder %s3381_s4, %s2308_s27  ;;  %p2311_p11 = scmp.lt.s32.totalorder %s2309_s23, %s2303_s24 }
  0x69   : > { %3597 = vst [vmem:[#allocation26_spill] sm:$0xff] %v2617_v49  ;;  %3598 = vst [vmem:[#allocation27_spill] sm:$0xff] %v2619_v54  ;;  %v269_v60 = vld [vmem:[#allocation6 + $0xa8] sm:$0xff]  ;;  %v2631_v63 = vpack.c.bf16 %v351_v50, %v347_v45  ;;  %v2633_v0 = vsub.f32 %v261_v36, %v347_v45  ;;  %1964 = vmatpush1.bf16.msra.mxu0 %v2613_v47  ;;  %v2637_v1 = vsub.f32 %v263_v37, %v351_v50  ;;  %v271_v7 = vld [vmem:[#allocation6 + $0xb8] sm:$0xff]  ;;  %p2305_p6 = pnand %p2304_p4, %p2509_p10 }
  0x6a   : > { %3599 = vst [vmem:[#allocation28_spill] sm:$0xff] %v2621_v55  ;;  %3600 = vst [vmem:[#allocation29_spill] sm:$0xff] %v2623_v56  ;;  %v349_v2 = vand.u32 4294901760, %v260_v46  ;;  %v353_v4 = vand.u32 4294901760, %v262_v51  ;;  %v355_v5 = vand.u32 4294901760, %v265_v52  ;;  %1774 = vmatprep.subr.bf16.mxu1 %v2619_v54  ;;  %1966 = vmatprep.subr.bf16.mxu0 %v2619_v54  ;;  %v359_v8 = vand.u32 4294901760, %v267_v53  ;;  %p2312_p0 = por %p2311_p11, %p2310_p12 }
  0x6b   : > { %3601 = vst [vmem:[#allocation30_spill] sm:$0xff] %v2625_v57  ;;  %3602 = vst [vmem:[#allocation31_spill] sm:$0xff] %v2627_v61  ;;  %v357_v9 = vand.u32 4294901760, %v264_v58  ;;  %v361_v12 = vand.u32 4294901760, %v266_v59  ;;  %v363_v13 = vand.u32 4294901760, %v269_v60  ;;  %v268_v14 = vld [vmem:[#allocation6 + $0xa0] sm:$0xff]  ;;  %p2306_p8 = pneg %p2305_p6 }
  0x6c   : > { %3603 = vst [vmem:[#allocation32_spill] sm:$0xff] %v2629_v62  ;;  %3604 = vst [vmem:[#allocation33_spill] sm:$0xff] %v2631_v63  ;;  %v270_v15 = vld [vmem:[#allocation6 + $0xb0] sm:$0xff]  ;;  %v2641_v16 = vpack.c.bf16 %v353_v4, %v349_v2  ;;  %v2643_v17 = vsub.f32 %v260_v46, %v349_v2  ;;  %v2645_v18 = vsub.f32 %v262_v51, %v353_v4  ;;  %v273_v20 = vld [vmem:[#allocation6 + $0xc8] sm:$0xff]  ;;  %1776 = vmatpush1.bf16.msra.mxu1 %v2625_v57 }
  0x6d   : > { %3605 = vst [vmem:[#allocation34_spill] sm:$0xff] %v2633_v0  ;;  %3606 = vst [vmem:[#allocation35_spill] sm:$0xff] %v2637_v1  ;;  %v2647_v19 = vsub.f32 %v265_v52, %v355_v5  ;;  %v275_v21 = vld [vmem:[#allocation6 + $0xd8] sm:$0xff]  ;;  %v272_v22 = vld [vmem:[#allocation6 + $0xc0] sm:$0xff]  ;;  %v2649_v23 = vpack.c.bf16 %v359_v8, %v355_v5  ;;  %v2651_v29 = vsub.f32 %v267_v53, %v359_v8  ;;  %1968 = vmatpush1.bf16.msra.mxu0 %v2625_v57  ;;  %p2313_p5 = pnand %p2312_p0, %p2306_p8 }
  0x6e   : > { %3607 = vst [vmem:[#allocation36_spill] sm:$0xff] %v2641_v16  ;;  %3608 = vst [vmem:[#allocation37_spill] sm:$0xff] %v2643_v17  ;;  %v2653_v30 = vpack.c.bf16 %v361_v12, %v357_v9  ;;  %v2655_v31 = vsub.f32 %v264_v58, %v357_v9  ;;  %v274_v36 = vld [vmem:[#allocation6 + $0xd0] sm:$0xff]  ;;  %v2659_v37 = vsub.f32 %v266_v59, %v361_v12  ;;  %v367_v39 = vand.u32 4294901760, %v271_v7  ;;  %v277_v46 = vld [vmem:[#allocation6 + $0xe8] sm:$0xff] }
  0x6f   : > { %3609 = vst [vmem:[#allocation38_spill] sm:$0xff] %v2645_v18  ;;  %3610 = vst [vmem:[#allocation39_spill] sm:$0xff] %v2647_v19  ;;  %v2661_v40 = vsub.f32 %v269_v60, %v363_v13  ;;  %v365_v41 = vand.u32 4294901760, %v268_v14  ;;  %1778 = vmatprep.subr.bf16.mxu1 %v2631_v63  ;;  %1970 = vmatprep.subr.bf16.mxu0 %v2631_v63  ;;  %v369_v42 = vand.u32 4294901760, %v270_v15  ;;  %v371_v43 = vand.u32 4294901760, %v273_v20  ;;  %v279_v58 = vld [vmem:[#allocation6 + $0xf8] sm:$0xff] }
  0x70   : > { %3611 = vst [vmem:[#allocation40_spill] sm:$0xff] %v2649_v23  ;;  %3612 = vst [vmem:[#allocation41_spill] sm:$0xff] %v2651_v29  ;;  %v375_v44 = vand.u32 4294901760, %v275_v21  ;;  %v373_v45 = vand.u32 4294901760, %v272_v22  ;;  %v2665_v50 = vpack.c.bf16 %v367_v39, %v363_v13  ;;  %v2667_v51 = vsub.f32 %v271_v7, %v367_v39  ;;  %v276_v59 = vld [vmem:[#allocation6 + $0xe0] sm:$0xff]  ;;  %v278_v60 = vld [vmem:[#allocation6 + $0xf0] sm:$0xff]  ;;  %1780 = vmatpush1.bf16.msra.mxu1 %v2641_v16 }
  0x71   : > { %3613 = vst [vmem:[#allocation42_spill] sm:$0xff] %v2653_v30  ;;  %3614 = vst [vmem:[#allocation43_spill] sm:$0xff] %v2655_v31  ;;  %v2669_v52 = vsub.f32 %v268_v14, %v365_v41  ;;  %v377_v53 = vand.u32 4294901760, %v274_v36  ;;  %v2671_v2 = vpack.c.bf16 %v369_v42, %v365_v41  ;;  %v2673_v4 = vsub.f32 %v270_v15, %v369_v42  ;;  %v281_v9 = vld [vmem:[#allocation6 + $0x108] sm:$0xff]  ;;  %v283_v12 = vld [vmem:[#allocation6 + $0x118] sm:$0xff] }
  0x72   : > { %3615 = vst [vmem:[#allocation44_spill] sm:$0xff] %v2659_v37  ;;  %3616 = vst [vmem:[#allocation45_spill] sm:$0xff] %v2661_v40  ;;  %v2675_v5 = vpack.c.bf16 %v375_v44, %v371_v43  ;;  %v2677_v8 = vsub.f32 %v273_v20, %v371_v43  ;;  %v280_v13 = vld [vmem:[#allocation6 + $0x100] sm:$0xff]  ;;  %1972 = vmatpush1.bf16.msra.mxu0 %v2641_v16  ;;  %v2681_v7 = vsub.f32 %v275_v21, %v375_v44  ;;  %v282_v11 = vld [vmem:[#allocation6 + $0x110] sm:$0xff] }
  0x73   : > { %3617 = vst [vmem:[#allocation46_spill] sm:$0xff] %v2665_v50  ;;  %3618 = vst [vmem:[#allocation47_spill] sm:$0xff] %v2667_v51  ;;  %v2683_v14 = vpack.c.bf16 %v377_v53, %v373_v45  ;;  %v2685_v39 = vsub.f32 %v272_v22, %v373_v45  ;;  %v379_v41 = vand.u32 4294901760, %v277_v46  ;;  %1782 = vmatprep.subr.bf16.mxu1 %v2649_v23  ;;  %1974 = vmatprep.subr.bf16.mxu0 %v2649_v23  ;;  %v285_v63 = vld [vmem:[#allocation6 + $0x128] sm:$0xff]  ;;  %v287_v57 = vld [vmem:[#allocation6 + $0x138] sm:$0xff] }
  0x74   : > { %3619 = vst [vmem:[#allocation48_spill] sm:$0xff] %v2669_v52  ;;  %3620 = vst [vmem:[#allocation49_spill] sm:$0xff] %v2671_v2  ;;  %v2689_v15 = vsub.f32 %v274_v36, %v377_v53  ;;  %v383_v20 = vand.u32 4294901760, %v279_v58  ;;  %v381_v42 = vand.u32 4294901760, %v276_v59  ;;  %v385_v43 = vand.u32 4294901760, %v278_v60  ;;  %v284_v36 = vld [vmem:[#allocation6 + $0x120] sm:$0xff]  ;;  %1784 = vmatpush1.bf16.msra.mxu1 %v2653_v30 }
  0x75   : > { %3621 = vst [vmem:[#allocation50_spill] sm:$0xff] %v2673_v4  ;;  %3622 = vst [vmem:[#allocation51_spill] sm:$0xff] %v2675_v5  ;;  %v2691_v10 = vsub.f32 %v277_v46, %v379_v41  ;;  %v387_v16 = vand.u32 4294901760, %v281_v9  ;;  %v391_v21 = vand.u32 4294901760, %v283_v12  ;;  %v389_v44 = vand.u32 4294901760, %v280_v13  ;;  %v286_v53 = vld [vmem:[#allocation6 + $0x130] sm:$0xff]  ;;  %1786 = vmatprep.subr.bf16.mxu1 %v2665_v50 }
  0x76   : > { %3623 = vst [vmem:[#allocation52_spill] sm:$0xff] %v2677_v8  ;;  %3624 = vst [vmem:[#allocation53_spill] sm:$0xff] %v2681_v7  ;;  %v2693_v22 = vpack.c.bf16 %v383_v20, %v379_v41  ;;  %v2695_v45 = vsub.f32 %v279_v58, %v383_v20  ;;  %v2697_v54 = vpack.c.bf16 %v385_v43, %v381_v42  ;;  %1976 = vmatpush1.bf16.msra.mxu0 %v2653_v30  ;;  %v289_v32 = vld [vmem:[#allocation6 + $0x148] sm:$0xff]  ;;  %v291_v25 = vld [vmem:[#allocation6 + $0x158] sm:$0xff] }
  0x77   : > { %3625 = vst [vmem:[#allocation54_spill] sm:$0xff] %v2683_v14  ;;  %3626 = vst [vmem:[#allocation55_spill] sm:$0xff] %v2685_v39  ;;  %v2699_v23 = vsub.f32 %v276_v59, %v381_v42  ;;  %v2703_v46 = vsub.f32 %v278_v60, %v385_v43  ;;  %v2705_v47 = vpack.c.bf16 %v391_v21, %v387_v16  ;;  %v393_v41 = vand.u32 4294901760, %v282_v11  ;;  %v304_v6 = vld [vmem:[#allocation6 + $0x1c0] sm:$0xff] }
  0x78   : > { %3627 = vst [vmem:[#allocation56_spill] sm:$0xff] %v2689_v15  ;;  %3628 = vst [vmem:[#allocation57_spill] sm:$0xff] %v2691_v10  ;;  %v2707_v34 = vsub.f32 %v281_v9, %v387_v16  ;;  %1978 = vmatprep.subr.bf16.mxu0 %v2665_v50  ;;  %v2711_v58 = vsub.f32 %v283_v12, %v391_v21  ;;  %v2713_v59 = vsub.f32 %v280_v13, %v389_v44  ;;  %v288_v9 = vld [vmem:[#allocation6 + $0x140] sm:$0xff]  ;;  %v295_v21 = vld [vmem:[#allocation6 + $0x178] sm:$0xff] }
  0x79   : > { %3629 = vst [vmem:[#allocation58_spill] sm:$0xff] %v2693_v22  ;;  %3630 = vst [vmem:[#allocation59_spill] sm:$0xff] %v2695_v45  ;;  %v395_v20 = vand.u32 4294901760, %v285_v63  ;;  %v399_v42 = vand.u32 4294901760, %v287_v57  ;;  %v2715_v30 = vpack.c.bf16 %v393_v41, %v389_v44  ;;  %v2717_v60 = vsub.f32 %v282_v11, %v393_v41  ;;  %v292_v50 = vld [vmem:[#allocation6 + $0x160] sm:$0xff]  ;;  %1788 = vmatpush1.bf16.msra.mxu1 %v2671_v2  ;;  %v303_v10 = vld [vmem:[#allocation6 + $0x1b8] sm:$0xff] }
  0x7a   : > { %3631 = vst [vmem:[#allocation60_spill] sm:$0xff] %v2697_v54  ;;  %3632 = vst [vmem:[#allocation61_spill] sm:$0xff] %v2699_v23  ;;  %v397_v43 = vand.u32 4294901760, %v284_v36  ;;  %v401_v16 = vand.u32 4294901760, %v286_v53  ;;  %v403_v13 = vand.u32 4294901760, %v289_v32  ;;  %1980 = vmatpush1.bf16.msra.mxu0 %v2671_v2  ;;  %1790 = vmatprep.subr.bf16.mxu1 %v2675_v5  ;;  %v306_v15 = vld [vmem:[#allocation6 + $0x1d0] sm:$0xff] }
  0x7b   : > { %3633 = vst [vmem:[#allocation62_spill] sm:$0xff] %v2703_v46  ;;  %3634 = vst [vmem:[#allocation63_spill] sm:$0xff] %v2705_v47  ;;  %v293_v46 = vld [vmem:[#allocation6 + $0x168] sm:$0xff]  ;;  %v2719_v23 = vpack.c.bf16 %v399_v42, %v395_v20  ;;  %v2721_v45 = vsub.f32 %v285_v63, %v395_v20  ;;  %v2723_v12 = vsub.f32 %v287_v57, %v399_v42  ;;  %1982 = vmatprep.subr.bf16.mxu0 %v2675_v5 }
  0x7c   : > { %3635 = vst [vmem:[#allocation64_spill] sm:$0xff] %v2707_v34  ;;  %3636 = vst [vmem:[#allocation65_spill] sm:$0xff] %v2711_v58  ;;  %v290_v34 = vld [vmem:[#allocation6 + $0x150] sm:$0xff]  ;;  %v2727_v11 = vpack.c.bf16 %v401_v16, %v397_v43  ;;  %v2729_v44 = vsub.f32 %v284_v36, %v397_v43  ;;  %v2731_v41 = vsub.f32 %v286_v53, %v401_v16  ;;  %v405_v63 = vand.u32 4294901760, %v288_v9  ;;  %v299_v53 = vld [vmem:[#allocation6 + $0x198] sm:$0xff] }
  0x7d   : > { %3637 = vst [vmem:[#allocation66_spill] sm:$0xff] %v2713_v59  ;;  %3638 = vst [vmem:[#allocation67_spill] sm:$0xff] %v2715_v30  ;;  %v2735_v57 = vsub.f32 %v289_v32, %v403_v13  ;;  %v409_v20 = vand.u32 4294901760, %v290_v34  ;;  %v411_v42 = vand.u32 4294901760, %v293_v46  ;;  %v415_v36 = vand.u32 4294901760, %v295_v21  ;;  %v296_v16 = vld [vmem:[#allocation6 + $0x180] sm:$0xff]  ;;  %1792 = vmatpush1.bf16.msra.mxu1 %v2683_v14 }
  0x7e   : > { %3639 = vst [vmem:[#allocation68_spill] sm:$0xff] %v2717_v60  ;;  %3640 = vst [vmem:[#allocation69_spill] sm:$0xff] %v2719_v23  ;;  %v407_v60 = vand.u32 4294901760, %v291_v25  ;;  %v413_v43 = vand.u32 4294901760, %v292_v50  ;;  %v2743_v58 = vsub.f32 %v288_v9, %v405_v63  ;;  %1984 = vmatpush1.bf16.msra.mxu0 %v2683_v14  ;;  %1794 = vmatprep.subr.bf16.mxu1 %v2693_v22  ;;  %v421_v9 = vand.u32 4294901760, %v296_v16 }
  0x7f   : > { %3641 = vst [vmem:[#allocation70_spill] sm:$0xff] %v2721_v45  ;;  %3642 = vst [vmem:[#allocation71_spill] sm:$0xff] %v2723_v12  ;;  %v294_v12 = vld [vmem:[#allocation6 + $0x170] sm:$0xff]  ;;  %v297_v45 = vld [vmem:[#allocation6 + $0x188] sm:$0xff]  ;;  %v2745_v32 = vsub.f32 %v290_v34, %v409_v20  ;;  %v2747_v5 = vsub.f32 %v293_v46, %v411_v42  ;;  %1986 = vmatprep.subr.bf16.mxu0 %v2693_v22  ;;  %v423_v46 = vand.u32 4294901760, %v299_v53 }
  0x80   : > { %3643 = vst [vmem:[#allocation72_spill] sm:$0xff] %v2727_v11  ;;  %3644 = vst [vmem:[#allocation73_spill] sm:$0xff] %v2729_v44  ;;  %v2737_v59 = vpack.c.bf16 %v407_v60, %v403_v13  ;;  %v2739_v2 = vsub.f32 %v291_v25, %v407_v60  ;;  %v2741_v44 = vpack.c.bf16 %v409_v20, %v405_v63  ;;  %v417_v13 = vand.u32 4294901760, %v294_v12  ;;  %v300_v20 = vld [vmem:[#allocation6 + $0x1a0] sm:$0xff] }
  0x81   : > { %3645 = vst [vmem:[#allocation74_spill] sm:$0xff] %v2731_v41  ;;  %3646 = vst [vmem:[#allocation75_spill] sm:$0xff] %v2735_v57  ;;  %v298_v41 = vld [vmem:[#allocation6 + $0x190] sm:$0xff]  ;;  %v301_v57 = vld [vmem:[#allocation6 + $0x1a8] sm:$0xff]  ;;  %v2751_v25 = vpack.c.bf16 %v415_v36, %v411_v42  ;;  %v2753_v60 = vsub.f32 %v295_v21, %v415_v36  ;;  %v419_v34 = vand.u32 4294901760, %v297_v45  ;;  %v431_v21 = vand.u32 4294901760, %v303_v10  ;;  %1796 = vmatpush1.bf16.msra.mxu1 %v2697_v54 }
  0x82   : > { %3647 = vst [vmem:[#allocation76_spill] sm:$0xff] %v2737_v59  ;;  %3648 = vst [vmem:[#allocation77_spill] sm:$0xff] %v2739_v2  ;;  %v2755_v2 = vsub.f32 %v292_v50, %v413_v43  ;;  %v425_v63 = vand.u32 4294901760, %v298_v41  ;;  %v2761_v14 = vsub.f32 %v294_v12, %v417_v13  ;;  %v427_v42 = vand.u32 4294901760, %v301_v57  ;;  %v302_v36 = vld [vmem:[#allocation6 + $0x1b0] sm:$0xff]  ;;  %1988 = vmatpush1.bf16.msra.mxu0 %v2697_v54  ;;  %v311_v54 = vld [vmem:[#allocation6 + $0x1f8] sm:$0xff] }
  0x83   : > { %3649 = vst [vmem:[#allocation78_spill] sm:$0xff] %v2741_v44  ;;  %3650 = vst [vmem:[#allocation79_spill] sm:$0xff] %v2743_v58  ;;  %v2763_v50 = vpack.c.bf16 %v423_v46, %v419_v34  ;;  %v307_v58 = vld [vmem:[#allocation6 + $0x1d8] sm:$0xff]  ;;  %v2773_v12 = vsub.f32 %v296_v16, %v421_v9  ;;  %1798 = vmatprep.subr.bf16.mxu1 %v2705_v47  ;;  %1990 = vmatprep.subr.bf16.mxu0 %v2705_v47 }
  0x84   : > { %3651 = vst [vmem:[#allocation80_spill] sm:$0xff] %v2745_v32  ;;  %3652 = vst [vmem:[#allocation81_spill] sm:$0xff] %v2747_v5  ;;  %v2759_v5 = vpack.c.bf16 %v417_v13, %v413_v43  ;;  %v2767_v32 = vsub.f32 %v299_v53, %v423_v46  ;;  %v2769_v22 = vpack.c.bf16 %v425_v63, %v421_v9  ;;  %v433_v46 = vand.u32 4294901760, %v302_v36 }
  0x85   : > { %3653 = vst [vmem:[#allocation82_spill] sm:$0xff] %v2751_v25  ;;  %3654 = vst [vmem:[#allocation83_spill] sm:$0xff] %v2753_v60  ;;  %v305_v60 = vld [vmem:[#allocation6 + $0x1c8] sm:$0xff]  ;;  %v2775_v43 = vsub.f32 %v298_v41, %v425_v63  ;;  %v2777_v13 = vpack.c.bf16 %v431_v21, %v427_v42  ;;  %v2781_v53 = vsub.f32 %v301_v57, %v427_v42  ;;  %v439_v41 = vand.u32 4294901760, %v307_v58  ;;  %v310_v57 = vld [vmem:[#allocation6 + $0x1f0] sm:$0xff] }
  0x86   : > { %3655 = vst [vmem:[#allocation84_spill] sm:$0xff] %v2755_v2  ;;  %3656 = vst [vmem:[#allocation85_spill] sm:$0xff] %v2759_v5  ;;  %v2765_v2 = vsub.f32 %v297_v45, %v419_v34  ;;  %v309_v45 = vld [vmem:[#allocation6 + $0x1e8] sm:$0xff]  ;;  %v2783_v34 = vsub.f32 %v303_v10, %v431_v21  ;;  %v437_v9 = vand.u32 4294901760, %v304_v6  ;;  %v441_v63 = vand.u32 4294901760, %v306_v15  ;;  %v200_v42 = vld [vmem:[%s2566_s16] sm:$0xff]  ;;  %1800 = vmatpush1.bf16.msra.mxu1 %v2715_v30 }
  0x87   : > { %3657 = vst [vmem:[#allocation86_spill] sm:$0xff] %v2761_v14  ;;  %3658 = vst [vmem:[#allocation87_spill] sm:$0xff] %v2763_v50  ;;  %v429_v14 = vand.u32 4294901760, %v300_v20  ;;  %v443_v47 = vand.u32 4294901760, %v309_v45  ;;  %1992 = vmatpush1.bf16.msra.mxu0 %v2715_v30  ;;  %1802 = vmatprep.subr.bf16.mxu1 %v2719_v23 }
  0x88   : > { %3659 = vst [vmem:[#allocation88_spill] sm:$0xff] %v2765_v2  ;;  %3660 = vst [vmem:[#allocation89_spill] sm:$0xff] %v2767_v32  ;;  %v435_v32 = vand.u32 4294901760, %v305_v60  ;;  %v2789_v2 = vsub.f32 %v302_v36, %v433_v46  ;;  %v2800_v21 = vpack.c.bf16 %v441_v63, %v437_v9  ;;  %1994 = vmatprep.subr.bf16.mxu0 %v2719_v23 }
  0x89   : > { %3661 = vst [vmem:[#allocation90_spill] sm:$0xff] %v2769_v22  ;;  %3662 = vst [vmem:[#allocation91_spill] sm:$0xff] %v2773_v12  ;;  %v2785_v16 = vsub.f32 %v300_v20, %v429_v14  ;;  %v2787_v12 = vpack.c.bf16 %v433_v46, %v429_v14  ;;  %v2798_v20 = vsub.f32 %v307_v58, %v439_v41  ;;  %v449_v58 = vand.u32 4294901760, %v310_v57 }
  0x8a   : > { %3663 = vst [vmem:[#allocation92_spill] sm:$0xff] %v2775_v43  ;;  %3664 = vst [vmem:[#allocation93_spill] sm:$0xff] %v2777_v13  ;;  %v308_v43 = vld [vmem:[#allocation6 + $0x1e0] sm:$0xff]  ;;  %v2791_v39 = vsub.f32 %v305_v60, %v435_v32  ;;  %v2796_v10 = vpack.c.bf16 %v439_v41, %v435_v32  ;;  %v2804_v14 = vsub.f32 %v304_v6, %v437_v9  ;;  %v482_v6 = vand.u32 4294901760, %v2593_v27 }
  0x8b   : > { %3665 = vst [vmem:[#allocation94_spill] sm:$0xff] %v2785_v16  ;;  %3666 = vst [vmem:[#allocation95_spill] sm:$0xff] %v2787_v12  ;;  %v447_v16 = vand.u32 4294901760, %v311_v54  ;;  %v2806_v60 = vsub.f32 %v306_v15, %v441_v63  ;;  %v2808_v36 = vsub.f32 %v309_v45, %v443_v47  ;;  %v445_v46 = vand.u32 4294901760, %v308_v43  ;;  %1804 = vmatpush1.bf16.msra.mxu1 %v2727_v11 }
  0x8c   : > { %3667 = vst [vmem:[#allocation96_spill] sm:$0xff] %v2789_v2  ;;  %3668 = vst [vmem:[#allocation97_spill] sm:$0xff] %v2791_v39  ;;  %v203_v41 = vcombine.high %v200_v42, %v200_v42  ;;  %v470_v2 = vand.u32 4294901760, %v2591_v26  ;;  %1996 = vmatpush1.bf16.msra.mxu0 %v2727_v11  ;;  %1806 = vmatprep.subr.bf16.mxu1 %v2737_v59  ;;  %v483_v9 = vsub.f32 %v2593_v27, %v482_v6 }
  0x8d   : > { %3669 = vst [vmem:[#allocation98_spill] sm:$0xff] %v2796_v10  ;;  %3670 = vst [vmem:[#allocation99_spill] sm:$0xff] %v2798_v20  ;;  %v2810_v39 = vpack.c.bf16 %v447_v16, %v443_v47  ;;  %v2812_v32 = vsub.f32 %v311_v54, %v447_v16  ;;  %v2814_v30 = vsub.f32 %v308_v43, %v445_v46  ;;  %v206_v20 = vsel %vm205_vm1, %v200_v42, -inf }
  0x8e   : > { %3671 = vst [vmem:[#allocation100_spill] sm:$0xff] %v2800_v21  ;;  %v2821_v15 = vpack.c.bf16 %v449_v58, %v445_v46  ;;  %v2823_v47 = vsub.f32 %v310_v57, %v449_v58  ;;  %v207_v54 = vrot.slane %v206_v20, 4  ;;  %v213_v45 = vsel %vm205_vm1, %v203_v41, -inf  ;;  %1998 = vmatprep.subr.bf16.mxu0 %v2737_v59 }
  0x8f   : > { %3672 = vst [vmem:[#allocation101_spill] sm:$0xff] %v2810_v39  ;;  %v214_v43 = vrot.slane %v213_v45, 4  ;;  %v471_v16 = vsub.f32 %v2591_v26, %v470_v2  ;;  %v2830_v63 = vpack.c.bf16 %v482_v6, %v470_v2  ;;  %v476_v46 = vand.u32 4294901760, %v2595_v28  ;;  %1808 = vmatpush1.bf16.msra.mxu1 %v2741_v44 }
  0x90   : > { %3673 = vst [vmem:[#allocation102_spill] sm:$0xff] %v2821_v15  ;;  %3674 = vst [vmem:[#allocation103_spill] sm:$0xff] %v2823_v47  ;;  %v208_v42 = vmax.f32 %v206_v20, %v207_v54  ;;  %v488_v57 = vand.u32 4294901760, %v2599_v33  ;;  %v494_v58 = vand.u32 4294901760, %v2603_v35  ;;  %v484_v23 = vand.u32 4294901760, %v483_v9  ;;  %2000 = vmatpush1.bf16.msra.mxu0 %v2741_v44  ;;  %1810 = vmatprep.subr.bf16.mxu1 %v2751_v25 }
  0x91   : > { %v215_v11 = vmax.f32 %v213_v45, %v214_v43  ;;  %v472_v41 = vand.u32 4294901760, %v471_v16  ;;  %v506_v47 = vand.u32 4294901760, %v2607_v38  ;;  %v477_v2 = vsub.f32 %v2595_v28, %v476_v46  ;;  %2002 = vmatprep.subr.bf16.mxu0 %v2751_v25 }
  0x92   : > { %v209_v59 = vrot.slane %v208_v42, 2  ;;  %v489_v20 = vsub.f32 %v2599_v33, %v488_v57  ;;  %v2840_v6 = vpack.c.bf16 %v488_v57, %v476_v46  ;;  %v495_v43 = vsub.f32 %v2603_v35, %v494_v58 }
  0x93   : > { %v216_v54 = vrot.slane %v215_v11, 2  ;;  %v2844_v45 = vpack.c.bf16 %v484_v23, %v472_v41  ;;  %v507_v16 = vsub.f32 %v2607_v38, %v506_v47  ;;  %v478_v44 = vand.u32 4294901760, %v477_v2  ;;  %1812 = vmatpush1.bf16.msra.mxu1 %v2759_v5 }
  0x94   : > { %v210_v9 = vmax.f32 %v208_v42, %v209_v59  ;;  %v490_v27 = vand.u32 4294901760, %v489_v20  ;;  %v2848_v26 = vpack.c.bf16 %v506_v47, %v494_v58  ;;  %v496_v33 = vand.u32 4294901760, %v495_v43  ;;  %2004 = vmatpush1.bf16.msra.mxu0 %v2759_v5  ;;  %1814 = vmatprep.subr.bf16.mxu1 %v2763_v50 }
  0x95   : > { %v217_v28 = vmax.f32 %v215_v11, %v216_v54  ;;  %v508_v46 = vand.u32 4294901760, %v507_v16  ;;  %v500_v57 = vand.u32 4294901760, %v2615_v48  ;;  %v512_v25 = vand.u32 4294901760, %v2617_v49  ;;  %2006 = vmatprep.subr.bf16.mxu0 %v2763_v50 }
  0x96   : > { %v211_v23 = vrot.slane %v210_v9, 1  ;;  %v2853_v41 = vpack.c.bf16 %v490_v27, %v478_v44  ;;  %v518_v59 = vand.u32 4294901760, %v2621_v55  ;;  %v530_v58 = vand.u32 4294901760, %v2623_v56 }
  0x97   : > { %v218_v11 = vrot.slane %v217_v28, 1  ;;  %v2859_v47 = vpack.c.bf16 %v508_v46, %v496_v33  ;;  %v501_v42 = vsub.f32 %v2615_v48, %v500_v57  ;;  %v513_v20 = vsub.f32 %v2617_v49, %v512_v25  ;;  %1816 = vmatpush1.bf16.msra.mxu1 %v2769_v22  ;;  %v3744_v49 = vld [vmem:[#allocation64_spill] sm:$0xff]  ;;  %v3753_v48 = vld [vmem:[#allocation81_spill] sm:$0xff] }
  0x98   : > { %v212_v2 = vmax.f32 %v210_v9, %v211_v23  ;;  %v2864_v27 = vpack.c.bf16 %v512_v25, %v500_v57  ;;  %v519_v44 = vsub.f32 %v2621_v55, %v518_v59  ;;  %v531_v16 = vsub.f32 %v2623_v56, %v530_v58  ;;  %2008 = vmatpush1.bf16.msra.mxu0 %v2769_v22  ;;  %v3735_v55 = vld [vmem:[#allocation50_spill] sm:$0xff]  ;;  %v3747_v56 = vld [vmem:[#allocation68_spill] sm:$0xff] }
  0x99   : > { %v219_v54 = vmax.f32 %v217_v28, %v218_v11  ;;  %v502_v43 = vand.u32 4294901760, %v501_v42  ;;  %v2868_v5 = vpack.c.bf16 %v530_v58, %v518_v59  ;;  %v514_v33 = vand.u32 4294901760, %v513_v20  ;;  %1818 = vmatprep.subr.bf16.mxu1 %v2777_v13  ;;  %2010 = vmatprep.subr.bf16.mxu0 %v2777_v13 }
  0x9a   : > { %v520_v46 = vand.u32 4294901760, %v519_v44  ;;  %v524_v9 = vand.u32 4294901760, %v2627_v61  ;;  %v536_v23 = vand.u32 4294901760, %v2629_v62  ;;  %v532_v25 = vand.u32 4294901760, %v531_v16 }
  0x9b   : > { %v222_v28 = vcombine.low %v212_v2, %v219_v54  ;;  %v542_v57 = vand.u32 4294901760, %v2633_v0  ;;  %v554_v59 = vand.u32 4294901760, %v2637_v1  ;;  %v2878_v11 = vpack.c.bf16 %v514_v33, %v502_v43  ;;  %1820 = vmatpush1.bf16.msra.mxu1 %v2787_v12  ;;  %v201_v54 = vld [vmem:[#allocation2] sm:$0x3] }
  0x9c   : > { %v525_v42 = vsub.f32 %v2627_v61, %v524_v9  ;;  %v537_v58 = vsub.f32 %v2629_v62, %v536_v23  ;;  %v2882_v20 = vpack.c.bf16 %v536_v23, %v524_v9  ;;  %v2885_v22 = vpack.c.bf16 %v532_v25, %v520_v46  ;;  %2012 = vmatpush1.bf16.msra.mxu0 %v2787_v12 }
  0x9d   : > { %v229_v44 = vrot.slane %v222_v28, %v2587_v24  ;;  %v543_v13 = vsub.f32 %v2633_v0, %v542_v57  ;;  %v555_v2 = vsub.f32 %v2637_v1, %v554_v59  ;;  %v2891_v33 = vpack.c.bf16 %v554_v59, %v542_v57  ;;  %1822 = vmatprep.subr.bf16.mxu1 %v2796_v10 }
  0x9e   : > { %v526_v43 = vand.u32 4294901760, %v525_v42  ;;  %v538_v16 = vand.u32 4294901760, %v537_v58  ;;  %v548_v9 = vand.u32 4294901760, %v2643_v17  ;;  %2014 = vmatprep.subr.bf16.mxu0 %v2796_v10  ;;  %v560_v25 = vand.u32 4294901760, %v2645_v18 }
  0x9f   : > { %v236_v46 = vrot.slane %v229_v44, %v2587_v24  ;;  %v544_v23 = vand.u32 4294901760, %v543_v13  ;;  %v556_v28 = vand.u32 4294901760, %v555_v2  ;;  %v566_v42 = vand.u32 4294901760, %v2647_v19  ;;  %1824 = vmatpush1.bf16.msra.mxu1 %v2800_v21 }
  0xa0   : > { %v2898_v50 = vpack.c.bf16 %v538_v16, %v526_v43  ;;  %v549_v12 = vsub.f32 %v2643_v17, %v548_v9  ;;  %v578_v57 = vand.u32 4294901760, %v2651_v29  ;;  %v561_v38 = vsub.f32 %v2645_v18, %v560_v25  ;;  %2016 = vmatpush1.bf16.msra.mxu0 %v2800_v21  ;;  %1826 = vmatprep.subr.bf16.mxu1 %v2810_v39  ;;  %v3688_v17 = vld [vmem:[#allocation64_spill] sm:$0xff] }
  0xa1   : > { %v238_v59 = vmax.f32 %v201_v54, %v236_v46  ;;  %v2903_v58 = vpack.c.bf16 %v556_v28, %v544_v23  ;;  %v2906_v10 = vpack.c.bf16 %v560_v25, %v548_v9  ;;  %v567_v44 = vsub.f32 %v2647_v19, %v566_v42  ;;  %2018 = vmatprep.subr.bf16.mxu0 %v2810_v39 }
  0xa2   : > { %v550_v13 = vand.u32 4294901760, %v549_v12  ;;  %v579_v2 = vsub.f32 %v2651_v29, %v578_v57  ;;  %v2912_v43 = vpack.c.bf16 %v578_v57, %v566_v42  ;;  %v562_v54 = vand.u32 4294901760, %v561_v38 }
  0xa3   : > { %243 = vst.msk [vmem:[#allocation2] sm:$0x3] %vm2576_vm0, %v238_v59  ;;  %v572_v16 = vand.u32 4294901760, %v2655_v31  ;;  %v584_v9 = vand.u32 4294901760, %v2659_v37  ;;  %v590_v12 = vand.u32 4294901760, %v2661_v40  ;;  %v568_v46 = vand.u32 4294901760, %v567_v44  ;;  %1828 = vmatpush1.bf16.msra.mxu1 %v2821_v15 }
  0xa4   : > { %v580_v23 = vand.u32 4294901760, %v579_v2  ;;  %v602_v28 = vand.u32 4294901760, %v2667_v51  ;;  %v596_v25 = vand.u32 4294901760, %v2669_v52  ;;  %v2923_v42 = vpack.c.bf16 %v562_v54, %v550_v13  ;;  %2020 = vmatpush1.bf16.msra.mxu0 %v2821_v15  ;;  %1830 = vmatprep.subr.bf16.mxu1 %v2844_v45 }
  0xa5   : > { %v573_v57 = vsub.f32 %v2655_v31, %v572_v16  ;;  %v585_v3 = vsub.f32 %v2659_v37, %v584_v9  ;;  %v2927_v59 = vpack.c.bf16 %v584_v9, %v572_v16  ;;  %v591_v44 = vsub.f32 %v2661_v40, %v590_v12  ;;  %2022 = vmatprep.subr.bf16.mxu0 %v2830_v63 }
  0xa6   : > { %v2931_v38 = vpack.c.bf16 %v580_v23, %v568_v46  ;;  %v603_v2 = vsub.f32 %v2667_v51, %v602_v28  ;;  %v608_v24 = vand.u32 4294901760, %v2673_v4  ;;  %v2938_v16 = vpack.c.bf16 %v602_v28, %v590_v12  ;;  %v3675_v12 = vld [vmem:[#allocation55_spill] sm:$0xff] }
  0xa7   : > { %v574_v13 = vand.u32 4294901760, %v573_v57  ;;  %v586_v54 = vand.u32 4294901760, %v585_v3  ;;  %v597_v9 = vsub.f32 %v2669_v52, %v596_v25  ;;  %v592_v39 = vand.u32 4294901760, %v591_v44  ;;  %v3676_v52 = vld [vmem:[#allocation56_spill] sm:$0xff] }
  0xa8   : > { %v604_v15 = vand.u32 4294901760, %v603_v2  ;;  %v609_v46 = vsub.f32 %v2673_v4, %v608_v24  ;;  %v2942_v23 = vpack.c.bf16 %v608_v24, %v596_v25  ;;  %v614_v51 = vand.u32 4294901760, %v2677_v8  ;;  %v3677_v2 = vld [vmem:[#allocation13_spill] sm:$0xff] }
  0xa9   : > { %v2944_v21 = vpack.c.bf16 %v586_v54, %v574_v13  ;;  %v598_v35 = vand.u32 4294901760, %v597_v9  ;;  %v626_v45 = vand.u32 4294901760, %v2681_v7  ;;  %v620_v28 = vand.u32 4294901760, %v3675_v12 }
  0xaa   : > { %v247_v63 = vld [vmem:[#allocation2] sm:$0x3]  ;;  %v2948_v57 = vpack.c.bf16 %v604_v15, %v592_v39  ;;  %v610_v3 = vand.u32 4294901760, %v609_v46  ;;  %v632_v44 = vand.u32 4294901760, %v3676_v52  ;;  %v3678_v40 = vsub.s32 0, %v3677_v2 }
  0xab   : > { %v3679_v24 = vsub.s32 1, %v3677_v2  ;;  %v615_v13 = vsub.f32 %v2677_v8, %v614_v51  ;;  %v627_v54 = vsub.f32 %v2681_v7, %v626_v45  ;;  %v2960_v37 = vpack.c.bf16 %v626_v45, %v614_v51  ;;  %v3682_v8 = vld [vmem:[#allocation57_spill] sm:$0xff] }
  0xac   : > { %v316_v4 = vrot.slane %v247_v63, %v3678_v40  ;;  %v2958_v9 = vpack.c.bf16 %v610_v3, %v598_v35  ;;  %v621_v39 = vsub.f32 %v3675_v12, %v620_v28  ;;  %v633_v15 = vsub.f32 %v3676_v52, %v632_v44  ;;  %v3685_v3 = vld [vmem:[#allocation59_spill] sm:$0xff] }
  0xad   : > { %v320_v25 = vrot.slane %v247_v63, %v3679_v24  ;;  %v616_v40 = vand.u32 4294901760, %v615_v13  ;;  %v628_v29 = vand.u32 4294901760, %v627_v54  ;;  %v2968_v24 = vpack.c.bf16 %v632_v44, %v620_v28  ;;  %v3686_v54 = vld [vmem:[#allocation61_spill] sm:$0xff]  ;;  %v3687_v28 = vld [vmem:[#allocation62_spill] sm:$0xff] }
  0xae   : > { %v2966_v31 = vand.u32 4294901760, %v316_v4  ;;  %v622_v2 = vand.u32 4294901760, %v621_v39  ;;  %v634_v63 = vand.u32 4294901760, %v633_v15  ;;  %v638_v7 = vand.u32 4294901760, %v3682_v8 }
  0xaf   : > { %v2964_v46 = vand.u32 4294901760, %v320_v25  ;;  %v2977_v45 = vpack.c.bf16 %v628_v29, %v616_v40  ;;  %v650_v52 = vand.u32 4294901760, %v3685_v3  ;;  %v644_v39 = vand.u32 4294901760, %v3686_v54 }
  0xb0   : > { %3681 = vst [vmem:[#allocation104_spill] sm:$0xff] %v2966_v31  ;;  %v2975_v51 = vsub.f32 %v316_v4, %v2966_v31  ;;  %v2980_v12 = vpack.c.bf16 %v634_v63, %v622_v2  ;;  %v639_v13 = vsub.f32 %v3682_v8, %v638_v7  ;;  %v656_v44 = vand.u32 4294901760, %v3687_v28 }
  0xb1   : > { %3680 = vst [vmem:[#allocation13_spill] sm:$0xff] %v2964_v46  ;;  %v2972_v35 = vsub.f32 %v320_v25, %v2964_v46  ;;  %v651_v19 = vsub.f32 %v3685_v3, %v650_v52  ;;  %v2988_v4 = vpack.c.bf16 %v650_v52, %v638_v7  ;;  %v645_v40 = vsub.f32 %v3686_v54, %v644_v39  ;;  %v3689_v52 = vld [vmem:[#allocation65_spill] sm:$0xff] }
  0xb2   : > { %3684 = vst [vmem:[#allocation106_spill] sm:$0xff] %v2975_v51  ;;  %v459_v25 = vand.u32 4294901760, %v2975_v51  ;;  %v640_v29 = vand.u32 4294901760, %v639_v13  ;;  %v657_v2 = vsub.f32 %v3687_v28, %v656_v44  ;;  %v2992_v63 = vpack.c.bf16 %v656_v44, %v644_v39  ;;  %v3690_v13 = vld [vmem:[#allocation66_spill] sm:$0xff] }
  0xb3   : > { %3683 = vst [vmem:[#allocation105_spill] sm:$0xff] %v2972_v35  ;;  %v453_v15 = vand.u32 4294901760, %v2972_v35  ;;  %v652_v18 = vand.u32 4294901760, %v651_v19  ;;  %v662_v1 = vand.u32 4294901760, %v3688_v17  ;;  %v646_v0 = vand.u32 4294901760, %v645_v40 }
  0xb4   : > { %v460_v8 = vsub.f32 %v2975_v51, %v459_v25  ;;  %v658_v3 = vand.u32 4294901760, %v657_v2  ;;  %v674_v7 = vand.u32 4294901760, %v3689_v52  ;;  %v668_v62 = vand.u32 4294901760, %v3690_v13  ;;  %v3693_v2 = vld [vmem:[#allocation71_spill] sm:$0xff] }
  0xb5   : > { %v454_v31 = vsub.f32 %v2972_v35, %v453_v15  ;;  %1195 = vmatprep.mubr.f32.mxu0 %v453_v15  ;;  %v3000_v39 = vpack.c.bf16 %v652_v18, %v640_v29  ;;  %v663_v44 = vsub.f32 %v3688_v17, %v662_v1  ;;  %v3692_v18 = vld [vmem:[#allocation70_spill] sm:$0xff]  ;;  %v698_v51 = vand.u32 4294901760, %v3693_v2 }
  0xb6   : > { %1199 = vmatmul.mubr.f32.vlgmr.msra.gmra.mrb[0].mxu0 %v459_v25  ;;  %v461_v61 = vand.u32 4294901760, %v460_v8  ;;  %v3005_v19 = vpack.c.bf16 %v658_v3, %v646_v0  ;;  %v675_v15 = vsub.f32 %v3689_v52, %v674_v7  ;;  %v3008_v25 = vpack.c.bf16 %v674_v7, %v662_v1  ;;  %v3691_v8 = vld [vmem:[#allocation68_spill] sm:$0xff]  ;;  %v3695_v3 = vld [vmem:[#allocation74_spill] sm:$0xff] }
  0xb7   : > { %v455_v54 = vand.u32 4294901760, %v454_v31  ;;  %2024 = vmatpush1.bf16.msra.mxu0 %v2840_v6  ;;  %1462 = vmatprep.mubr.f32.mxu0 %v2964_v46  ;;  %v669_v40 = vsub.f32 %v3690_v13, %v668_v62  ;;  %v664_v31 = vand.u32 4294901760, %v663_v44  ;;  %v680_v6 = vand.u32 4294901760, %v3691_v8  ;;  %v3696_v44 = vld [vmem:[#allocation75_spill] sm:$0xff] }
  0xb8   : > { %2026 = vmatprep.subr.bf16.mxu0 %v2848_v26  ;;  %v686_v29 = vand.u32 4294901760, %v3692_v18  ;;  %v676_v35 = vand.u32 4294901760, %v675_v15  ;;  %v3694_v26 = vld [vmem:[#allocation73_spill] sm:$0xff]  ;;  %v704_v28 = vand.u32 4294901760, %v3695_v3  ;;  %v710_v13 = vand.u32 4294901760, %v3696_v44 }
  0xb9   : > { %456 = vmatprep.mubr.f32.mxu1 %v455_v54  ;;  %v670_v17 = vand.u32 4294901760, %v669_v40  ;;  %v692_v0 = vand.u32 4294901760, %v3694_v26  ;;  %v681_v1 = vsub.f32 %v3691_v8, %v680_v6  ;;  %v3019_v54 = vpack.c.bf16 %v680_v6, %v668_v62 }
  0xba   : > { %462 = vmatmul.mubr.f32.vlgmr.msra.gmra.mrb[0].mxu1 %v461_v61  ;;  %v687_v7 = vsub.f32 %v3692_v18, %v686_v29  ;;  %v3025_v61 = vpack.c.bf16 %v676_v35, %v664_v31  ;;  %v699_v15 = vsub.f32 %v3693_v2, %v698_v51  ;;  %v3028_v40 = vpack.c.bf16 %v698_v51, %v686_v29 }
  0xbb   : > { %1832 = vmatpush1.bf16.msra.mxu1 %v2853_v41  ;;  %2028 = vmatpush1.bf16.msra.mxu0 %v2864_v27  ;;  %v3697_v41 = vld [vmem:[#allocation77_spill] sm:$0xff]  ;;  %v682_v52 = vand.u32 4294901760, %v681_v1  ;;  %v693_v62 = vsub.f32 %v3694_v26, %v692_v0  ;;  %v705_v6 = vsub.f32 %v3695_v3, %v704_v28 }
  0xbc   : > { %1834 = vmatprep.subr.bf16.mxu1 %v2859_v47  ;;  %2030 = vmatprep.subr.bf16.mxu0 %v2868_v5  ;;  %v722_v27 = vand.u32 4294901760, %v3697_v41  ;;  %v688_v8 = vand.u32 4294901760, %v687_v7  ;;  %v700_v18 = vand.u32 4294901760, %v699_v15  ;;  %v3034_v47 = vpack.c.bf16 %v704_v28, %v692_v0  ;;  %v3698_v15 = vld [vmem:[#allocation79_spill] sm:$0xff] }
  0xbd   : > { %853 = vmatprep.mubr.f32.mxu1 %v2964_v46  ;;  %v711_v5 = vsub.f32 %v3696_v44, %v710_v13  ;;  %v3040_v51 = vpack.c.bf16 %v682_v52, %v670_v17  ;;  %v694_v31 = vand.u32 4294901760, %v693_v62  ;;  %v706_v29 = vand.u32 4294901760, %v705_v6  ;;  %v3701_v17 = vld [vmem:[#allocation81_spill] sm:$0xff]  ;;  %v3702_v62 = vld [vmem:[#allocation83_spill] sm:$0xff] }
  0xbe   : > { %v723_v35 = vsub.f32 %v3697_v41, %v722_v27  ;;  %v3042_v1 = vpack.c.bf16 %v722_v27, %v710_v13  ;;  %v3046_v28 = vpack.c.bf16 %v700_v18, %v688_v8  ;;  %v716_v46 = vand.u32 4294901760, %v3698_v15  ;;  %v3704_v27 = vld [vmem:[#allocation84_spill] sm:$0xff]  ;;  %v3705_v8 = vld [vmem:[#allocation86_spill] sm:$0xff] }
  0xbf   : > { %1836 = vmatpush1.bf16.msra.mxu1 %v2878_v11  ;;  %2032 = vmatpush1.bf16.msra.mxu0 %v2882_v20  ;;  %v712_v0 = vand.u32 4294901760, %v711_v5  ;;  %v3049_v41 = vpack.c.bf16 %v706_v29, %v694_v31  ;;  %v3700_v11 = vld [vmem:[#allocation80_spill] sm:$0xff]  ;;  %v734_v52 = vand.u32 4294901760, %v3701_v17  ;;  %v746_v6 = vand.u32 4294901760, %v3702_v62 }
  0xc0   : > { %1838 = vmatprep.subr.bf16.mxu1 %v2885_v22  ;;  %2034 = vmatprep.subr.bf16.mxu0 %v2891_v33  ;;  %v724_v7 = vand.u32 4294901760, %v723_v35  ;;  %v728_v20 = vand.u32 4294901760, %v3700_v11  ;;  %v717_v22 = vsub.f32 %v3698_v15, %v716_v46  ;;  %v740_v33 = vand.u32 4294901760, %v3704_v27  ;;  %v3707_v29 = vld [vmem:[#allocation88_spill] sm:$0xff] }
  0xc1   : > { %3699 = vst [vmem:[#allocation71_spill] sm:$0xff] %v3049_v41  ;;  %v752_v18 = vand.u32 4294901760, %v3705_v8  ;;  %v735_v31 = vsub.f32 %v3701_v17, %v734_v52  ;;  %v758_v41 = vand.u32 4294901760, %v3707_v29 }
  0xc2   : > { %v3054_v13 = vpack.c.bf16 %v724_v7, %v712_v0  ;;  %v729_v5 = vsub.f32 %v3700_v11, %v728_v20  ;;  %v3062_v35 = vpack.c.bf16 %v728_v20, %v716_v46  ;;  %v718_v0 = vand.u32 4294901760, %v717_v22 }
  0xc3   : > { %1840 = vmatpush1.bf16.msra.mxu1 %v2898_v50  ;;  %2036 = vmatpush1.bf16.msra.mxu0 %v2906_v10  ;;  %v747_v7 = vsub.f32 %v3702_v62, %v746_v6  ;;  %v741_v50 = vsub.f32 %v3704_v27, %v740_v33  ;;  %v736_v15 = vand.u32 4294901760, %v735_v31  ;;  %v753_v46 = vsub.f32 %v3705_v8, %v752_v18 }
  0xc4   : > { %3703 = vst [vmem:[#allocation73_spill] sm:$0xff] %v3054_v13  ;;  %3706 = vst [vmem:[#allocation74_spill] sm:$0xff] %v3062_v35  ;;  %1842 = vmatprep.subr.bf16.mxu1 %v2903_v58  ;;  %2038 = vmatprep.subr.bf16.mxu0 %v2912_v43  ;;  %v3069_v13 = vpack.c.bf16 %v746_v6, %v734_v52  ;;  %v730_v10 = vand.u32 4294901760, %v729_v5  ;;  %v3073_v20 = vpack.c.bf16 %v752_v18, %v740_v33  ;;  %v3709_v58 = vld [vmem:[#allocation89_spill] sm:$0xff]  ;;  %v3710_v6 = vld [vmem:[#allocation91_spill] sm:$0xff] }
  0xc5   : > { %v748_v35 = vand.u32 4294901760, %v747_v7  ;;  %v742_v17 = vand.u32 4294901760, %v741_v50  ;;  %v759_v11 = vsub.f32 %v3707_v29, %v758_v41  ;;  %v770_v44 = vand.u32 4294901760, %v3709_v58  ;;  %v3711_v5 = vld [vmem:[#allocation92_spill] sm:$0xff] }
  0xc6   : > { %3708 = vst [vmem:[#allocation83_spill] sm:$0xff] %v3073_v20  ;;  %v3079_v43 = vpack.c.bf16 %v730_v10, %v718_v0  ;;  %v754_v52 = vand.u32 4294901760, %v753_v46  ;;  %v764_v22 = vand.u32 4294901760, %v3710_v6  ;;  %v776_v31 = vand.u32 4294901760, %v3711_v5 }
  0xc7   : > { %1844 = vmatpush1.bf16.msra.mxu1 %v2923_v42  ;;  %2040 = vmatpush1.bf16.msra.mxu0 %v2927_v59  ;;  %v3085_v33 = vpack.c.bf16 %v748_v35, %v736_v15  ;;  %v760_v18 = vand.u32 4294901760, %v759_v11  ;;  %v771_v7 = vsub.f32 %v3709_v58, %v770_v44  ;;  %v3088_v50 = vpack.c.bf16 %v770_v44, %v758_v41  ;;  %v3716_v15 = vld [vmem:[#allocation94_spill] sm:$0xff]  ;;  %v3717_v11 = vld [vmem:[#allocation96_spill] sm:$0xff] }
  0xc8   : > { %1846 = vmatprep.subr.bf16.mxu1 %v2931_v38  ;;  %2042 = vmatprep.subr.bf16.mxu0 %v2938_v16  ;;  %v3090_v42 = vpack.c.bf16 %v754_v52, %v742_v17  ;;  %v765_v59 = vsub.f32 %v3710_v6, %v764_v22  ;;  %v777_v0 = vsub.f32 %v3711_v5, %v776_v31  ;;  %v782_v38 = vand.u32 4294901760, %v2781_v53  ;;  %v3718_v52 = vld [vmem:[#allocation97_spill] sm:$0xff] }
  0xc9   : > { %3712 = vst [vmem:[#allocation84_spill] sm:$0xff] %v3085_v33  ;;  %3713 = vst [vmem:[#allocation86_spill] sm:$0xff] %v3088_v50  ;;  %v3094_v10 = vpack.c.bf16 %v776_v31, %v764_v22  ;;  %v772_v46 = vand.u32 4294901760, %v771_v7  ;;  %v794_v16 = vand.u32 4294901760, %v2783_v34  ;;  %v788_v35 = vand.u32 4294901760, %v3716_v15 }
  0xca   : > { %3714 = vst [vmem:[#allocation88_spill] sm:$0xff] %v3090_v42  ;;  %v766_v44 = vand.u32 4294901760, %v765_v59  ;;  %v778_v41 = vand.u32 4294901760, %v777_v0  ;;  %v800_v17 = vand.u32 4294901760, %v3717_v11  ;;  %v806_v42 = vand.u32 4294901760, %v3718_v52 }
  0xcb   : > { %3715 = vst [vmem:[#allocation89_spill] sm:$0xff] %v3094_v10  ;;  %1848 = vmatpush1.bf16.msra.mxu1 %v2944_v21  ;;  %2044 = vmatpush1.bf16.msra.mxu0 %v2942_v23  ;;  %v3105_v22 = vpack.c.bf16 %v772_v46, %v760_v18  ;;  %v783_v31 = vsub.f32 %v2781_v53, %v782_v38  ;;  %v3719_v10 = vld [vmem:[#allocation99_spill] sm:$0xff] }
  0xcc   : > { %1850 = vmatprep.subr.bf16.mxu1 %v2948_v57  ;;  %2046 = vmatprep.subr.bf16.mxu0 %v2960_v37  ;;  %v795_v7 = vsub.f32 %v2783_v34, %v794_v16  ;;  %v818_v21 = vand.u32 4294901760, %v3719_v10  ;;  %v3110_v50 = vpack.c.bf16 %v778_v41, %v766_v44  ;;  %v3112_v23 = vpack.c.bf16 %v794_v16, %v782_v38 }
  0xcd   : > { %v789_v59 = vsub.f32 %v3716_v15, %v788_v35  ;;  %v801_v0 = vsub.f32 %v3717_v11, %v800_v17  ;;  %v784_v33 = vand.u32 4294901760, %v783_v31  ;;  %v3116_v20 = vpack.c.bf16 %v800_v17, %v788_v35 }
  0xce   : > { %v796_v57 = vand.u32 4294901760, %v795_v7  ;;  %v807_v37 = vsub.f32 %v3718_v52, %v806_v42  ;;  %v819_v44 = vsub.f32 %v3719_v10, %v818_v21  ;;  %v3122_v38 = vpack.c.bf16 %v818_v21, %v806_v42 }
  0xcf   : > { %1852 = vmatpush1.bf16.msra.mxu1 %v2958_v9  ;;  %2048 = vmatpush1.bf16.msra.mxu0 %v2968_v24  ;;  %v790_v18 = vand.u32 4294901760, %v789_v59  ;;  %v802_v46 = vand.u32 4294901760, %v801_v0  ;;  %v812_v41 = vand.u32 4294901760, %v2804_v14  ;;  %v824_v17 = vand.u32 4294901760, %v2806_v60 }
  0xd0   : > { %1854 = vmatprep.subr.bf16.mxu1 %v2977_v45  ;;  %2050 = vmatprep.subr.bf16.mxu0 %v2988_v4  ;;  %v3126_v16 = vpack.c.bf16 %v796_v57, %v784_v33  ;;  %v808_v35 = vand.u32 4294901760, %v807_v37  ;;  %v820_v24 = vand.u32 4294901760, %v819_v44  ;;  %v830_v31 = vand.u32 4294901760, %v2808_v36  ;;  %v3721_v57 = vld [vmem:[#allocation103_spill] sm:$0xff] }
  0xd1   : > { %v3130_v9 = vpack.c.bf16 %v802_v46, %v790_v18  ;;  %v842_v7 = vand.u32 4294901760, %v2812_v32  ;;  %v813_v42 = vsub.f32 %v2804_v14, %v812_v41  ;;  %v825_v45 = vsub.f32 %v2806_v60, %v824_v17 }
  0xd2   : > { %v3136_v21 = vpack.c.bf16 %v824_v17, %v812_v41  ;;  %v836_v4 = vand.u32 4294901760, %v2814_v30  ;;  %v3141_v33 = vpack.c.bf16 %v820_v24, %v808_v35  ;;  %v831_v59 = vsub.f32 %v2808_v36, %v830_v31 }
  0xd3   : > { %1856 = vmatpush1.bf16.msra.mxu1 %v2980_v12  ;;  %2052 = vmatpush1.bf16.msra.mxu0 %v2992_v63  ;;  %v843_v0 = vsub.f32 %v2812_v32, %v842_v7  ;;  %v848_v37 = vand.u32 4294901760, %v3721_v57  ;;  %v814_v18 = vand.u32 4294901760, %v813_v42  ;;  %v826_v46 = vand.u32 4294901760, %v825_v45  ;;  %v3737_v42 = vld [vmem:[#allocation53_spill] sm:$0xff]  ;;  %v3746_v45 = vld [vmem:[#allocation66_spill] sm:$0xff] }
  0xd4   : > { %3720 = vst [vmem:[#allocation91_spill] sm:$0xff] %v3141_v33  ;;  %1858 = vmatprep.subr.bf16.mxu1 %v3000_v39  ;;  %2054 = vmatprep.subr.bf16.mxu0 %v3008_v25  ;;  %v3148_v44 = vpack.c.bf16 %v842_v7, %v830_v31  ;;  %v837_v12 = vsub.f32 %v2814_v30, %v836_v4  ;;  %v832_v41 = vand.u32 4294901760, %v831_v59  ;;  %v3724_v59 = vld [vmem:[#allocation34_spill] sm:$0xff]  ;;  %v3734_v7 = vld [vmem:[#allocation48_spill] sm:$0xff] }
  0xd5   : > { %v844_v63 = vand.u32 4294901760, %v843_v0  ;;  %v849_v35 = vsub.f32 %v3721_v57, %v848_v37  ;;  %v3152_v17 = vpack.c.bf16 %v848_v37, %v836_v4  ;;  %v1887_v24 = vpack.c.bf16 %v826_v46, %v814_v18  ;;  %v3725_v0 = vld [vmem:[#allocation35_spill] sm:$0xff]  ;;  %v3727_v18 = vld [vmem:[#allocation38_spill] sm:$0xff]  ;;  %v3736_v4 = vld [vmem:[#allocation52_spill] sm:$0xff] }
  0xd6   : > { %v838_v33 = vand.u32 4294901760, %v837_v12  ;;  %v3752_v31 = vld [vmem:[#allocation80_spill] sm:$0xff]  ;;  %v3754_v12 = vld [vmem:[#allocation71_spill] sm:$0xff]  ;;  %v1955_v46 = vpack.c.bf16 %v3721_v57, %v2814_v30 }
  0xd7   : > { %1860 = vmatpush1.bf16.msra.mxu1 %v3005_v19  ;;  %2056 = vmatpush1.bf16.msra.mxu0 %v3019_v54  ;;  %v1889_v39 = vpack.c.bf16 %v844_v63, %v832_v41  ;;  %v850_v25 = vand.u32 4294901760, %v849_v35  ;;  %v3726_v54 = vld [vmem:[#allocation37_spill] sm:$0xff]  ;;  %v3748_v19 = vld [vmem:[#allocation70_spill] sm:$0xff] }
  0xd8   : > { %1862 = vmatprep.subr.bf16.mxu1 %v3025_v61  ;;  %2058 = vmatprep.subr.bf16.mxu0 %v3028_v40  ;;  %v3729_v41 = vld [vmem:[#allocation41_spill] sm:$0xff]  ;;  %v3751_v61 = vld [vmem:[#allocation79_spill] sm:$0xff]  ;;  %v3755_v35 = vld [vmem:[#allocation74_spill] sm:$0xff] }
  0xd9   : > { %v1891_v37 = vpack.c.bf16 %v850_v25, %v838_v33  ;;  %v3739_v33 = vld [vmem:[#allocation56_spill] sm:$0xff]  ;;  %v3745_v40 = vld [vmem:[#allocation65_spill] sm:$0xff]  ;;  %v1953_v25 = vpack.c.bf16 %v2812_v32, %v2808_v36 }
  0xda   : > { %v3750_v63 = vld [vmem:[#allocation77_spill] sm:$0xff] }
  0xdb   : > { %1864 = vmatpush1.bf16.msra.mxu1 %v3040_v51  ;;  %2060 = vmatpush1.bf16.msra.mxu0 %v3034_v47  ;;  %v3756_v51 = vld [vmem:[#allocation73_spill] sm:$0xff]  ;;  %v3760_v47 = vld [vmem:[#allocation88_spill] sm:$0xff] }
  0xdc   : > { %1866 = vmatprep.subr.bf16.mxu1 %v3046_v28  ;;  %2062 = vmatprep.subr.bf16.mxu0 %v3042_v1  ;;  %v3759_v28 = vld [vmem:[#allocation86_spill] sm:$0xff]  ;;  %v3761_v1 = vld [vmem:[#allocation89_spill] sm:$0xff] }
  0xdf   : > { %1868 = vmatpush1.bf16.msra.mxu1 %v3754_v12  ;;  %2064 = vmatpush1.bf16.msra.mxu0 %v3755_v35  ;;  %v3757_v12 = vld [vmem:[#allocation83_spill] sm:$0xff]  ;;  %v3758_v35 = vld [vmem:[#allocation84_spill] sm:$0xff] }
  0xe0   : > { %1870 = vmatprep.subr.bf16.mxu1 %v3756_v51  ;;  %2066 = vmatprep.subr.bf16.mxu0 %v3069_v13  ;;  %v3762_v13 = vld [vmem:[#allocation91_spill] sm:$0xff]  ;;  %v3770_v51 = vld [vmem:[#allocation22_spill] sm:$0xff] }
  0xe3   : > { %1872 = vmatpush1.bf16.msra.mxu1 %v3079_v43  ;;  %2068 = vmatpush1.bf16.msra.mxu0 %v3757_v12  ;;  %v3763_v43 = vld [vmem:[#allocation16_spill] sm:$0xff]  ;;  %v3778_v12 = vld [vmem:[#allocation25_spill] sm:$0xff] }
  0xe4   : > { %1874 = vmatprep.subr.bf16.mxu1 %v3758_v35  ;;  %2070 = vmatprep.subr.bf16.mxu0 %v3759_v28  ;;  %v3776_v28 = vld [vmem:[#allocation105_spill] sm:$0xff] }
  0xe7   : > { %1876 = vmatpush1.bf16.msra.mxu1 %v3760_v47  ;;  %2072 = vmatpush1.bf16.msra.mxu0 %v3761_v1  ;;  %v3772_v47 = vld [vmem:[#allocation21_spill] sm:$0xff]  ;;  %v3777_v1 = vld [vmem:[#allocation26_spill] sm:$0xff] }
  0xe8   : > { %1878 = vmatprep.subr.bf16.mxu1 %v3105_v22  ;;  %2074 = vmatprep.subr.bf16.mxu0 %v3112_v23  ;;  %v3766_v23 = vld [vmem:[#allocation104_spill] sm:$0xff]  ;;  %v3779_v35 = vpack.c.bf16 %v3777_v1, %v3778_v12  ;;  %v3797_v1 = vld [vmem:[#allocation43_spill] sm:$0xff] }
  0xeb   : > { %1880 = vmatpush1.bf16.msra.mxu1 %v3110_v50  ;;  %2076 = vmatpush1.bf16.msra.mxu0 %v3116_v20  ;;  %v3764_v50 = vld [vmem:[#allocation17_spill] sm:$0xff]  ;;  %v3765_v20 = vld [vmem:[#allocation15_spill] sm:$0xff] }
  0xec   : > { %1882 = vmatprep.subr.bf16.mxu1 %v3126_v16  ;;  %2078 = vmatprep.subr.bf16.mxu0 %v3122_v38  ;;  %v1893_v22 = vpack.c.bf16 %v3764_v50, %v3763_v43  ;;  %v3767_v38 = vld [vmem:[#allocation18_spill] sm:$0xff]  ;;  %v3768_v16 = vld [vmem:[#allocation20_spill] sm:$0xff]  ;;  %v3781_v43 = vld [vmem:[#allocation29_spill] sm:$0xff] }
  0xed   : > { %v3782_v50 = vld [vmem:[#allocation28_spill] sm:$0xff] }
  0xef   : > { %1884 = vmatpush1.bf16.msra.mxu1 %v3130_v9  ;;  %2080 = vmatpush1.bf16.msra.mxu0 %v3136_v21  ;;  %v1895_v9 = vpack.c.bf16 %v3768_v16, %v3767_v38  ;;  %v3769_v21 = vld [vmem:[#allocation19_spill] sm:$0xff]  ;;  %v3785_v38 = vld [vmem:[#allocation32_spill] sm:$0xff] }
  0xf0   : > { %1886 = vmatprep.subr.bf16.mxu1 %v3762_v13  ;;  %2082 = vmatprep.subr.bf16.mxu0 %v3148_v44  ;;  %v3771_v44 = vld [vmem:[#allocation23_spill] sm:$0xff]  ;;  %v3780_v13 = vld [vmem:[#allocation30_spill] sm:$0xff] }
  0xf1   : > { %v3786_v16 = vld [vmem:[#allocation31_spill] sm:$0xff] }
  0xf3   : > { %1888 = vmatpush1.bf16.msra.mxu1 %v1887_v24  ;;  %2084 = vmatpush1.bf16.msra.mxu0 %v3152_v17  ;;  %v1897_v24 = vpack.c.bf16 %v3771_v44, %v3770_v51  ;;  %v3773_v17 = vld [vmem:[#allocation13_spill] sm:$0xff]  ;;  %v3789_v51 = vpack.c.bf16 %v3725_v0, %v3724_v59  ;;  %v3790_v44 = vld [vmem:[#allocation40_spill] sm:$0xff]  ;;  %v3800_v0 = vld [vmem:[#allocation47_spill] sm:$0xff] }
  0xf4   : > { %1890 = vmatprep.subr.bf16.mxu1 %v1889_v39  ;;  %2086 = vmatprep.subr.bf16.mxu0 %v3765_v20  ;;  %v3774_v39 = vld [vmem:[#allocation24_spill] sm:$0xff]  ;;  %v3784_v20 = vld [vmem:[#allocation33_spill] sm:$0xff] }
  0xf5   : > { %v3799_v59 = vld [vmem:[#allocation49_spill] sm:$0xff] }
  0xf6   : > { %1464 = vmatmul.mubr.f32.vlgmr.msra.gmra.mrb[0].mxu0 %v3766_v23 }
  0xf7   : > { %1892 = vmatpush1.bf16.msra.mxu1 %v1891_v37  ;;  %2088 = vmatpush1.bf16.msra.mxu0 %v3769_v21  ;;  %v3775_v37 = vld [vmem:[#allocation27_spill] sm:$0xff]  ;;  %v3788_v21 = vld [vmem:[#allocation36_spill] sm:$0xff] }
  0xf8   : > { %1894 = vmatprep.subr.bf16.mxu1 %v1893_v22  ;;  %2090 = vmatprep.subr.bf16.mxu0 %v3772_v47  ;;  %v3783_v22 = vpack.c.bf16 %v3781_v43, %v3782_v50  ;;  %v3792_v47 = vld [vmem:[#allocation42_spill] sm:$0xff]  ;;  %v3806_v43 = vpack.c.bf16 %v3737_v42, %v3736_v4  ;;  %v3818_v42 = vld [vmem:[#allocation67_spill] sm:$0xff]  ;;  %v3819_v4 = vpack.c.bf16 %v3745_v40, %v3744_v49 }
  0xf9   : > { %1599 = vmatprep.mubr.f32.mxu0 %v3773_v17  ;;  %v3793_v17 = vld [vmem:[#allocation39_spill] sm:$0xff]  ;;  %v3807_v50 = vld [vmem:[#allocation58_spill] sm:$0xff] }
  0xfa   : > { %855 = vmatmul.mubr.f32.vlgmr.msra.gmra.mrb[0].mxu1 %v3766_v23  ;;  %v3826_v49 = vld [vmem:[#allocation78_spill] sm:$0xff]  ;;  %v3827_v40 = vld [vmem:[#allocation75_spill] sm:$0xff] }
  0xfb   : > { %1896 = vmatpush1.bf16.msra.mxu1 %v1895_v9  ;;  %2092 = vmatpush1.bf16.msra.mxu0 %v3774_v39  ;;  %v3787_v9 = vpack.c.bf16 %v3785_v38, %v3786_v16  ;;  %v3794_v39 = vpack.c.bf16 %v3729_v41, %v3793_v17  ;;  %v3805_v41 = vld [vmem:[#allocation54_spill] sm:$0xff]  ;;  %v3810_v38 = vld [vmem:[#allocation60_spill] sm:$0xff]  ;;  %v3811_v16 = vld [vmem:[#allocation59_spill] sm:$0xff]  ;;  %v3823_v17 = vpack.c.bf16 %v3693_v2, %v3748_v19 }
  0xfc   : > { %1898 = vmatprep.subr.bf16.mxu1 %v1897_v24  ;;  %2094 = vmatprep.subr.bf16.mxu0 %v3775_v37  ;;  %v3791_v24 = vpack.c.bf16 %v3727_v18, %v3726_v54  ;;  %v3795_v37 = vld [vmem:[#allocation46_spill] sm:$0xff]  ;;  %v3803_v54 = vld [vmem:[#allocation51_spill] sm:$0xff]  ;;  %v3804_v18 = vpack.c.bf16 %v3735_v55, %v3734_v7  ;;  %v3831_v2 = vld [vmem:[#allocation85_spill] sm:$0xff]  ;;  %v3832_v19 = vpack.c.bf16 %v3702_v62, %v3753_v48 }
  0xfd   : > { %1055 = vmatprep.mubr.f32.mxu1 %v3776_v28  ;;  %v3796_v28 = vld [vmem:[#allocation44_spill] sm:$0xff]  ;;  %v3814_v55 = vld [vmem:[#allocation63_spill] sm:$0xff]  ;;  %v3815_v7 = vld [vmem:[#allocation62_spill] sm:$0xff]  ;;  %v3840_v62 = vpack.c.bf16 %v2783_v34, %v2781_v53 }
  0xfe   : > { %v3798_v12 = vpack.c.bf16 %v3796_v28, %v3797_v1  ;;  %v3828_v28 = vpack.c.bf16 %v3750_v63, %v3827_v40  ;;  %v3835_v63 = vld [vmem:[#allocation90_spill] sm:$0xff]  ;;  %v3836_v1 = vpack.c.bf16 %v3709_v58, %v3707_v29  ;;  %v3839_v48 = vld [vmem:[#allocation95_spill] sm:$0xff]  ;;  %v3843_v29 = vld [vmem:[#allocation100_spill] sm:$0xff]  ;;  %v3844_v58 = vpack.c.bf16 %v3719_v10, %v3718_v52 }
  0xff   : > { %1900 = vmatpush1.bf16.msra.mxu1 %v3779_v35  ;;  %2096 = vmatpush1.bf16.msra.mxu0 %v3780_v13  ;;  %v3801_v35 = vld [vmem:[#allocation45_spill] sm:$0xff]  ;;  %v3847_v53 = vld [vmem:[#allocation102_spill] sm:$0xff] }
 0x100   : > { %1902 = vmatprep.subr.bf16.mxu1 %v3783_v22  ;;  %2098 = vmatprep.subr.bf16.mxu0 %v3784_v20  ;;  %v3802_v13 = vpack.c.bf16 %v3800_v0, %v3801_v35  ;;  %v3808_v22 = vld [vmem:[#allocation55_spill] sm:$0xff]  ;;  %v3848_v34 = vld [vmem:[#allocation106_spill] sm:$0xff] }
 0x101   : > { %v3809_v20 = vpack.c.bf16 %v3739_v33, %v3808_v22  ;;  %v3820_v33 = vld [vmem:[#allocation69_spill] sm:$0xff]  ;;  %v3849_v0 = vld [vmem:[#allocation14_spill] sm:$0xff] }
 0x103   : > { %1904 = vmatpush1.bf16.msra.mxu1 %v3787_v9  ;;  %2100 = vmatpush1.bf16.msra.mxu0 %v3788_v21  ;;  %v3812_v9 = vld [vmem:[#allocation57_spill] sm:$0xff] }
 0x104   : > { %1906 = vmatprep.subr.bf16.mxu1 %v3789_v51  ;;  %2102 = vmatprep.subr.bf16.mxu0 %v3790_v44  ;;  %v3813_v21 = vpack.c.bf16 %v3811_v16, %v3812_v9  ;;  %v3816_v51 = vld [vmem:[#allocation61_spill] sm:$0xff] }
 0x105   : > { %v3817_v44 = vpack.c.bf16 %v3815_v7, %v3816_v51 }
 0x107   : > { %1908 = vmatpush1.bf16.msra.mxu1 %v3791_v24  ;;  %2104 = vmatpush1.bf16.msra.mxu0 %v3792_v47  ;;  %v3821_v24 = vpack.c.bf16 %v3747_v56, %v3746_v45  ;;  %v3822_v47 = vld [vmem:[#allocation72_spill] sm:$0xff]  ;;  %v3829_v56 = vld [vmem:[#allocation82_spill] sm:$0xff]  ;;  %v3830_v45 = vpack.c.bf16 %v3752_v31, %v3751_v61  ;;  %v3837_v31 = vld [vmem:[#allocation93_spill] sm:$0xff]  ;;  %v3838_v61 = vpack.c.bf16 %v3711_v5, %v3710_v6 }
 0x108   : > { %1910 = vmatprep.subr.bf16.mxu1 %v3794_v39  ;;  %2106 = vmatprep.subr.bf16.mxu0 %v3795_v37  ;;  %v3824_v39 = vld [vmem:[#allocation76_spill] sm:$0xff]  ;;  %v3825_v37 = vpack.c.bf16 %v3695_v3, %v3694_v26  ;;  %v3833_v26 = vld [vmem:[#allocation87_spill] sm:$0xff]  ;;  %v3834_v3 = vpack.c.bf16 %v3705_v8, %v3704_v27  ;;  %v3841_v27 = vld [vmem:[#allocation98_spill] sm:$0xff]  ;;  %v3842_v8 = vpack.c.bf16 %v3717_v11, %v3716_v15 }
 0x109   : > { %v3845_v6 = vld [vmem:[#allocation101_spill] sm:$0xff]  ;;  %v3846_v5 = vpack.c.bf16 %v2806_v60, %v2804_v14 }
 0x10b   : > { %1912 = vmatpush1.bf16.msra.mxu1 %v3798_v12  ;;  %2108 = vmatpush1.bf16.msra.mxu0 %v3799_v59 }
 0x10c   : > { %1914 = vmatprep.subr.bf16.mxu1 %v3802_v13  ;;  %2110 = vmatprep.subr.bf16.mxu0 %v3803_v54 }
 0x10f   : > { %1916 = vmatpush1.bf16.msra.mxu1 %v3804_v18  ;;  %2112 = vmatpush1.bf16.msra.mxu0 %v3805_v41 }
 0x110   : > { %1918 = vmatprep.subr.bf16.mxu1 %v3806_v43  ;;  %2114 = vmatprep.subr.bf16.mxu0 %v3807_v50 }
 0x113   : > { %1920 = vmatpush1.bf16.msra.mxu1 %v3809_v20  ;;  %2116 = vmatpush1.bf16.msra.mxu0 %v3810_v38 }
 0x114   : > { %1922 = vmatprep.subr.bf16.mxu1 %v3813_v21  ;;  %2118 = vmatprep.subr.bf16.mxu0 %v3814_v55 }
 0x117   : > { %1924 = vmatpush1.bf16.msra.mxu1 %v3817_v44  ;;  %2120 = vmatpush1.bf16.msra.mxu0 %v3818_v42 }
 0x118   : > { %1926 = vmatprep.subr.bf16.mxu1 %v3819_v4  ;;  %2122 = vmatprep.subr.bf16.mxu0 %v3820_v33 }
 0x11b   : > { %1928 = vmatpush1.bf16.msra.mxu1 %v3821_v24  ;;  %2124 = vmatpush1.bf16.msra.mxu0 %v3822_v47 }
 0x11c   : > { %1930 = vmatprep.subr.bf16.mxu1 %v3823_v17  ;;  %2126 = vmatprep.subr.bf16.mxu0 %v3824_v39 }
 0x11f   : > { %1932 = vmatpush1.bf16.msra.mxu1 %v3825_v37  ;;  %2128 = vmatpush1.bf16.msra.mxu0 %v3826_v49 }
 0x120   : > { %1934 = vmatprep.subr.bf16.mxu1 %v3828_v28  ;;  %2130 = vmatprep.subr.bf16.mxu0 %v3829_v56 }
 0x123   : > { %1936 = vmatpush1.bf16.msra.mxu1 %v3830_v45  ;;  %2132 = vmatpush1.bf16.msra.mxu0 %v3831_v2 }
 0x124   : > { %1938 = vmatprep.subr.bf16.mxu1 %v3832_v19  ;;  %2134 = vmatprep.subr.bf16.mxu0 %v3833_v26 }
 0x127   : > { %1940 = vmatpush1.bf16.msra.mxu1 %v3834_v3  ;;  %2136 = vmatpush1.bf16.msra.mxu0 %v3835_v63 }
 0x128   : > { %1942 = vmatprep.subr.bf16.mxu1 %v3836_v1  ;;  %2138 = vmatprep.subr.bf16.mxu0 %v3837_v31 }
 0x12b   : > { %1944 = vmatpush1.bf16.msra.mxu1 %v3838_v61  ;;  %2140 = vmatpush1.bf16.msra.mxu0 %v3839_v48 }
 0x12c   : > { %1946 = vmatprep.subr.bf16.mxu1 %v3840_v62  ;;  %2142 = vmatprep.subr.bf16.mxu0 %v3841_v27 }
 0x12f   : > { %1948 = vmatpush1.bf16.msra.mxu1 %v3842_v8  ;;  %2144 = vmatpush1.bf16.msra.mxu0 %v3843_v29 }
 0x130   : > { %1950 = vmatprep.subr.bf16.mxu1 %v3844_v58  ;;  %2146 = vmatprep.subr.bf16.mxu0 %v3845_v6 }
 0x133   : > { %1952 = vmatpush1.bf16.msra.mxu1 %v3846_v5  ;;  %2148 = vmatpush1.bf16.msra.mxu0 %v3847_v53 }
 0x134   : > { %1954 = vmatprep.subr.bf16.mxu1 %v1953_v25 }
 0x136   : > { %1601 = vmatmul.mubr.f32.vlgmr.msra.gmra.mrb[0].mxu0 %v3766_v23 }
 0x137   : > { %1956 = vmatpush1.bf16.msra.mxu1 %v1955_v46 }
 0x13a   : > { %1058 = vmatmul.mubr.f32.vlgmr.msra.gmra.mrb[0].mxu1 %v3848_v34 }
 0x209   : > { %v1602_v10 = vpop.f32.mrb[0].mxu0 }
 0x20a   : > { %v1604_v15 = vpop.f32.mrb[1].mxu0 }
 0x20d   : > { %v1059_v11 = vpop.f32.mrb[0].mxu1 }
 0x20e   : > { %v2149_v14 = vadd.f32 %v1602_v10, %v1059_v11  ;;  %v1061_v60 = vpop.f32.mrb[1].mxu1 }
 0x20f   : > { %v2150_v52 = vadd.f32 %v1604_v15, %v1061_v60 }
 0x210   : > { %v1756_v12 = vmul.f32 -1.442695, %v2149_v14 }
 0x211   : > { %v1757_v59 = vmul.f32 -1.442695, %v2150_v52 }
 0x212   : > { %2237 = vpow2.f32 %v1756_v12 }
 0x213   : > { %2239 = vpow2.f32 %v1757_v59 }
 0x21c   : > { %v2238_v36 = vpop.eup %2237 }
 0x21d   : > { %v2240_v32 = vpop.eup %2239  ;;  %v1613_v25 = vadd.f32 1.0, %v2238_v36 }
 0x21e   : > { %v1614_v30 = vadd.f32 1.0, %v2240_v32 }
 0x21f   : > { %2241 = vrcp.f32 %v1613_v25 }
 0x220   : > { %2243 = vrcp.f32 %v1614_v30 }
 0x229   : > { %v2242_v57 = vpop.eup %2241 }
 0x22a   : > { %v2244_v46 = vpop.eup %2243 }
 0x22b   : > { %v1621_v23 = vcombine.low %v2242_v57, %v2244_v46 }
 0x22d   : > { %v1628_v35 = vrot.slane %v1621_v23, %v3849_v0 }
 0x22f   : > { %v1635_v13 = vrot.slane %v1628_v35, %v3849_v0 }
 0x231   : > { %1637 = vst.msk [vmem:[%s190_s21] sm:$0x3] %vm2576_vm0, %v1635_v13 }
 0x232   : > { %2316 = shalt.err (!%p2313_p5)
}
 0x233   : > { %s2317_s29 = scalar_lea.hbm %s3379_s7, 32  ;;  %s2321_s18 = scalar_lea.hbm %s3432_s2, 64 }
 0x234   : > { %p2318_p9 = scmp.ne.s32.totalorder %s3379_s7, %s2317_s29  ;;  %p2322_p7 = scmp.lt.u32.totalorder %s3379_s7, %s3432_s2 }
 0x235   : > { %p2323_p3 = scmp.lt.u32.totalorder %s2321_s18, %s2317_s29  ;;  %p2325_p4 = scmp.lt.u32.totalorder %s2317_s29, %s3379_s7 }
 0x236   : > { %p2319_p1 = pnand %p2318_p9, %p2509_p10 }
 0x237   : > { %p2324_p13 = por %p2323_p3, %p2322_p7 }
 0x238   : > { %p2320_p2 = pneg %p2319_p1 }
 0x239   : > { %p2326_p6 = por %p2325_p4, %p2324_p13 }
 0x23b   : > { %p2327_p8 = pnand %p2326_p6, %p2320_p2 }
 0x23d   : > { %2330 = shalt.err (!%p2327_p8)
}
 0x23e   : > { %2165 = dma.vmem_to_hbm [thread:$0]  (%p2509_p10), %s3381_s4, 32, %s3379_s7, %s1639_s12  }
 0x23f PF: > { %s1665_s16 = sand.u32 1, %s2369_s9   ;;  %p3851_p12 = scmp.ne.s32.totalorder %s3571_s20, 0 }
 0x240   : > { %p3852_p11 = scmp.ge.s32.totalorder %s2389_s14, 2  ;;  %s1666_s17 = scalar_lea.sflag [#allocation5], %s1665_s16 }
 0x242   : > { %p2176_p0 = pnand %p3852_p11, %p3851_p12 }
 0x244   : > { %2364 = dma.done.wait (!%p2176_p0), %s1666_s17, 32  }
 0x245   : > { %2366 = vsyncadd (!%p2176_p0), %s1666_s17, 4294967264  ;;  %s19_s14 = sadd.s32 1, %s2389_s14   ;;  %s3853_s9 = smov %s2373_s10 }
 0x246   : > { %p16_p5 = scmp.ge.s32.totalorder %s19_s14, 4   ;;  %s3854_s10 = smov %s2377_s11 }
 0x247   : > { %s3855_s11 = smov %s2518_s28  ;;  %s3856_s12 = smov %s2385_s13 }
 0x248   : > { %s3857_s13 = smov %s3859_s25  ;;  %18 = sbr.rel (!%p16_p5) target bundleno = 7 (0x7), region = 85 }
 0x24f   :  { %1671 = vsyncpa [#allocation4], 1 }
 0x250   :  { %1673 = vsyncpa [#allocation4 + $0x1], 1 }
 0x251   :  { %1674 = vsyncpa [#allocation7], 1 }
 0x252   :  { %1675 = vsyncpa [#allocation5], 1 }
 0x253   :  { %1677 = vsyncpa [#allocation5 + $0x1], 1 }

// kernel: tpu_custom_call.1
= control target key start
LH: loop header
LB: loop body
LE: loop exit
PB: predicated region body
PF: predicated region fallthrough
CT: control target
= control target key end

     0   :  { %7 = vsyncpa [#allocation4], 0  ;;  %s3430_s0 = inlined_call_operand.hbm [shape: f32[2,4,256], index: 0, kind: input, shape index: {}]   ;;  %s3431_s1 = inlined_call_operand.hbm [shape: f32[256,256], index: 1, kind: input, shape index: {}]   ;;  %s3432_s2 = inlined_call_operand.hbm [shape: f32[2,1,256], index: 2, kind: output, shape index: {}]  }
   0x1   :  { %9 = vsyncpa [#allocation4 + $0x1], 0 }
   0x2   :  { %10 = vsyncpa [#allocation7], 0 }
   0x3   :  { %11 = vsyncpa [#allocation5], 0 }
   0x4   :  { %13 = vsyncpa [#allocation5 + $0x1], 0  ;;  %s2413_s9 = smov 0   ;;  %s2415_s10 = smov 0  }
   0x5   :  { %s2417_s11 = smov 0   ;;  %s2419_s12 = smov 0  }
   0x6   :  { %s2421_s13 = smov 0   ;;  %s2423_s14 = smov 0  }
   0x7 LB: > { %s1744_s15 = sadd.s32 4294967295, %s2389_s14   ;;  %s1745_s16 = sadd.s32 4294967294, %s2389_s14   ;;  %s2389_s14 = sphi %s2423_s14, %s19_s14   ;;  %s2385_s13 = sphi %s2421_s13, %s3857_s13   ;;  %s2381_s12 = sphi %s2419_s12, %s3856_s12   ;;  %s2377_s11 = sphi %s2417_s11, %s3855_s11   ;;  %s2373_s10 = sphi %s2415_s10, %s3854_s10   ;;  %s2369_s9 = sphi %s2413_s9, %s3853_s9  }
   0x8   : > { %p53_p0 = scmp.ne.s32.totalorder %s2373_s10, %s2369_s9  ;;  %p2447_p1 = scmp.eq.s32.totalorder %s1744_s15, 0 }
   0x9   : > { %p2451_p2 = scmp.eq.s32.totalorder %s1744_s15, 1  ;;  %p104_p3 = scmp.eq.s32.totalorder %s1745_s16, 1 }
   0xa   : > { %s3568_s17 = scalar_select %p2447_p1, 1, 0 }
   0xb   : > { %s3569_s18 = scalar_select %p2451_p2, 1, 0 }
   0xc   : > { %p2457_p4 = por %p2447_p1, %p53_p0  ;;  %p1746_p5 = scmp.ge.s32.totalorder %s2389_s14, 1 }
   0xd   : > { %p2462_p6 = por %p104_p3, %p53_p0  ;;  %p111_p7 = scmp.lt.s32.totalorder %s2389_s14, 3 }
   0xe   : > { %s3570_s19 = scalar_select %p2457_p4, 1, 0 }
   0xf   : > { %s3571_s20 = scalar_select %p2462_p6, 1, 0 }
  0x10   : > { %p2467_p8 = pnand %p1746_p5, %p111_p7  ;;  %s2391_s22 = smov [#allocation6]  }
  0x11   : > { %s123_s23 = sshll.u32 %s2391_s22, 4  ;;  %s31_s25 = sadd.s32 1, %s2385_s13  ;;  %s124_s23 = int_to_ptr.vmem [resolvable:$true] %s123_s23 }
  0x12   : > { %s3572_s21 = scalar_select %p2467_p8, 1, 0 }
  0x13   : > { %p2167_p9 = pneg %p2467_p8  ;;  %s2245_s28 = scalar_lea.hbm %s3431_s1, 8192 }
  0x14   : > { %p2246_p12 = scmp.ne.s32.totalorder %s3431_s1, %s2245_s28  ;;  %p2252_p5 = scmp.lt.u32.totalorder %s2245_s28, %s3431_s1 }
  0x15   : > { %p2476_p11 = pnand %p2167_p9, %p2447_p1 }
  0x17   : > { %p2247_p13 = pneg %p2476_p11 }
  0x19   : > { %p2248_p0 = pnand %p2247_p13, %p2246_p12 }
  0x1b   : > { %p2249_p3 = pneg %p2248_p0 }
  0x1d   : > { %p2254_p7 = pnand %p2252_p5, %p2249_p3 }
  0x1f   : > { %2257 = shalt.err (!%p2254_p7)
}
  0x20   : > { %s2258_s5 = scalar_lea.vmem %s124_s23, 8192  ;;  %p2266_p1 = scmp.lt.s32.totalorder %s124_s23, %s124_s23 }
  0x21   : > { %p2259_p9 = scmp.ne.s32.totalorder %s124_s23, %s2258_s5  ;;  %p2267_p4 = scmp.lt.s32.totalorder %s2258_s5, %s2258_s5 }
  0x23   : > { %p2261_p10 = pnand %p2259_p9, %p2247_p13  ;;  %p2268_p8 = por %p2267_p4, %p2266_p1 }
  0x25   : > { %p2262_p6 = pneg %p2261_p10 }
  0x27   : > { %p2269_p2 = pnand %p2268_p8, %p2262_p6 }
  0x29   : > { %2272 = shalt.err (!%p2269_p2)
}
  0x2a   : > { %s2392_s6 = smov 256   ;;  %s2393_s7 = smov 16  }
  0x2b   : > { %2170 = dma.hbm_to_vmem [thread:$0]  (!%p2476_p11), %s3431_s1, 8192, %s124_s23, [#allocation7], %s2392_s6, %s2392_s6, %s2393_s7  }
  0x2c   : > { %p33_p1 = scmp.ge.s32.totalorder %s31_s25, 2  ;;  %s40_s16 = sadd.s32 1, %s2377_s11 }
  0x2d   : > { %p47_p2 = scmp.ne.s32.totalorder %s2377_s11, %s2373_s10  ;;  %p48_p4 = scmp.eq.s32.totalorder %s2389_s14, 0 }
  0x2e   : > { %s3859_s25 = smov (%p33_p1, %s31_s25), 0  ;;  %p3575_p8 = scmp.ne.s32.totalorder %s3569_s18, 0 }
  0x2f   : > { %p2503_p6 = por %p48_p4, %p47_p2  ;;  %s35_s24 = ssub.s32 %s2385_s13, %s3859_s25 }
  0x30   : > { %p2509_p10 = por %p3575_p8, %p47_p2  ;;  %p2180_p12 = scmp.lt.s32.totalorder %s2389_s14, 2 }
  0x31   : > { %p38_p11 = scmp.eq.s32.totalorder %s35_s24, 0  ;;  %s137_s23 = sand.u32 1, %s2377_s11  }
  0x32   : > { %s1749_s27 = sshll.u32 %s137_s23, 3  ;;  %s1763_s29 = sshll.u32 %s2385_s13, 7 }
  0x33   : > { %s2518_s28 = scalar_select %p38_p11, %s2377_s11, %s40_s16  }
  0x34   : > { %s2524_s4 = scalar_lea.hbm %s3430_s0, %s1763_s29  ;;  %s141_s18 = scalar_lea.vmem [#allocation3], %s1749_s27 }
  0x35   : > { %s151_s5 = sshll.u32 %s141_s18, 4  ;;  %p2530_p13 = pnand %p2180_p12, %p2503_p6  ;;  %s2526_s5 = int_to_ptr.vmem [resolvable:$true] %s151_s5 }
  0x36   : > { %s138_s7 = scalar_lea.sflag [#allocation4], %s137_s23  ;;  %s2273_s8 = scalar_lea.hbm %s2524_s4, 128 }
  0x37   : > { %p2274_p0 = scmp.ne.s32.totalorder %s2524_s4, %s2273_s8  ;;  %p2275_p3 = pneg %p2530_p13 }
  0x38   : > { %s2278_s24 = scalar_lea.hbm %s3430_s0, 256  ;;  %p2279_p9 = scmp.lt.u32.totalorder %s2524_s4, %s3430_s0 }
  0x39   : > { %p2276_p5 = pnand %p2275_p3, %p2274_p0  ;;  %p2280_p1 = scmp.lt.u32.totalorder %s2278_s24, %s2273_s8 }
  0x3a   : > { %p2282_p4 = scmp.lt.u32.totalorder %s2273_s8, %s2524_s4 }
  0x3b   : > { %p2277_p7 = pneg %p2276_p5  ;;  %p2281_p2 = por %p2280_p1, %p2279_p9 }
  0x3d   : > { %p2283_p6 = por %p2282_p4, %p2281_p2 }
  0x3f   : > { %p2284_p8 = pnand %p2283_p6, %p2277_p7 }
  0x41   : > { %2287 = shalt.err (!%p2284_p8)
}
  0x42   : > { %s2288_s23 = scalar_lea.vmem %s2526_s5, 128  ;;  %s2394_s29 = smov [#allocation3]  }
  0x43   : > { %p2289_p12 = scmp.ne.s32.totalorder %s2526_s5, %s2288_s23  ;;  %s2293_s30 = sshll.u32 %s2394_s29, 4  ;;  %s2294_s30 = int_to_ptr.vmem [resolvable:$false] %s2293_s30 }
  0x44   : > { %s2295_s3 = scalar_lea.vmem %s2294_s30, 256  ;;  %p2296_p5 = scmp.lt.s32.totalorder %s2526_s5, %s2294_s30 }
  0x45   : > { %p2291_p11 = pnand %p2289_p12, %p2275_p3  ;;  %p2297_p9 = scmp.lt.s32.totalorder %s2295_s3, %s2288_s23 }
  0x47   : > { %p2292_p0 = pneg %p2291_p11  ;;  %p2298_p1 = por %p2297_p9, %p2296_p5 }
  0x49   : > { %p2299_p2 = pnand %p2298_p1, %p2292_p0 }
  0x4b   : > { %2302 = shalt.err (!%p2299_p2)
}
  0x4c   : > { %2174 = dma.hbm_to_vmem [thread:$0]  (!%p2530_p13), %s2524_s4, 128, %s2526_s5, %s138_s7  }
  0x4d   : > { %p3578_p7 = scmp.ne.s32.totalorder %s3572_s21, 0 }
  0x4f   : > { %160 = sbr.rel (%p3578_p7) target bundleno = 575 (0x23f), region = 28 }
  0x56   : > { %s2562_s18 = sand.u32 1, %s2373_s10   ;;  %p3579_p3 = scmp.ne.s32.totalorder %s3570_s19, 0 }
  0x57   : > { %s1753_s8 = sshll.u32 %s2562_s18, 3  ;;  %s163_s15 = scalar_lea.sflag [#allocation4], %s2562_s18 }
  0x58   : > { %s2566_s16 = scalar_lea.vmem [#allocation3], %s1753_s8 }
  0x59   : > { %2356 = dma.done.wait (%p3579_p3), %s163_s15, 128  }
  0x5a   : > { %2358 = vsyncadd (%p3579_p3), %s163_s15, 4294967168  ;;  %p3580_p13 = scmp.ne.s32.totalorder %s3568_s17, 0 }
  0x5c   : > { %2360 = dma.done.wait (%p3580_p13), [#allocation7], 8192  }
  0x5d   : > { %2362 = vsyncadd (%p3580_p13), [#allocation7], 4294959104  ;;  %v195_v0 = vlaneseq  ;;  %v2395_v1 = vmov 1966171168   ;;  %v3581_v3 = vmov 0  ;;  %v2396_v4 = vmov -inf  }
  0x5e   : > { %v224_v2 = vunpack.c.l.s4 %v2395_v1  ;;  %v249_v7 = vld [vmem:[#allocation6 + $0x8] sm:$0xff]  ;;  %v251_v8 = vld [vmem:[#allocation6 + $0x18] sm:$0xff]  ;;  %v248_v9 = vld [vmem:[#allocation6] sm:$0xff]  ;;  %vm205_vm1 = vcmask 1043456   ;;  %s1755_s17 = sshll.u32 %s2562_s18, 1  ;;  %s1764_s19 = sshll.u32 %s2381_s12, 5 }
  0x5f   : > { %vm2576_vm0 = vcmp.lt.s32.totalorder %v195_v0, 256  ;;  %v2582_v6 = vshrl.u32 %v195_v0, 7  ;;  %v323_v12 = vand.u32 4294901760, %v249_v7  ;;  %v327_v13 = vand.u32 4294901760, %v251_v8  ;;  %v250_v14 = vld [vmem:[#allocation6 + $0x10] sm:$0xff]  ;;  %v253_v16 = vld [vmem:[#allocation6 + $0x28] sm:$0xff]  ;;  %s3379_s7 = scalar_lea.hbm %s3432_s2, %s1764_s19 }
  0x60   : > { %v3582_v3 = vsel %vm2576_vm0, 4294967295, %v3581_v3  ;;  %199 = vst.msk [vmem:[#allocation2] sm:$0x3] %vm2576_vm0, %v2396_v4  ;;  %v225_v5 = vunpack.c.0.s8 %v224_v2  ;;  %v325_v15 = vand.u32 4294901760, %v248_v9  ;;  %v255_v17 = vld [vmem:[#allocation6 + $0x38] sm:$0xff]  ;;  %v329_v18 = vand.u32 4294901760, %v250_v14 }
  0x61   : > { %3583 = vst [vmem:[#allocation12_spill] sm:$0xff] %v3582_v3  ;;  %3584 = vst [vmem:[#allocation13_spill] sm:$0xff] %v2582_v6  ;;  %v331_v19 = vand.u32 4294901760, %v253_v16  ;;  %v335_v20 = vand.u32 4294901760, %v255_v17  ;;  %v252_v21 = vld [vmem:[#allocation6 + $0x20] sm:$0xff]  ;;  %v254_v22 = vld [vmem:[#allocation6 + $0x30] sm:$0xff]  ;;  %v2589_v25 = vpack.c.bf16 %v327_v13, %v323_v12  ;;  %v2591_v26 = vsub.f32 %v249_v7, %v323_v12 }
  0x62   : > { %v257_v23 = vld [vmem:[#allocation6 + $0x48] sm:$0xff]  ;;  %v2587_v24 = vsub.s32 %v225_v5, %v2582_v6  ;;  %v2593_v27 = vsub.f32 %v251_v8, %v327_v13  ;;  %v2595_v28 = vsub.f32 %v248_v9, %v325_v15  ;;  %v259_v29 = vld [vmem:[#allocation6 + $0x58] sm:$0xff]  ;;  %v256_v30 = vld [vmem:[#allocation6 + $0x40] sm:$0xff]  ;;  %v2597_v32 = vpack.c.bf16 %v329_v18, %v325_v15  ;;  %s190_s21 = scalar_lea.vmem [#allocation8], %s1755_s17  ;;  %s1639_s12 = scalar_lea.sflag [#allocation5], %s2562_s18 }
  0x63   : > { %3586 = vst [vmem:[#allocation15_spill] sm:$0xff] %v2589_v25  ;;  %3587 = vst [vmem:[#allocation16_spill] sm:$0xff] %v2591_v26  ;;  %v258_v31 = vld [vmem:[#allocation6 + $0x50] sm:$0xff]  ;;  %v2599_v33 = vsub.f32 %v250_v14, %v329_v18  ;;  %v2601_v34 = vpack.c.bf16 %v335_v20, %v331_v19  ;;  %v2603_v35 = vsub.f32 %v253_v16, %v331_v19  ;;  %v261_v36 = vld [vmem:[#allocation6 + $0x68] sm:$0xff]  ;;  %1766 = vmatprep.subr.bf16.mxu1 %v2589_v25  ;;  %s1653_s4 = sshll.u32 %s190_s21, 4  ;;  %s2397_s22 = smov [#allocation8]   ;;  %s3381_s4 = int_to_ptr.vmem [resolvable:$true] %s1653_s4 }
  0x64   : > { %3585 = vst [vmem:[#allocation14_spill] sm:$0xff] %v2587_v24  ;;  %3588 = vst [vmem:[#allocation17_spill] sm:$0xff] %v2593_v27  ;;  %v263_v37 = vld [vmem:[#allocation6 + $0x78] sm:$0xff]  ;;  %1958 = vmatprep.subr.bf16.mxu0 %v2589_v25  ;;  %v2607_v38 = vsub.f32 %v255_v17, %v335_v20  ;;  %v333_v39 = vand.u32 4294901760, %v252_v21  ;;  %v337_v40 = vand.u32 4294901760, %v254_v22  ;;  %v339_v41 = vand.u32 4294901760, %v257_v23  ;;  %1768 = vmatpush1.bf16.msra.mxu1 %v2597_v32 }
  0x65   : > { %3589 = vst [vmem:[#allocation18_spill] sm:$0xff] %v2595_v28  ;;  %3590 = vst [vmem:[#allocation19_spill] sm:$0xff] %v2597_v32  ;;  %1960 = vmatpush1.bf16.msra.mxu0 %v2597_v32  ;;  %v343_v42 = vand.u32 4294901760, %v259_v29  ;;  %v341_v43 = vand.u32 4294901760, %v256_v30  ;;  %v345_v44 = vand.u32 4294901760, %v258_v31  ;;  %v347_v45 = vand.u32 4294901760, %v261_v36  ;;  %1770 = vmatprep.subr.bf16.mxu1 %v2601_v34 }
  0x66   : > { %3591 = vst [vmem:[#allocation20_spill] sm:$0xff] %v2599_v33  ;;  %3592 = vst [vmem:[#allocation21_spill] sm:$0xff] %v2601_v34  ;;  %v260_v46 = vld [vmem:[#allocation6 + $0x60] sm:$0xff]  ;;  %1962 = vmatprep.subr.bf16.mxu0 %v2601_v34  ;;  %v2613_v47 = vpack.c.bf16 %v337_v40, %v333_v39  ;;  %v2615_v48 = vsub.f32 %v252_v21, %v333_v39  ;;  %v2617_v49 = vsub.f32 %v254_v22, %v337_v40  ;;  %v262_v51 = vld [vmem:[#allocation6 + $0x70] sm:$0xff]  ;;  %s2303_s24 = scalar_lea.vmem %s3381_s4, 32  ;;  %s2307_s27 = sshll.u32 %s2397_s22, 4  ;;  %s2308_s27 = int_to_ptr.vmem [resolvable:$false] %s2307_s27 }
  0x67   : > { %3593 = vst [vmem:[#allocation22_spill] sm:$0xff] %v2603_v35  ;;  %3594 = vst [vmem:[#allocation23_spill] sm:$0xff] %v2607_v38  ;;  %v351_v50 = vand.u32 4294901760, %v263_v37  ;;  %v265_v52 = vld [vmem:[#allocation6 + $0x88] sm:$0xff]  ;;  %v267_v53 = vld [vmem:[#allocation6 + $0x98] sm:$0xff]  ;;  %v2619_v54 = vpack.c.bf16 %v343_v42, %v339_v41  ;;  %v2621_v55 = vsub.f32 %v257_v23, %v339_v41  ;;  %v2623_v56 = vsub.f32 %v259_v29, %v343_v42  ;;  %p2304_p4 = scmp.ne.s32.totalorder %s3381_s4, %s2303_s24  ;;  %s2309_s23 = scalar_lea.vmem %s2308_s27, 64 }
  0x68   : > { %3595 = vst [vmem:[#allocation24_spill] sm:$0xff] %v2613_v47  ;;  %3596 = vst [vmem:[#allocation25_spill] sm:$0xff] %v2615_v48  ;;  %v2625_v57 = vpack.c.bf16 %v345_v44, %v341_v43  ;;  %v264_v58 = vld [vmem:[#allocation6 + $0x80] sm:$0xff]  ;;  %v266_v59 = vld [vmem:[#allocation6 + $0x90] sm:$0xff]  ;;  %v2627_v61 = vsub.f32 %v256_v30, %v341_v43  ;;  %v2629_v62 = vsub.f32 %v258_v31, %v345_v44  ;;  %1772 = vmatpush1.bf16.msra.mxu1 %v2613_v47  ;;  %p2310_p12 = scmp.lt.s32.totalorder %s3381_s4, %s2308_s27  ;;  %p2311_p11 = scmp.lt.s32.totalorder %s2309_s23, %s2303_s24 }
  0x69   : > { %3597 = vst [vmem:[#allocation26_spill] sm:$0xff] %v2617_v49  ;;  %3598 = vst [vmem:[#allocation27_spill] sm:$0xff] %v2619_v54  ;;  %v269_v60 = vld [vmem:[#allocation6 + $0xa8] sm:$0xff]  ;;  %v2631_v63 = vpack.c.bf16 %v351_v50, %v347_v45  ;;  %v2633_v0 = vsub.f32 %v261_v36, %v347_v45  ;;  %1964 = vmatpush1.bf16.msra.mxu0 %v2613_v47  ;;  %v2637_v1 = vsub.f32 %v263_v37, %v351_v50  ;;  %v271_v7 = vld [vmem:[#allocation6 + $0xb8] sm:$0xff]  ;;  %p2305_p6 = pnand %p2304_p4, %p2509_p10 }
  0x6a   : > { %3599 = vst [vmem:[#allocation28_spill] sm:$0xff] %v2621_v55  ;;  %3600 = vst [vmem:[#allocation29_spill] sm:$0xff] %v2623_v56  ;;  %v349_v2 = vand.u32 4294901760, %v260_v46  ;;  %v353_v4 = vand.u32 4294901760, %v262_v51  ;;  %v355_v5 = vand.u32 4294901760, %v265_v52  ;;  %1774 = vmatprep.subr.bf16.mxu1 %v2619_v54  ;;  %1966 = vmatprep.subr.bf16.mxu0 %v2619_v54  ;;  %v359_v8 = vand.u32 4294901760, %v267_v53  ;;  %p2312_p0 = por %p2311_p11, %p2310_p12 }
  0x6b   : > { %3601 = vst [vmem:[#allocation30_spill] sm:$0xff] %v2625_v57  ;;  %3602 = vst [vmem:[#allocation31_spill] sm:$0xff] %v2627_v61  ;;  %v357_v9 = vand.u32 4294901760, %v264_v58  ;;  %v361_v12 = vand.u32 4294901760, %v266_v59  ;;  %v363_v13 = vand.u32 4294901760, %v269_v60  ;;  %v268_v14 = vld [vmem:[#allocation6 + $0xa0] sm:$0xff]  ;;  %p2306_p8 = pneg %p2305_p6 }
  0x6c   : > { %3603 = vst [vmem:[#allocation32_spill] sm:$0xff] %v2629_v62  ;;  %3604 = vst [vmem:[#allocation33_spill] sm:$0xff] %v2631_v63  ;;  %v270_v15 = vld [vmem:[#allocation6 + $0xb0] sm:$0xff]  ;;  %v2641_v16 = vpack.c.bf16 %v353_v4, %v349_v2  ;;  %v2643_v17 = vsub.f32 %v260_v46, %v349_v2  ;;  %v2645_v18 = vsub.f32 %v262_v51, %v353_v4  ;;  %v273_v20 = vld [vmem:[#allocation6 + $0xc8] sm:$0xff]  ;;  %1776 = vmatpush1.bf16.msra.mxu1 %v2625_v57 }
  0x6d   : > { %3605 = vst [vmem:[#allocation34_spill] sm:$0xff] %v2633_v0  ;;  %3606 = vst [vmem:[#allocation35_spill] sm:$0xff] %v2637_v1  ;;  %v2647_v19 = vsub.f32 %v265_v52, %v355_v5  ;;  %v275_v21 = vld [vmem:[#allocation6 + $0xd8] sm:$0xff]  ;;  %v272_v22 = vld [vmem:[#allocation6 + $0xc0] sm:$0xff]  ;;  %v2649_v23 = vpack.c.bf16 %v359_v8, %v355_v5  ;;  %v2651_v29 = vsub.f32 %v267_v53, %v359_v8  ;;  %1968 = vmatpush1.bf16.msra.mxu0 %v2625_v57  ;;  %p2313_p5 = pnand %p2312_p0, %p2306_p8 }
  0x6e   : > { %3607 = vst [vmem:[#allocation36_spill] sm:$0xff] %v2641_v16  ;;  %3608 = vst [vmem:[#allocation37_spill] sm:$0xff] %v2643_v17  ;;  %v2653_v30 = vpack.c.bf16 %v361_v12, %v357_v9  ;;  %v2655_v31 = vsub.f32 %v264_v58, %v357_v9  ;;  %v274_v36 = vld [vmem:[#allocation6 + $0xd0] sm:$0xff]  ;;  %v2659_v37 = vsub.f32 %v266_v59, %v361_v12  ;;  %v367_v39 = vand.u32 4294901760, %v271_v7  ;;  %v277_v46 = vld [vmem:[#allocation6 + $0xe8] sm:$0xff] }
  0x6f   : > { %3609 = vst [vmem:[#allocation38_spill] sm:$0xff] %v2645_v18  ;;  %3610 = vst [vmem:[#allocation39_spill] sm:$0xff] %v2647_v19  ;;  %v2661_v40 = vsub.f32 %v269_v60, %v363_v13  ;;  %v365_v41 = vand.u32 4294901760, %v268_v14  ;;  %1778 = vmatprep.subr.bf16.mxu1 %v2631_v63  ;;  %1970 = vmatprep.subr.bf16.mxu0 %v2631_v63  ;;  %v369_v42 = vand.u32 4294901760, %v270_v15  ;;  %v371_v43 = vand.u32 4294901760, %v273_v20  ;;  %v279_v58 = vld [vmem:[#allocation6 + $0xf8] sm:$0xff] }
  0x70   : > { %3611 = vst [vmem:[#allocation40_spill] sm:$0xff] %v2649_v23  ;;  %3612 = vst [vmem:[#allocation41_spill] sm:$0xff] %v2651_v29  ;;  %v375_v44 = vand.u32 4294901760, %v275_v21  ;;  %v373_v45 = vand.u32 4294901760, %v272_v22  ;;  %v2665_v50 = vpack.c.bf16 %v367_v39, %v363_v13  ;;  %v2667_v51 = vsub.f32 %v271_v7, %v367_v39  ;;  %v276_v59 = vld [vmem:[#allocation6 + $0xe0] sm:$0xff]  ;;  %v278_v60 = vld [vmem:[#allocation6 + $0xf0] sm:$0xff]  ;;  %1780 = vmatpush1.bf16.msra.mxu1 %v2641_v16 }
  0x71   : > { %3613 = vst [vmem:[#allocation42_spill] sm:$0xff] %v2653_v30  ;;  %3614 = vst [vmem:[#allocation43_spill] sm:$0xff] %v2655_v31  ;;  %v2669_v52 = vsub.f32 %v268_v14, %v365_v41  ;;  %v377_v53 = vand.u32 4294901760, %v274_v36  ;;  %v2671_v2 = vpack.c.bf16 %v369_v42, %v365_v41  ;;  %v2673_v4 = vsub.f32 %v270_v15, %v369_v42  ;;  %v281_v9 = vld [vmem:[#allocation6 + $0x108] sm:$0xff]  ;;  %v283_v12 = vld [vmem:[#allocation6 + $0x118] sm:$0xff] }
  0x72   : > { %3615 = vst [vmem:[#allocation44_spill] sm:$0xff] %v2659_v37  ;;  %3616 = vst [vmem:[#allocation45_spill] sm:$0xff] %v2661_v40  ;;  %v2675_v5 = vpack.c.bf16 %v375_v44, %v371_v43  ;;  %v2677_v8 = vsub.f32 %v273_v20, %v371_v43  ;;  %v280_v13 = vld [vmem:[#allocation6 + $0x100] sm:$0xff]  ;;  %1972 = vmatpush1.bf16.msra.mxu0 %v2641_v16  ;;  %v2681_v7 = vsub.f32 %v275_v21, %v375_v44  ;;  %v282_v11 = vld [vmem:[#allocation6 + $0x110] sm:$0xff] }
  0x73   : > { %3617 = vst [vmem:[#allocation46_spill] sm:$0xff] %v2665_v50  ;;  %3618 = vst [vmem:[#allocation47_spill] sm:$0xff] %v2667_v51  ;;  %v2683_v14 = vpack.c.bf16 %v377_v53, %v373_v45  ;;  %v2685_v39 = vsub.f32 %v272_v22, %v373_v45  ;;  %v379_v41 = vand.u32 4294901760, %v277_v46  ;;  %1782 = vmatprep.subr.bf16.mxu1 %v2649_v23  ;;  %1974 = vmatprep.subr.bf16.mxu0 %v2649_v23  ;;  %v285_v63 = vld [vmem:[#allocation6 + $0x128] sm:$0xff]  ;;  %v287_v57 = vld [vmem:[#allocation6 + $0x138] sm:$0xff] }
  0x74   : > { %3619 = vst [vmem:[#allocation48_spill] sm:$0xff] %v2669_v52  ;;  %3620 = vst [vmem:[#allocation49_spill] sm:$0xff] %v2671_v2  ;;  %v2689_v15 = vsub.f32 %v274_v36, %v377_v53  ;;  %v383_v20 = vand.u32 4294901760, %v279_v58  ;;  %v381_v42 = vand.u32 4294901760, %v276_v59  ;;  %v385_v43 = vand.u32 4294901760, %v278_v60  ;;  %v284_v36 = vld [vmem:[#allocation6 + $0x120] sm:$0xff]  ;;  %1784 = vmatpush1.bf16.msra.mxu1 %v2653_v30 }
  0x75   : > { %3621 = vst [vmem:[#allocation50_spill] sm:$0xff] %v2673_v4  ;;  %3622 = vst [vmem:[#allocation51_spill] sm:$0xff] %v2675_v5  ;;  %v2691_v10 = vsub.f32 %v277_v46, %v379_v41  ;;  %v387_v16 = vand.u32 4294901760, %v281_v9  ;;  %v391_v21 = vand.u32 4294901760, %v283_v12  ;;  %v389_v44 = vand.u32 4294901760, %v280_v13  ;;  %v286_v53 = vld [vmem:[#allocation6 + $0x130] sm:$0xff]  ;;  %1786 = vmatprep.subr.bf16.mxu1 %v2665_v50 }
  0x76   : > { %3623 = vst [vmem:[#allocation52_spill] sm:$0xff] %v2677_v8  ;;  %3624 = vst [vmem:[#allocation53_spill] sm:$0xff] %v2681_v7  ;;  %v2693_v22 = vpack.c.bf16 %v383_v20, %v379_v41  ;;  %v2695_v45 = vsub.f32 %v279_v58, %v383_v20  ;;  %v2697_v54 = vpack.c.bf16 %v385_v43, %v381_v42  ;;  %1976 = vmatpush1.bf16.msra.mxu0 %v2653_v30  ;;  %v289_v32 = vld [vmem:[#allocation6 + $0x148] sm:$0xff]  ;;  %v291_v25 = vld [vmem:[#allocation6 + $0x158] sm:$0xff] }
  0x77   : > { %3625 = vst [vmem:[#allocation54_spill] sm:$0xff] %v2683_v14  ;;  %3626 = vst [vmem:[#allocation55_spill] sm:$0xff] %v2685_v39  ;;  %v2699_v23 = vsub.f32 %v276_v59, %v381_v42  ;;  %v2703_v46 = vsub.f32 %v278_v60, %v385_v43  ;;  %v2705_v47 = vpack.c.bf16 %v391_v21, %v387_v16  ;;  %v393_v41 = vand.u32 4294901760, %v282_v11  ;;  %v304_v6 = vld [vmem:[#allocation6 + $0x1c0] sm:$0xff] }
  0x78   : > { %3627 = vst [vmem:[#allocation56_spill] sm:$0xff] %v2689_v15  ;;  %3628 = vst [vmem:[#allocation57_spill] sm:$0xff] %v2691_v10  ;;  %v2707_v34 = vsub.f32 %v281_v9, %v387_v16  ;;  %1978 = vmatprep.subr.bf16.mxu0 %v2665_v50  ;;  %v2711_v58 = vsub.f32 %v283_v12, %v391_v21  ;;  %v2713_v59 = vsub.f32 %v280_v13, %v389_v44  ;;  %v288_v9 = vld [vmem:[#allocation6 + $0x140] sm:$0xff]  ;;  %v295_v21 = vld [vmem:[#allocation6 + $0x178] sm:$0xff] }
  0x79   : > { %3629 = vst [vmem:[#allocation58_spill] sm:$0xff] %v2693_v22  ;;  %3630 = vst [vmem:[#allocation59_spill] sm:$0xff] %v2695_v45  ;;  %v395_v20 = vand.u32 4294901760, %v285_v63  ;;  %v399_v42 = vand.u32 4294901760, %v287_v57  ;;  %v2715_v30 = vpack.c.bf16 %v393_v41, %v389_v44  ;;  %v2717_v60 = vsub.f32 %v282_v11, %v393_v41  ;;  %v292_v50 = vld [vmem:[#allocation6 + $0x160] sm:$0xff]  ;;  %1788 = vmatpush1.bf16.msra.mxu1 %v2671_v2  ;;  %v303_v10 = vld [vmem:[#allocation6 + $0x1b8] sm:$0xff] }
  0x7a   : > { %3631 = vst [vmem:[#allocation60_spill] sm:$0xff] %v2697_v54  ;;  %3632 = vst [vmem:[#allocation61_spill] sm:$0xff] %v2699_v23  ;;  %v397_v43 = vand.u32 4294901760, %v284_v36  ;;  %v401_v16 = vand.u32 4294901760, %v286_v53  ;;  %v403_v13 = vand.u32 4294901760, %v289_v32  ;;  %1980 = vmatpush1.bf16.msra.mxu0 %v2671_v2  ;;  %1790 = vmatprep.subr.bf16.mxu1 %v2675_v5  ;;  %v306_v15 = vld [vmem:[#allocation6 + $0x1d0] sm:$0xff] }
  0x7b   : > { %3633 = vst [vmem:[#allocation62_spill] sm:$0xff] %v2703_v46  ;;  %3634 = vst [vmem:[#allocation63_spill] sm:$0xff] %v2705_v47  ;;  %v293_v46 = vld [vmem:[#allocation6 + $0x168] sm:$0xff]  ;;  %v2719_v23 = vpack.c.bf16 %v399_v42, %v395_v20  ;;  %v2721_v45 = vsub.f32 %v285_v63, %v395_v20  ;;  %v2723_v12 = vsub.f32 %v287_v57, %v399_v42  ;;  %1982 = vmatprep.subr.bf16.mxu0 %v2675_v5 }
  0x7c   : > { %3635 = vst [vmem:[#allocation64_spill] sm:$0xff] %v2707_v34  ;;  %3636 = vst [vmem:[#allocation65_spill] sm:$0xff] %v2711_v58  ;;  %v290_v34 = vld [vmem:[#allocation6 + $0x150] sm:$0xff]  ;;  %v2727_v11 = vpack.c.bf16 %v401_v16, %v397_v43  ;;  %v2729_v44 = vsub.f32 %v284_v36, %v397_v43  ;;  %v2731_v41 = vsub.f32 %v286_v53, %v401_v16  ;;  %v405_v63 = vand.u32 4294901760, %v288_v9  ;;  %v299_v53 = vld [vmem:[#allocation6 + $0x198] sm:$0xff] }
  0x7d   : > { %3637 = vst [vmem:[#allocation66_spill] sm:$0xff] %v2713_v59  ;;  %3638 = vst [vmem:[#allocation67_spill] sm:$0xff] %v2715_v30  ;;  %v2735_v57 = vsub.f32 %v289_v32, %v403_v13  ;;  %v409_v20 = vand.u32 4294901760, %v290_v34  ;;  %v411_v42 = vand.u32 4294901760, %v293_v46  ;;  %v415_v36 = vand.u32 4294901760, %v295_v21  ;;  %v296_v16 = vld [vmem:[#allocation6 + $0x180] sm:$0xff]  ;;  %1792 = vmatpush1.bf16.msra.mxu1 %v2683_v14 }
  0x7e   : > { %3639 = vst [vmem:[#allocation68_spill] sm:$0xff] %v2717_v60  ;;  %3640 = vst [vmem:[#allocation69_spill] sm:$0xff] %v2719_v23  ;;  %v407_v60 = vand.u32 4294901760, %v291_v25  ;;  %v413_v43 = vand.u32 4294901760, %v292_v50  ;;  %v2743_v58 = vsub.f32 %v288_v9, %v405_v63  ;;  %1984 = vmatpush1.bf16.msra.mxu0 %v2683_v14  ;;  %1794 = vmatprep.subr.bf16.mxu1 %v2693_v22  ;;  %v421_v9 = vand.u32 4294901760, %v296_v16 }
  0x7f   : > { %3641 = vst [vmem:[#allocation70_spill] sm:$0xff] %v2721_v45  ;;  %3642 = vst [vmem:[#allocation71_spill] sm:$0xff] %v2723_v12  ;;  %v294_v12 = vld [vmem:[#allocation6 + $0x170] sm:$0xff]  ;;  %v297_v45 = vld [vmem:[#allocation6 + $0x188] sm:$0xff]  ;;  %v2745_v32 = vsub.f32 %v290_v34, %v409_v20  ;;  %v2747_v5 = vsub.f32 %v293_v46, %v411_v42  ;;  %1986 = vmatprep.subr.bf16.mxu0 %v2693_v22  ;;  %v423_v46 = vand.u32 4294901760, %v299_v53 }
  0x80   : > { %3643 = vst [vmem:[#allocation72_spill] sm:$0xff] %v2727_v11  ;;  %3644 = vst [vmem:[#allocation73_spill] sm:$0xff] %v2729_v44  ;;  %v2737_v59 = vpack.c.bf16 %v407_v60, %v403_v13  ;;  %v2739_v2 = vsub.f32 %v291_v25, %v407_v60  ;;  %v2741_v44 = vpack.c.bf16 %v409_v20, %v405_v63  ;;  %v417_v13 = vand.u32 4294901760, %v294_v12  ;;  %v300_v20 = vld [vmem:[#allocation6 + $0x1a0] sm:$0xff] }
  0x81   : > { %3645 = vst [vmem:[#allocation74_spill] sm:$0xff] %v2731_v41  ;;  %3646 = vst [vmem:[#allocation75_spill] sm:$0xff] %v2735_v57  ;;  %v298_v41 = vld [vmem:[#allocation6 + $0x190] sm:$0xff]  ;;  %v301_v57 = vld [vmem:[#allocation6 + $0x1a8] sm:$0xff]  ;;  %v2751_v25 = vpack.c.bf16 %v415_v36, %v411_v42  ;;  %v2753_v60 = vsub.f32 %v295_v21, %v415_v36  ;;  %v419_v34 = vand.u32 4294901760, %v297_v45  ;;  %v431_v21 = vand.u32 4294901760, %v303_v10  ;;  %1796 = vmatpush1.bf16.msra.mxu1 %v2697_v54 }
  0x82   : > { %3647 = vst [vmem:[#allocation76_spill] sm:$0xff] %v2737_v59  ;;  %3648 = vst [vmem:[#allocation77_spill] sm:$0xff] %v2739_v2  ;;  %v2755_v2 = vsub.f32 %v292_v50, %v413_v43  ;;  %v425_v63 = vand.u32 4294901760, %v298_v41  ;;  %v2761_v14 = vsub.f32 %v294_v12, %v417_v13  ;;  %v427_v42 = vand.u32 4294901760, %v301_v57  ;;  %v302_v36 = vld [vmem:[#allocation6 + $0x1b0] sm:$0xff]  ;;  %1988 = vmatpush1.bf16.msra.mxu0 %v2697_v54  ;;  %v311_v54 = vld [vmem:[#allocation6 + $0x1f8] sm:$0xff] }
  0x83   : > { %3649 = vst [vmem:[#allocation78_spill] sm:$0xff] %v2741_v44  ;;  %3650 = vst [vmem:[#allocation79_spill] sm:$0xff] %v2743_v58  ;;  %v2763_v50 = vpack.c.bf16 %v423_v46, %v419_v34  ;;  %v307_v58 = vld [vmem:[#allocation6 + $0x1d8] sm:$0xff]  ;;  %v2773_v12 = vsub.f32 %v296_v16, %v421_v9  ;;  %1798 = vmatprep.subr.bf16.mxu1 %v2705_v47  ;;  %1990 = vmatprep.subr.bf16.mxu0 %v2705_v47 }
  0x84   : > { %3651 = vst [vmem:[#allocation80_spill] sm:$0xff] %v2745_v32  ;;  %3652 = vst [vmem:[#allocation81_spill] sm:$0xff] %v2747_v5  ;;  %v2759_v5 = vpack.c.bf16 %v417_v13, %v413_v43  ;;  %v2767_v32 = vsub.f32 %v299_v53, %v423_v46  ;;  %v2769_v22 = vpack.c.bf16 %v425_v63, %v421_v9  ;;  %v433_v46 = vand.u32 4294901760, %v302_v36 }
  0x85   : > { %3653 = vst [vmem:[#allocation82_spill] sm:$0xff] %v2751_v25  ;;  %3654 = vst [vmem:[#allocation83_spill] sm:$0xff] %v2753_v60  ;;  %v305_v60 = vld [vmem:[#allocation6 + $0x1c8] sm:$0xff]  ;;  %v2775_v43 = vsub.f32 %v298_v41, %v425_v63  ;;  %v2777_v13 = vpack.c.bf16 %v431_v21, %v427_v42  ;;  %v2781_v53 = vsub.f32 %v301_v57, %v427_v42  ;;  %v439_v41 = vand.u32 4294901760, %v307_v58  ;;  %v310_v57 = vld [vmem:[#allocation6 + $0x1f0] sm:$0xff] }
  0x86   : > { %3655 = vst [vmem:[#allocation84_spill] sm:$0xff] %v2755_v2  ;;  %3656 = vst [vmem:[#allocation85_spill] sm:$0xff] %v2759_v5  ;;  %v2765_v2 = vsub.f32 %v297_v45, %v419_v34  ;;  %v309_v45 = vld [vmem:[#allocation6 + $0x1e8] sm:$0xff]  ;;  %v2783_v34 = vsub.f32 %v303_v10, %v431_v21  ;;  %v437_v9 = vand.u32 4294901760, %v304_v6  ;;  %v441_v63 = vand.u32 4294901760, %v306_v15  ;;  %v200_v42 = vld [vmem:[%s2566_s16] sm:$0xff]  ;;  %1800 = vmatpush1.bf16.msra.mxu1 %v2715_v30 }
  0x87   : > { %3657 = vst [vmem:[#allocation86_spill] sm:$0xff] %v2761_v14  ;;  %3658 = vst [vmem:[#allocation87_spill] sm:$0xff] %v2763_v50  ;;  %v429_v14 = vand.u32 4294901760, %v300_v20  ;;  %v443_v47 = vand.u32 4294901760, %v309_v45  ;;  %1992 = vmatpush1.bf16.msra.mxu0 %v2715_v30  ;;  %1802 = vmatprep.subr.bf16.mxu1 %v2719_v23 }
  0x88   : > { %3659 = vst [vmem:[#allocation88_spill] sm:$0xff] %v2765_v2  ;;  %3660 = vst [vmem:[#allocation89_spill] sm:$0xff] %v2767_v32  ;;  %v435_v32 = vand.u32 4294901760, %v305_v60  ;;  %v2789_v2 = vsub.f32 %v302_v36, %v433_v46  ;;  %v2800_v21 = vpack.c.bf16 %v441_v63, %v437_v9  ;;  %1994 = vmatprep.subr.bf16.mxu0 %v2719_v23 }
  0x89   : > { %3661 = vst [vmem:[#allocation90_spill] sm:$0xff] %v2769_v22  ;;  %3662 = vst [vmem:[#allocation91_spill] sm:$0xff] %v2773_v12  ;;  %v2785_v16 = vsub.f32 %v300_v20, %v429_v14  ;;  %v2787_v12 = vpack.c.bf16 %v433_v46, %v429_v14  ;;  %v2798_v20 = vsub.f32 %v307_v58, %v439_v41  ;;  %v449_v58 = vand.u32 4294901760, %v310_v57 }
  0x8a   : > { %3663 = vst [vmem:[#allocation92_spill] sm:$0xff] %v2775_v43  ;;  %3664 = vst [vmem:[#allocation93_spill] sm:$0xff] %v2777_v13  ;;  %v308_v43 = vld [vmem:[#allocation6 + $0x1e0] sm:$0xff]  ;;  %v2791_v39 = vsub.f32 %v305_v60, %v435_v32  ;;  %v2796_v10 = vpack.c.bf16 %v439_v41, %v435_v32  ;;  %v2804_v14 = vsub.f32 %v304_v6, %v437_v9  ;;  %v482_v6 = vand.u32 4294901760, %v2593_v27 }
  0x8b   : > { %3665 = vst [vmem:[#allocation94_spill] sm:$0xff] %v2785_v16  ;;  %3666 = vst [vmem:[#allocation95_spill] sm:$0xff] %v2787_v12  ;;  %v447_v16 = vand.u32 4294901760, %v311_v54  ;;  %v2806_v60 = vsub.f32 %v306_v15, %v441_v63  ;;  %v2808_v36 = vsub.f32 %v309_v45, %v443_v47  ;;  %v445_v46 = vand.u32 4294901760, %v308_v43  ;;  %1804 = vmatpush1.bf16.msra.mxu1 %v2727_v11 }
  0x8c   : > { %3667 = vst [vmem:[#allocation96_spill] sm:$0xff] %v2789_v2  ;;  %3668 = vst [vmem:[#allocation97_spill] sm:$0xff] %v2791_v39  ;;  %v203_v41 = vcombine.high %v200_v42, %v200_v42  ;;  %v470_v2 = vand.u32 4294901760, %v2591_v26  ;;  %1996 = vmatpush1.bf16.msra.mxu0 %v2727_v11  ;;  %1806 = vmatprep.subr.bf16.mxu1 %v2737_v59  ;;  %v483_v9 = vsub.f32 %v2593_v27, %v482_v6 }
  0x8d   : > { %3669 = vst [vmem:[#allocation98_spill] sm:$0xff] %v2796_v10  ;;  %3670 = vst [vmem:[#allocation99_spill] sm:$0xff] %v2798_v20  ;;  %v2810_v39 = vpack.c.bf16 %v447_v16, %v443_v47  ;;  %v2812_v32 = vsub.f32 %v311_v54, %v447_v16  ;;  %v2814_v30 = vsub.f32 %v308_v43, %v445_v46  ;;  %v206_v20 = vsel %vm205_vm1, %v200_v42, -inf }
  0x8e   : > { %3671 = vst [vmem:[#allocation100_spill] sm:$0xff] %v2800_v21  ;;  %v2821_v15 = vpack.c.bf16 %v449_v58, %v445_v46  ;;  %v2823_v47 = vsub.f32 %v310_v57, %v449_v58  ;;  %v207_v54 = vrot.slane %v206_v20, 4  ;;  %v213_v45 = vsel %vm205_vm1, %v203_v41, -inf  ;;  %1998 = vmatprep.subr.bf16.mxu0 %v2737_v59 }
  0x8f   : > { %3672 = vst [vmem:[#allocation101_spill] sm:$0xff] %v2810_v39  ;;  %v214_v43 = vrot.slane %v213_v45, 4  ;;  %v471_v16 = vsub.f32 %v2591_v26, %v470_v2  ;;  %v2830_v63 = vpack.c.bf16 %v482_v6, %v470_v2  ;;  %v476_v46 = vand.u32 4294901760, %v2595_v28  ;;  %1808 = vmatpush1.bf16.msra.mxu1 %v2741_v44 }
  0x90   : > { %3673 = vst [vmem:[#allocation102_spill] sm:$0xff] %v2821_v15  ;;  %3674 = vst [vmem:[#allocation103_spill] sm:$0xff] %v2823_v47  ;;  %v208_v42 = vmax.f32 %v206_v20, %v207_v54  ;;  %v488_v57 = vand.u32 4294901760, %v2599_v33  ;;  %v494_v58 = vand.u32 4294901760, %v2603_v35  ;;  %v484_v23 = vand.u32 4294901760, %v483_v9  ;;  %2000 = vmatpush1.bf16.msra.mxu0 %v2741_v44  ;;  %1810 = vmatprep.subr.bf16.mxu1 %v2751_v25 }
  0x91   : > { %v215_v11 = vmax.f32 %v213_v45, %v214_v43  ;;  %v472_v41 = vand.u32 4294901760, %v471_v16  ;;  %v506_v47 = vand.u32 4294901760, %v2607_v38  ;;  %v477_v2 = vsub.f32 %v2595_v28, %v476_v46  ;;  %2002 = vmatprep.subr.bf16.mxu0 %v2751_v25 }
  0x92   : > { %v209_v59 = vrot.slane %v208_v42, 2  ;;  %v489_v20 = vsub.f32 %v2599_v33, %v488_v57  ;;  %v2840_v6 = vpack.c.bf16 %v488_v57, %v476_v46  ;;  %v495_v43 = vsub.f32 %v2603_v35, %v494_v58 }
  0x93   : > { %v216_v54 = vrot.slane %v215_v11, 2  ;;  %v2844_v45 = vpack.c.bf16 %v484_v23, %v472_v41  ;;  %v507_v16 = vsub.f32 %v2607_v38, %v506_v47  ;;  %v478_v44 = vand.u32 4294901760, %v477_v2  ;;  %1812 = vmatpush1.bf16.msra.mxu1 %v2759_v5 }
  0x94   : > { %v210_v9 = vmax.f32 %v208_v42, %v209_v59  ;;  %v490_v27 = vand.u32 4294901760, %v489_v20  ;;  %v2848_v26 = vpack.c.bf16 %v506_v47, %v494_v58  ;;  %v496_v33 = vand.u32 4294901760, %v495_v43  ;;  %2004 = vmatpush1.bf16.msra.mxu0 %v2759_v5  ;;  %1814 = vmatprep.subr.bf16.mxu1 %v2763_v50 }
  0x95   : > { %v217_v28 = vmax.f32 %v215_v11, %v216_v54  ;;  %v508_v46 = vand.u32 4294901760, %v507_v16  ;;  %v500_v57 = vand.u32 4294901760, %v2615_v48  ;;  %v512_v25 = vand.u32 4294901760, %v2617_v49  ;;  %2006 = vmatprep.subr.bf16.mxu0 %v2763_v50 }
  0x96   : > { %v211_v23 = vrot.slane %v210_v9, 1  ;;  %v2853_v41 = vpack.c.bf16 %v490_v27, %v478_v44  ;;  %v518_v59 = vand.u32 4294901760, %v2621_v55  ;;  %v530_v58 = vand.u32 4294901760, %v2623_v56 }
  0x97   : > { %v218_v11 = vrot.slane %v217_v28, 1  ;;  %v2859_v47 = vpack.c.bf16 %v508_v46, %v496_v33  ;;  %v501_v42 = vsub.f32 %v2615_v48, %v500_v57  ;;  %v513_v20 = vsub.f32 %v2617_v49, %v512_v25  ;;  %1816 = vmatpush1.bf16.msra.mxu1 %v2769_v22  ;;  %v3744_v49 = vld [vmem:[#allocation64_spill] sm:$0xff]  ;;  %v3753_v48 = vld [vmem:[#allocation81_spill] sm:$0xff] }
  0x98   : > { %v212_v2 = vmax.f32 %v210_v9, %v211_v23  ;;  %v2864_v27 = vpack.c.bf16 %v512_v25, %v500_v57  ;;  %v519_v44 = vsub.f32 %v2621_v55, %v518_v59  ;;  %v531_v16 = vsub.f32 %v2623_v56, %v530_v58  ;;  %2008 = vmatpush1.bf16.msra.mxu0 %v2769_v22  ;;  %v3735_v55 = vld [vmem:[#allocation50_spill] sm:$0xff]  ;;  %v3747_v56 = vld [vmem:[#allocation68_spill] sm:$0xff] }
  0x99   : > { %v219_v54 = vmax.f32 %v217_v28, %v218_v11  ;;  %v502_v43 = vand.u32 4294901760, %v501_v42  ;;  %v2868_v5 = vpack.c.bf16 %v530_v58, %v518_v59  ;;  %v514_v33 = vand.u32 4294901760, %v513_v20  ;;  %1818 = vmatprep.subr.bf16.mxu1 %v2777_v13  ;;  %2010 = vmatprep.subr.bf16.mxu0 %v2777_v13 }
  0x9a   : > { %v520_v46 = vand.u32 4294901760, %v519_v44  ;;  %v524_v9 = vand.u32 4294901760, %v2627_v61  ;;  %v536_v23 = vand.u32 4294901760, %v2629_v62  ;;  %v532_v25 = vand.u32 4294901760, %v531_v16 }
  0x9b   : > { %v222_v28 = vcombine.low %v212_v2, %v219_v54  ;;  %v542_v57 = vand.u32 4294901760, %v2633_v0  ;;  %v554_v59 = vand.u32 4294901760, %v2637_v1  ;;  %v2878_v11 = vpack.c.bf16 %v514_v33, %v502_v43  ;;  %1820 = vmatpush1.bf16.msra.mxu1 %v2787_v12  ;;  %v201_v54 = vld [vmem:[#allocation2] sm:$0x3] }
  0x9c   : > { %v525_v42 = vsub.f32 %v2627_v61, %v524_v9  ;;  %v537_v58 = vsub.f32 %v2629_v62, %v536_v23  ;;  %v2882_v20 = vpack.c.bf16 %v536_v23, %v524_v9  ;;  %v2885_v22 = vpack.c.bf16 %v532_v25, %v520_v46  ;;  %2012 = vmatpush1.bf16.msra.mxu0 %v2787_v12 }
  0x9d   : > { %v229_v44 = vrot.slane %v222_v28, %v2587_v24  ;;  %v543_v13 = vsub.f32 %v2633_v0, %v542_v57  ;;  %v555_v2 = vsub.f32 %v2637_v1, %v554_v59  ;;  %v2891_v33 = vpack.c.bf16 %v554_v59, %v542_v57  ;;  %1822 = vmatprep.subr.bf16.mxu1 %v2796_v10 }
  0x9e   : > { %v526_v43 = vand.u32 4294901760, %v525_v42  ;;  %v538_v16 = vand.u32 4294901760, %v537_v58  ;;  %v548_v9 = vand.u32 4294901760, %v2643_v17  ;;  %2014 = vmatprep.subr.bf16.mxu0 %v2796_v10  ;;  %v560_v25 = vand.u32 4294901760, %v2645_v18 }
  0x9f   : > { %v236_v46 = vrot.slane %v229_v44, %v2587_v24  ;;  %v544_v23 = vand.u32 4294901760, %v543_v13  ;;  %v556_v28 = vand.u32 4294901760, %v555_v2  ;;  %v566_v42 = vand.u32 4294901760, %v2647_v19  ;;  %1824 = vmatpush1.bf16.msra.mxu1 %v2800_v21 }
  0xa0   : > { %v2898_v50 = vpack.c.bf16 %v538_v16, %v526_v43  ;;  %v549_v12 = vsub.f32 %v2643_v17, %v548_v9  ;;  %v578_v57 = vand.u32 4294901760, %v2651_v29  ;;  %v561_v38 = vsub.f32 %v2645_v18, %v560_v25  ;;  %2016 = vmatpush1.bf16.msra.mxu0 %v2800_v21  ;;  %1826 = vmatprep.subr.bf16.mxu1 %v2810_v39  ;;  %v3688_v17 = vld [vmem:[#allocation64_spill] sm:$0xff] }
  0xa1   : > { %v238_v59 = vmax.f32 %v201_v54, %v236_v46  ;;  %v2903_v58 = vpack.c.bf16 %v556_v28, %v544_v23  ;;  %v2906_v10 = vpack.c.bf16 %v560_v25, %v548_v9  ;;  %v567_v44 = vsub.f32 %v2647_v19, %v566_v42  ;;  %2018 = vmatprep.subr.bf16.mxu0 %v2810_v39 }
  0xa2   : > { %v550_v13 = vand.u32 4294901760, %v549_v12  ;;  %v579_v2 = vsub.f32 %v2651_v29, %v578_v57  ;;  %v2912_v43 = vpack.c.bf16 %v578_v57, %v566_v42  ;;  %v562_v54 = vand.u32 4294901760, %v561_v38 }
  0xa3   : > { %243 = vst.msk [vmem:[#allocation2] sm:$0x3] %vm2576_vm0, %v238_v59  ;;  %v572_v16 = vand.u32 4294901760, %v2655_v31  ;;  %v584_v9 = vand.u32 4294901760, %v2659_v37  ;;  %v590_v12 = vand.u32 4294901760, %v2661_v40  ;;  %v568_v46 = vand.u32 4294901760, %v567_v44  ;;  %1828 = vmatpush1.bf16.msra.mxu1 %v2821_v15 }
  0xa4   : > { %v580_v23 = vand.u32 4294901760, %v579_v2  ;;  %v602_v28 = vand.u32 4294901760, %v2667_v51  ;;  %v596_v25 = vand.u32 4294901760, %v2669_v52  ;;  %v2923_v42 = vpack.c.bf16 %v562_v54, %v550_v13  ;;  %2020 = vmatpush1.bf16.msra.mxu0 %v2821_v15  ;;  %1830 = vmatprep.subr.bf16.mxu1 %v2844_v45 }
  0xa5   : > { %v573_v57 = vsub.f32 %v2655_v31, %v572_v16  ;;  %v585_v3 = vsub.f32 %v2659_v37, %v584_v9  ;;  %v2927_v59 = vpack.c.bf16 %v584_v9, %v572_v16  ;;  %v591_v44 = vsub.f32 %v2661_v40, %v590_v12  ;;  %2022 = vmatprep.subr.bf16.mxu0 %v2830_v63 }
  0xa6   : > { %v2931_v38 = vpack.c.bf16 %v580_v23, %v568_v46  ;;  %v603_v2 = vsub.f32 %v2667_v51, %v602_v28  ;;  %v608_v24 = vand.u32 4294901760, %v2673_v4  ;;  %v2938_v16 = vpack.c.bf16 %v602_v28, %v590_v12  ;;  %v3675_v12 = vld [vmem:[#allocation55_spill] sm:$0xff] }
  0xa7   : > { %v574_v13 = vand.u32 4294901760, %v573_v57  ;;  %v586_v54 = vand.u32 4294901760, %v585_v3  ;;  %v597_v9 = vsub.f32 %v2669_v52, %v596_v25  ;;  %v592_v39 = vand.u32 4294901760, %v591_v44  ;;  %v3676_v52 = vld [vmem:[#allocation56_spill] sm:$0xff] }
  0xa8   : > { %v604_v15 = vand.u32 4294901760, %v603_v2  ;;  %v609_v46 = vsub.f32 %v2673_v4, %v608_v24  ;;  %v2942_v23 = vpack.c.bf16 %v608_v24, %v596_v25  ;;  %v614_v51 = vand.u32 4294901760, %v2677_v8  ;;  %v3677_v2 = vld [vmem:[#allocation13_spill] sm:$0xff] }
  0xa9   : > { %v2944_v21 = vpack.c.bf16 %v586_v54, %v574_v13  ;;  %v598_v35 = vand.u32 4294901760, %v597_v9  ;;  %v626_v45 = vand.u32 4294901760, %v2681_v7  ;;  %v620_v28 = vand.u32 4294901760, %v3675_v12 }
  0xaa   : > { %v247_v63 = vld [vmem:[#allocation2] sm:$0x3]  ;;  %v2948_v57 = vpack.c.bf16 %v604_v15, %v592_v39  ;;  %v610_v3 = vand.u32 4294901760, %v609_v46  ;;  %v632_v44 = vand.u32 4294901760, %v3676_v52  ;;  %v3678_v40 = vsub.s32 0, %v3677_v2 }
  0xab   : > { %v3679_v24 = vsub.s32 1, %v3677_v2  ;;  %v615_v13 = vsub.f32 %v2677_v8, %v614_v51  ;;  %v627_v54 = vsub.f32 %v2681_v7, %v626_v45  ;;  %v2960_v37 = vpack.c.bf16 %v626_v45, %v614_v51  ;;  %v3682_v8 = vld [vmem:[#allocation57_spill] sm:$0xff] }
  0xac   : > { %v316_v4 = vrot.slane %v247_v63, %v3678_v40  ;;  %v2958_v9 = vpack.c.bf16 %v610_v3, %v598_v35  ;;  %v621_v39 = vsub.f32 %v3675_v12, %v620_v28  ;;  %v633_v15 = vsub.f32 %v3676_v52, %v632_v44  ;;  %v3685_v3 = vld [vmem:[#allocation59_spill] sm:$0xff] }
  0xad   : > { %v320_v25 = vrot.slane %v247_v63, %v3679_v24  ;;  %v616_v40 = vand.u32 4294901760, %v615_v13  ;;  %v628_v29 = vand.u32 4294901760, %v627_v54  ;;  %v2968_v24 = vpack.c.bf16 %v632_v44, %v620_v28  ;;  %v3686_v54 = vld [vmem:[#allocation61_spill] sm:$0xff]  ;;  %v3687_v28 = vld [vmem:[#allocation62_spill] sm:$0xff] }
  0xae   : > { %v2966_v31 = vand.u32 4294901760, %v316_v4  ;;  %v622_v2 = vand.u32 4294901760, %v621_v39  ;;  %v634_v63 = vand.u32 4294901760, %v633_v15  ;;  %v638_v7 = vand.u32 4294901760, %v3682_v8 }
  0xaf   : > { %v2964_v46 = vand.u32 4294901760, %v320_v25  ;;  %v2977_v45 = vpack.c.bf16 %v628_v29, %v616_v40  ;;  %v650_v52 = vand.u32 4294901760, %v3685_v3  ;;  %v644_v39 = vand.u32 4294901760, %v3686_v54 }
  0xb0   : > { %3681 = vst [vmem:[#allocation104_spill] sm:$0xff] %v2966_v31  ;;  %v2975_v51 = vsub.f32 %v316_v4, %v2966_v31  ;;  %v2980_v12 = vpack.c.bf16 %v634_v63, %v622_v2  ;;  %v639_v13 = vsub.f32 %v3682_v8, %v638_v7  ;;  %v656_v44 = vand.u32 4294901760, %v3687_v28 }
  0xb1   : > { %3680 = vst [vmem:[#allocation13_spill] sm:$0xff] %v2964_v46  ;;  %v2972_v35 = vsub.f32 %v320_v25, %v2964_v46  ;;  %v651_v19 = vsub.f32 %v3685_v3, %v650_v52  ;;  %v2988_v4 = vpack.c.bf16 %v650_v52, %v638_v7  ;;  %v645_v40 = vsub.f32 %v3686_v54, %v644_v39  ;;  %v3689_v52 = vld [vmem:[#allocation65_spill] sm:$0xff] }
  0xb2   : > { %3684 = vst [vmem:[#allocation106_spill] sm:$0xff] %v2975_v51  ;;  %v459_v25 = vand.u32 4294901760, %v2975_v51  ;;  %v640_v29 = vand.u32 4294901760, %v639_v13  ;;  %v657_v2 = vsub.f32 %v3687_v28, %v656_v44  ;;  %v2992_v63 = vpack.c.bf16 %v656_v44, %v644_v39  ;;  %v3690_v13 = vld [vmem:[#allocation66_spill] sm:$0xff] }
  0xb3   : > { %3683 = vst [vmem:[#allocation105_spill] sm:$0xff] %v2972_v35  ;;  %v453_v15 = vand.u32 4294901760, %v2972_v35  ;;  %v652_v18 = vand.u32 4294901760, %v651_v19  ;;  %v662_v1 = vand.u32 4294901760, %v3688_v17  ;;  %v646_v0 = vand.u32 4294901760, %v645_v40 }
  0xb4   : > { %v460_v8 = vsub.f32 %v2975_v51, %v459_v25  ;;  %v658_v3 = vand.u32 4294901760, %v657_v2  ;;  %v674_v7 = vand.u32 4294901760, %v3689_v52  ;;  %v668_v62 = vand.u32 4294901760, %v3690_v13  ;;  %v3693_v2 = vld [vmem:[#allocation71_spill] sm:$0xff] }
  0xb5   : > { %v454_v31 = vsub.f32 %v2972_v35, %v453_v15  ;;  %1195 = vmatprep.mubr.f32.mxu0 %v453_v15  ;;  %v3000_v39 = vpack.c.bf16 %v652_v18, %v640_v29  ;;  %v663_v44 = vsub.f32 %v3688_v17, %v662_v1  ;;  %v3692_v18 = vld [vmem:[#allocation70_spill] sm:$0xff]  ;;  %v698_v51 = vand.u32 4294901760, %v3693_v2 }
  0xb6   : > { %1199 = vmatmul.mubr.f32.vlgmr.msra.gmra.mrb[0].mxu0 %v459_v25  ;;  %v461_v61 = vand.u32 4294901760, %v460_v8  ;;  %v3005_v19 = vpack.c.bf16 %v658_v3, %v646_v0  ;;  %v675_v15 = vsub.f32 %v3689_v52, %v674_v7  ;;  %v3008_v25 = vpack.c.bf16 %v674_v7, %v662_v1  ;;  %v3691_v8 = vld [vmem:[#allocation68_spill] sm:$0xff]  ;;  %v3695_v3 = vld [vmem:[#allocation74_spill] sm:$0xff] }
  0xb7   : > { %v455_v54 = vand.u32 4294901760, %v454_v31  ;;  %2024 = vmatpush1.bf16.msra.mxu0 %v2840_v6  ;;  %1462 = vmatprep.mubr.f32.mxu0 %v2964_v46  ;;  %v669_v40 = vsub.f32 %v3690_v13, %v668_v62  ;;  %v664_v31 = vand.u32 4294901760, %v663_v44  ;;  %v680_v6 = vand.u32 4294901760, %v3691_v8  ;;  %v3696_v44 = vld [vmem:[#allocation75_spill] sm:$0xff] }
  0xb8   : > { %2026 = vmatprep.subr.bf16.mxu0 %v2848_v26  ;;  %v686_v29 = vand.u32 4294901760, %v3692_v18  ;;  %v676_v35 = vand.u32 4294901760, %v675_v15  ;;  %v3694_v26 = vld [vmem:[#allocation73_spill] sm:$0xff]  ;;  %v704_v28 = vand.u32 4294901760, %v3695_v3  ;;  %v710_v13 = vand.u32 4294901760, %v3696_v44 }
  0xb9   : > { %456 = vmatprep.mubr.f32.mxu1 %v455_v54  ;;  %v670_v17 = vand.u32 4294901760, %v669_v40  ;;  %v692_v0 = vand.u32 4294901760, %v3694_v26  ;;  %v681_v1 = vsub.f32 %v3691_v8, %v680_v6  ;;  %v3019_v54 = vpack.c.bf16 %v680_v6, %v668_v62 }
  0xba   : > { %462 = vmatmul.mubr.f32.vlgmr.msra.gmra.mrb[0].mxu1 %v461_v61  ;;  %v687_v7 = vsub.f32 %v3692_v18, %v686_v29  ;;  %v3025_v61 = vpack.c.bf16 %v676_v35, %v664_v31  ;;  %v699_v15 = vsub.f32 %v3693_v2, %v698_v51  ;;  %v3028_v40 = vpack.c.bf16 %v698_v51, %v686_v29 }
  0xbb   : > { %1832 = vmatpush1.bf16.msra.mxu1 %v2853_v41  ;;  %2028 = vmatpush1.bf16.msra.mxu0 %v2864_v27  ;;  %v3697_v41 = vld [vmem:[#allocation77_spill] sm:$0xff]  ;;  %v682_v52 = vand.u32 4294901760, %v681_v1  ;;  %v693_v62 = vsub.f32 %v3694_v26, %v692_v0  ;;  %v705_v6 = vsub.f32 %v3695_v3, %v704_v28 }
  0xbc   : > { %1834 = vmatprep.subr.bf16.mxu1 %v2859_v47  ;;  %2030 = vmatprep.subr.bf16.mxu0 %v2868_v5  ;;  %v722_v27 = vand.u32 4294901760, %v3697_v41  ;;  %v688_v8 = vand.u32 4294901760, %v687_v7  ;;  %v700_v18 = vand.u32 4294901760, %v699_v15  ;;  %v3034_v47 = vpack.c.bf16 %v704_v28, %v692_v0  ;;  %v3698_v15 = vld [vmem:[#allocation79_spill] sm:$0xff] }
  0xbd   : > { %853 = vmatprep.mubr.f32.mxu1 %v2964_v46  ;;  %v711_v5 = vsub.f32 %v3696_v44, %v710_v13  ;;  %v3040_v51 = vpack.c.bf16 %v682_v52, %v670_v17  ;;  %v694_v31 = vand.u32 4294901760, %v693_v62  ;;  %v706_v29 = vand.u32 4294901760, %v705_v6  ;;  %v3701_v17 = vld [vmem:[#allocation81_spill] sm:$0xff]  ;;  %v3702_v62 = vld [vmem:[#allocation83_spill] sm:$0xff] }
  0xbe   : > { %v723_v35 = vsub.f32 %v3697_v41, %v722_v27  ;;  %v3042_v1 = vpack.c.bf16 %v722_v27, %v710_v13  ;;  %v3046_v28 = vpack.c.bf16 %v700_v18, %v688_v8  ;;  %v716_v46 = vand.u32 4294901760, %v3698_v15  ;;  %v3704_v27 = vld [vmem:[#allocation84_spill] sm:$0xff]  ;;  %v3705_v8 = vld [vmem:[#allocation86_spill] sm:$0xff] }
  0xbf   : > { %1836 = vmatpush1.bf16.msra.mxu1 %v2878_v11  ;;  %2032 = vmatpush1.bf16.msra.mxu0 %v2882_v20  ;;  %v712_v0 = vand.u32 4294901760, %v711_v5  ;;  %v3049_v41 = vpack.c.bf16 %v706_v29, %v694_v31  ;;  %v3700_v11 = vld [vmem:[#allocation80_spill] sm:$0xff]  ;;  %v734_v52 = vand.u32 4294901760, %v3701_v17  ;;  %v746_v6 = vand.u32 4294901760, %v3702_v62 }
  0xc0   : > { %1838 = vmatprep.subr.bf16.mxu1 %v2885_v22  ;;  %2034 = vmatprep.subr.bf16.mxu0 %v2891_v33  ;;  %v724_v7 = vand.u32 4294901760, %v723_v35  ;;  %v728_v20 = vand.u32 4294901760, %v3700_v11  ;;  %v717_v22 = vsub.f32 %v3698_v15, %v716_v46  ;;  %v740_v33 = vand.u32 4294901760, %v3704_v27  ;;  %v3707_v29 = vld [vmem:[#allocation88_spill] sm:$0xff] }
  0xc1   : > { %3699 = vst [vmem:[#allocation71_spill] sm:$0xff] %v3049_v41  ;;  %v752_v18 = vand.u32 4294901760, %v3705_v8  ;;  %v735_v31 = vsub.f32 %v3701_v17, %v734_v52  ;;  %v758_v41 = vand.u32 4294901760, %v3707_v29 }
  0xc2   : > { %v3054_v13 = vpack.c.bf16 %v724_v7, %v712_v0  ;;  %v729_v5 = vsub.f32 %v3700_v11, %v728_v20  ;;  %v3062_v35 = vpack.c.bf16 %v728_v20, %v716_v46  ;;  %v718_v0 = vand.u32 4294901760, %v717_v22 }
  0xc3   : > { %1840 = vmatpush1.bf16.msra.mxu1 %v2898_v50  ;;  %2036 = vmatpush1.bf16.msra.mxu0 %v2906_v10  ;;  %v747_v7 = vsub.f32 %v3702_v62, %v746_v6  ;;  %v741_v50 = vsub.f32 %v3704_v27, %v740_v33  ;;  %v736_v15 = vand.u32 4294901760, %v735_v31  ;;  %v753_v46 = vsub.f32 %v3705_v8, %v752_v18 }
  0xc4   : > { %3703 = vst [vmem:[#allocation73_spill] sm:$0xff] %v3054_v13  ;;  %3706 = vst [vmem:[#allocation74_spill] sm:$0xff] %v3062_v35  ;;  %1842 = vmatprep.subr.bf16.mxu1 %v2903_v58  ;;  %2038 = vmatprep.subr.bf16.mxu0 %v2912_v43  ;;  %v3069_v13 = vpack.c.bf16 %v746_v6, %v734_v52  ;;  %v730_v10 = vand.u32 4294901760, %v729_v5  ;;  %v3073_v20 = vpack.c.bf16 %v752_v18, %v740_v33  ;;  %v3709_v58 = vld [vmem:[#allocation89_spill] sm:$0xff]  ;;  %v3710_v6 = vld [vmem:[#allocation91_spill] sm:$0xff] }
  0xc5   : > { %v748_v35 = vand.u32 4294901760, %v747_v7  ;;  %v742_v17 = vand.u32 4294901760, %v741_v50  ;;  %v759_v11 = vsub.f32 %v3707_v29, %v758_v41  ;;  %v770_v44 = vand.u32 4294901760, %v3709_v58  ;;  %v3711_v5 = vld [vmem:[#allocation92_spill] sm:$0xff] }
  0xc6   : > { %3708 = vst [vmem:[#allocation83_spill] sm:$0xff] %v3073_v20  ;;  %v3079_v43 = vpack.c.bf16 %v730_v10, %v718_v0  ;;  %v754_v52 = vand.u32 4294901760, %v753_v46  ;;  %v764_v22 = vand.u32 4294901760, %v3710_v6  ;;  %v776_v31 = vand.u32 4294901760, %v3711_v5 }
  0xc7   : > { %1844 = vmatpush1.bf16.msra.mxu1 %v2923_v42  ;;  %2040 = vmatpush1.bf16.msra.mxu0 %v2927_v59  ;;  %v3085_v33 = vpack.c.bf16 %v748_v35, %v736_v15  ;;  %v760_v18 = vand.u32 4294901760, %v759_v11  ;;  %v771_v7 = vsub.f32 %v3709_v58, %v770_v44  ;;  %v3088_v50 = vpack.c.bf16 %v770_v44, %v758_v41  ;;  %v3716_v15 = vld [vmem:[#allocation94_spill] sm:$0xff]  ;;  %v3717_v11 = vld [vmem:[#allocation96_spill] sm:$0xff] }
  0xc8   : > { %1846 = vmatprep.subr.bf16.mxu1 %v2931_v38  ;;  %2042 = vmatprep.subr.bf16.mxu0 %v2938_v16  ;;  %v3090_v42 = vpack.c.bf16 %v754_v52, %v742_v17  ;;  %v765_v59 = vsub.f32 %v3710_v6, %v764_v22  ;;  %v777_v0 = vsub.f32 %v3711_v5, %v776_v31  ;;  %v782_v38 = vand.u32 4294901760, %v2781_v53  ;;  %v3718_v52 = vld [vmem:[#allocation97_spill] sm:$0xff] }
  0xc9   : > { %3712 = vst [vmem:[#allocation84_spill] sm:$0xff] %v3085_v33  ;;  %3713 = vst [vmem:[#allocation86_spill] sm:$0xff] %v3088_v50  ;;  %v3094_v10 = vpack.c.bf16 %v776_v31, %v764_v22  ;;  %v772_v46 = vand.u32 4294901760, %v771_v7  ;;  %v794_v16 = vand.u32 4294901760, %v2783_v34  ;;  %v788_v35 = vand.u32 4294901760, %v3716_v15 }
  0xca   : > { %3714 = vst [vmem:[#allocation88_spill] sm:$0xff] %v3090_v42  ;;  %v766_v44 = vand.u32 4294901760, %v765_v59  ;;  %v778_v41 = vand.u32 4294901760, %v777_v0  ;;  %v800_v17 = vand.u32 4294901760, %v3717_v11  ;;  %v806_v42 = vand.u32 4294901760, %v3718_v52 }
  0xcb   : > { %3715 = vst [vmem:[#allocation89_spill] sm:$0xff] %v3094_v10  ;;  %1848 = vmatpush1.bf16.msra.mxu1 %v2944_v21  ;;  %2044 = vmatpush1.bf16.msra.mxu0 %v2942_v23  ;;  %v3105_v22 = vpack.c.bf16 %v772_v46, %v760_v18  ;;  %v783_v31 = vsub.f32 %v2781_v53, %v782_v38  ;;  %v3719_v10 = vld [vmem:[#allocation99_spill] sm:$0xff] }
  0xcc   : > { %1850 = vmatprep.subr.bf16.mxu1 %v2948_v57  ;;  %2046 = vmatprep.subr.bf16.mxu0 %v2960_v37  ;;  %v795_v7 = vsub.f32 %v2783_v34, %v794_v16  ;;  %v818_v21 = vand.u32 4294901760, %v3719_v10  ;;  %v3110_v50 = vpack.c.bf16 %v778_v41, %v766_v44  ;;  %v3112_v23 = vpack.c.bf16 %v794_v16, %v782_v38 }
  0xcd   : > { %v789_v59 = vsub.f32 %v3716_v15, %v788_v35  ;;  %v801_v0 = vsub.f32 %v3717_v11, %v800_v17  ;;  %v784_v33 = vand.u32 4294901760, %v783_v31  ;;  %v3116_v20 = vpack.c.bf16 %v800_v17, %v788_v35 }
  0xce   : > { %v796_v57 = vand.u32 4294901760, %v795_v7  ;;  %v807_v37 = vsub.f32 %v3718_v52, %v806_v42  ;;  %v819_v44 = vsub.f32 %v3719_v10, %v818_v21  ;;  %v3122_v38 = vpack.c.bf16 %v818_v21, %v806_v42 }
  0xcf   : > { %1852 = vmatpush1.bf16.msra.mxu1 %v2958_v9  ;;  %2048 = vmatpush1.bf16.msra.mxu0 %v2968_v24  ;;  %v790_v18 = vand.u32 4294901760, %v789_v59  ;;  %v802_v46 = vand.u32 4294901760, %v801_v0  ;;  %v812_v41 = vand.u32 4294901760, %v2804_v14  ;;  %v824_v17 = vand.u32 4294901760, %v2806_v60 }
  0xd0   : > { %1854 = vmatprep.subr.bf16.mxu1 %v2977_v45  ;;  %2050 = vmatprep.subr.bf16.mxu0 %v2988_v4  ;;  %v3126_v16 = vpack.c.bf16 %v796_v57, %v784_v33  ;;  %v808_v35 = vand.u32 4294901760, %v807_v37  ;;  %v820_v24 = vand.u32 4294901760, %v819_v44  ;;  %v830_v31 = vand.u32 4294901760, %v2808_v36  ;;  %v3721_v57 = vld [vmem:[#allocation103_spill] sm:$0xff] }
  0xd1   : > { %v3130_v9 = vpack.c.bf16 %v802_v46, %v790_v18  ;;  %v842_v7 = vand.u32 4294901760, %v2812_v32  ;;  %v813_v42 = vsub.f32 %v2804_v14, %v812_v41  ;;  %v825_v45 = vsub.f32 %v2806_v60, %v824_v17 }
  0xd2   : > { %v3136_v21 = vpack.c.bf16 %v824_v17, %v812_v41  ;;  %v836_v4 = vand.u32 4294901760, %v2814_v30  ;;  %v3141_v33 = vpack.c.bf16 %v820_v24, %v808_v35  ;;  %v831_v59 = vsub.f32 %v2808_v36, %v830_v31 }
  0xd3   : > { %1856 = vmatpush1.bf16.msra.mxu1 %v2980_v12  ;;  %2052 = vmatpush1.bf16.msra.mxu0 %v2992_v63  ;;  %v843_v0 = vsub.f32 %v2812_v32, %v842_v7  ;;  %v848_v37 = vand.u32 4294901760, %v3721_v57  ;;  %v814_v18 = vand.u32 4294901760, %v813_v42  ;;  %v826_v46 = vand.u32 4294901760, %v825_v45  ;;  %v3737_v42 = vld [vmem:[#allocation53_spill] sm:$0xff]  ;;  %v3746_v45 = vld [vmem:[#allocation66_spill] sm:$0xff] }
  0xd4   : > { %3720 = vst [vmem:[#allocation91_spill] sm:$0xff] %v3141_v33  ;;  %1858 = vmatprep.subr.bf16.mxu1 %v3000_v39  ;;  %2054 = vmatprep.subr.bf16.mxu0 %v3008_v25  ;;  %v3148_v44 = vpack.c.bf16 %v842_v7, %v830_v31  ;;  %v837_v12 = vsub.f32 %v2814_v30, %v836_v4  ;;  %v832_v41 = vand.u32 4294901760, %v831_v59  ;;  %v3724_v59 = vld [vmem:[#allocation34_spill] sm:$0xff]  ;;  %v3734_v7 = vld [vmem:[#allocation48_spill] sm:$0xff] }
  0xd5   : > { %v844_v63 = vand.u32 4294901760, %v843_v0  ;;  %v849_v35 = vsub.f32 %v3721_v57, %v848_v37  ;;  %v3152_v17 = vpack.c.bf16 %v848_v37, %v836_v4  ;;  %v1887_v24 = vpack.c.bf16 %v826_v46, %v814_v18  ;;  %v3725_v0 = vld [vmem:[#allocation35_spill] sm:$0xff]  ;;  %v3727_v18 = vld [vmem:[#allocation38_spill] sm:$0xff]  ;;  %v3736_v4 = vld [vmem:[#allocation52_spill] sm:$0xff] }
  0xd6   : > { %v838_v33 = vand.u32 4294901760, %v837_v12  ;;  %v3752_v31 = vld [vmem:[#allocation80_spill] sm:$0xff]  ;;  %v3754_v12 = vld [vmem:[#allocation71_spill] sm:$0xff]  ;;  %v1955_v46 = vpack.c.bf16 %v3721_v57, %v2814_v30 }
  0xd7   : > { %1860 = vmatpush1.bf16.msra.mxu1 %v3005_v19  ;;  %2056 = vmatpush1.bf16.msra.mxu0 %v3019_v54  ;;  %v1889_v39 = vpack.c.bf16 %v844_v63, %v832_v41  ;;  %v850_v25 = vand.u32 4294901760, %v849_v35  ;;  %v3726_v54 = vld [vmem:[#allocation37_spill] sm:$0xff]  ;;  %v3748_v19 = vld [vmem:[#allocation70_spill] sm:$0xff] }
  0xd8   : > { %1862 = vmatprep.subr.bf16.mxu1 %v3025_v61  ;;  %2058 = vmatprep.subr.bf16.mxu0 %v3028_v40  ;;  %v3729_v41 = vld [vmem:[#allocation41_spill] sm:$0xff]  ;;  %v3751_v61 = vld [vmem:[#allocation79_spill] sm:$0xff]  ;;  %v3755_v35 = vld [vmem:[#allocation74_spill] sm:$0xff] }
  0xd9   : > { %v1891_v37 = vpack.c.bf16 %v850_v25, %v838_v33  ;;  %v3739_v33 = vld [vmem:[#allocation56_spill] sm:$0xff]  ;;  %v3745_v40 = vld [vmem:[#allocation65_spill] sm:$0xff]  ;;  %v1953_v25 = vpack.c.bf16 %v2812_v32, %v2808_v36 }
  0xda   : > { %v3750_v63 = vld [vmem:[#allocation77_spill] sm:$0xff] }
  0xdb   : > { %1864 = vmatpush1.bf16.msra.mxu1 %v3040_v51  ;;  %2060 = vmatpush1.bf16.msra.mxu0 %v3034_v47  ;;  %v3756_v51 = vld [vmem:[#allocation73_spill] sm:$0xff]  ;;  %v3760_v47 = vld [vmem:[#allocation88_spill] sm:$0xff] }
  0xdc   : > { %1866 = vmatprep.subr.bf16.mxu1 %v3046_v28  ;;  %2062 = vmatprep.subr.bf16.mxu0 %v3042_v1  ;;  %v3759_v28 = vld [vmem:[#allocation86_spill] sm:$0xff]  ;;  %v3761_v1 = vld [vmem:[#allocation89_spill] sm:$0xff] }
  0xdf   : > { %1868 = vmatpush1.bf16.msra.mxu1 %v3754_v12  ;;  %2064 = vmatpush1.bf16.msra.mxu0 %v3755_v35  ;;  %v3757_v12 = vld [vmem:[#allocation83_spill] sm:$0xff]  ;;  %v3758_v35 = vld [vmem:[#allocation84_spill] sm:$0xff] }
  0xe0   : > { %1870 = vmatprep.subr.bf16.mxu1 %v3756_v51  ;;  %2066 = vmatprep.subr.bf16.mxu0 %v3069_v13  ;;  %v3762_v13 = vld [vmem:[#allocation91_spill] sm:$0xff]  ;;  %v3770_v51 = vld [vmem:[#allocation22_spill] sm:$0xff] }
  0xe3   : > { %1872 = vmatpush1.bf16.msra.mxu1 %v3079_v43  ;;  %2068 = vmatpush1.bf16.msra.mxu0 %v3757_v12  ;;  %v3763_v43 = vld [vmem:[#allocation16_spill] sm:$0xff]  ;;  %v3778_v12 = vld [vmem:[#allocation25_spill] sm:$0xff] }
  0xe4   : > { %1874 = vmatprep.subr.bf16.mxu1 %v3758_v35  ;;  %2070 = vmatprep.subr.bf16.mxu0 %v3759_v28  ;;  %v3776_v28 = vld [vmem:[#allocation105_spill] sm:$0xff] }
  0xe7   : > { %1876 = vmatpush1.bf16.msra.mxu1 %v3760_v47  ;;  %2072 = vmatpush1.bf16.msra.mxu0 %v3761_v1  ;;  %v3772_v47 = vld [vmem:[#allocation21_spill] sm:$0xff]  ;;  %v3777_v1 = vld [vmem:[#allocation26_spill] sm:$0xff] }
  0xe8   : > { %1878 = vmatprep.subr.bf16.mxu1 %v3105_v22  ;;  %2074 = vmatprep.subr.bf16.mxu0 %v3112_v23  ;;  %v3766_v23 = vld [vmem:[#allocation104_spill] sm:$0xff]  ;;  %v3779_v35 = vpack.c.bf16 %v3777_v1, %v3778_v12  ;;  %v3797_v1 = vld [vmem:[#allocation43_spill] sm:$0xff] }
  0xeb   : > { %1880 = vmatpush1.bf16.msra.mxu1 %v3110_v50  ;;  %2076 = vmatpush1.bf16.msra.mxu0 %v3116_v20  ;;  %v3764_v50 = vld [vmem:[#allocation17_spill] sm:$0xff]  ;;  %v3765_v20 = vld [vmem:[#allocation15_spill] sm:$0xff] }
  0xec   : > { %1882 = vmatprep.subr.bf16.mxu1 %v3126_v16  ;;  %2078 = vmatprep.subr.bf16.mxu0 %v3122_v38  ;;  %v1893_v22 = vpack.c.bf16 %v3764_v50, %v3763_v43  ;;  %v3767_v38 = vld [vmem:[#allocation18_spill] sm:$0xff]  ;;  %v3768_v16 = vld [vmem:[#allocation20_spill] sm:$0xff]  ;;  %v3781_v43 = vld [vmem:[#allocation29_spill] sm:$0xff] }
  0xed   : > { %v3782_v50 = vld [vmem:[#allocation28_spill] sm:$0xff] }
  0xef   : > { %1884 = vmatpush1.bf16.msra.mxu1 %v3130_v9  ;;  %2080 = vmatpush1.bf16.msra.mxu0 %v3136_v21  ;;  %v1895_v9 = vpack.c.bf16 %v3768_v16, %v3767_v38  ;;  %v3769_v21 = vld [vmem:[#allocation19_spill] sm:$0xff]  ;;  %v3785_v38 = vld [vmem:[#allocation32_spill] sm:$0xff] }
  0xf0   : > { %1886 = vmatprep.subr.bf16.mxu1 %v3762_v13  ;;  %2082 = vmatprep.subr.bf16.mxu0 %v3148_v44  ;;  %v3771_v44 = vld [vmem:[#allocation23_spill] sm:$0xff]  ;;  %v3780_v13 = vld [vmem:[#allocation30_spill] sm:$0xff] }
  0xf1   : > { %v3786_v16 = vld [vmem:[#allocation31_spill] sm:$0xff] }
  0xf3   : > { %1888 = vmatpush1.bf16.msra.mxu1 %v1887_v24  ;;  %2084 = vmatpush1.bf16.msra.mxu0 %v3152_v17  ;;  %v1897_v24 = vpack.c.bf16 %v3771_v44, %v3770_v51  ;;  %v3773_v17 = vld [vmem:[#allocation13_spill] sm:$0xff]  ;;  %v3789_v51 = vpack.c.bf16 %v3725_v0, %v3724_v59  ;;  %v3790_v44 = vld [vmem:[#allocation40_spill] sm:$0xff]  ;;  %v3800_v0 = vld [vmem:[#allocation47_spill] sm:$0xff] }
  0xf4   : > { %1890 = vmatprep.subr.bf16.mxu1 %v1889_v39  ;;  %2086 = vmatprep.subr.bf16.mxu0 %v3765_v20  ;;  %v3774_v39 = vld [vmem:[#allocation24_spill] sm:$0xff]  ;;  %v3784_v20 = vld [vmem:[#allocation33_spill] sm:$0xff] }
  0xf5   : > { %v3799_v59 = vld [vmem:[#allocation49_spill] sm:$0xff] }
  0xf6   : > { %1464 = vmatmul.mubr.f32.vlgmr.msra.gmra.mrb[0].mxu0 %v3766_v23 }
  0xf7   : > { %1892 = vmatpush1.bf16.msra.mxu1 %v1891_v37  ;;  %2088 = vmatpush1.bf16.msra.mxu0 %v3769_v21  ;;  %v3775_v37 = vld [vmem:[#allocation27_spill] sm:$0xff]  ;;  %v3788_v21 = vld [vmem:[#allocation36_spill] sm:$0xff] }
  0xf8   : > { %1894 = vmatprep.subr.bf16.mxu1 %v1893_v22  ;;  %2090 = vmatprep.subr.bf16.mxu0 %v3772_v47  ;;  %v3783_v22 = vpack.c.bf16 %v3781_v43, %v3782_v50  ;;  %v3792_v47 = vld [vmem:[#allocation42_spill] sm:$0xff]  ;;  %v3806_v43 = vpack.c.bf16 %v3737_v42, %v3736_v4  ;;  %v3818_v42 = vld [vmem:[#allocation67_spill] sm:$0xff]  ;;  %v3819_v4 = vpack.c.bf16 %v3745_v40, %v3744_v49 }
  0xf9   : > { %1599 = vmatprep.mubr.f32.mxu0 %v3773_v17  ;;  %v3793_v17 = vld [vmem:[#allocation39_spill] sm:$0xff]  ;;  %v3807_v50 = vld [vmem:[#allocation58_spill] sm:$0xff] }
  0xfa   : > { %855 = vmatmul.mubr.f32.vlgmr.msra.gmra.mrb[0].mxu1 %v3766_v23  ;;  %v3826_v49 = vld [vmem:[#allocation78_spill] sm:$0xff]  ;;  %v3827_v40 = vld [vmem:[#allocation75_spill] sm:$0xff] }
  0xfb   : > { %1896 = vmatpush1.bf16.msra.mxu1 %v1895_v9  ;;  %2092 = vmatpush1.bf16.msra.mxu0 %v3774_v39  ;;  %v3787_v9 = vpack.c.bf16 %v3785_v38, %v3786_v16  ;;  %v3794_v39 = vpack.c.bf16 %v3729_v41, %v3793_v17  ;;  %v3805_v41 = vld [vmem:[#allocation54_spill] sm:$0xff]  ;;  %v3810_v38 = vld [vmem:[#allocation60_spill] sm:$0xff]  ;;  %v3811_v16 = vld [vmem:[#allocation59_spill] sm:$0xff]  ;;  %v3823_v17 = vpack.c.bf16 %v3693_v2, %v3748_v19 }
  0xfc   : > { %1898 = vmatprep.subr.bf16.mxu1 %v1897_v24  ;;  %2094 = vmatprep.subr.bf16.mxu0 %v3775_v37  ;;  %v3791_v24 = vpack.c.bf16 %v3727_v18, %v3726_v54  ;;  %v3795_v37 = vld [vmem:[#allocation46_spill] sm:$0xff]  ;;  %v3803_v54 = vld [vmem:[#allocation51_spill] sm:$0xff]  ;;  %v3804_v18 = vpack.c.bf16 %v3735_v55, %v3734_v7  ;;  %v3831_v2 = vld [vmem:[#allocation85_spill] sm:$0xff]  ;;  %v3832_v19 = vpack.c.bf16 %v3702_v62, %v3753_v48 }
  0xfd   : > { %1055 = vmatprep.mubr.f32.mxu1 %v3776_v28  ;;  %v3796_v28 = vld [vmem:[#allocation44_spill] sm:$0xff]  ;;  %v3814_v55 = vld [vmem:[#allocation63_spill] sm:$0xff]  ;;  %v3815_v7 = vld [vmem:[#allocation62_spill] sm:$0xff]  ;;  %v3840_v62 = vpack.c.bf16 %v2783_v34, %v2781_v53 }
  0xfe   : > { %v3798_v12 = vpack.c.bf16 %v3796_v28, %v3797_v1  ;;  %v3828_v28 = vpack.c.bf16 %v3750_v63, %v3827_v40  ;;  %v3835_v63 = vld [vmem:[#allocation90_spill] sm:$0xff]  ;;  %v3836_v1 = vpack.c.bf16 %v3709_v58, %v3707_v29  ;;  %v3839_v48 = vld [vmem:[#allocation95_spill] sm:$0xff]  ;;  %v3843_v29 = vld [vmem:[#allocation100_spill] sm:$0xff]  ;;  %v3844_v58 = vpack.c.bf16 %v3719_v10, %v3718_v52 }
  0xff   : > { %1900 = vmatpush1.bf16.msra.mxu1 %v3779_v35  ;;  %2096 = vmatpush1.bf16.msra.mxu0 %v3780_v13  ;;  %v3801_v35 = vld [vmem:[#allocation45_spill] sm:$0xff]  ;;  %v3847_v53 = vld [vmem:[#allocation102_spill] sm:$0xff] }
 0x100   : > { %1902 = vmatprep.subr.bf16.mxu1 %v3783_v22  ;;  %2098 = vmatprep.subr.bf16.mxu0 %v3784_v20  ;;  %v3802_v13 = vpack.c.bf16 %v3800_v0, %v3801_v35  ;;  %v3808_v22 = vld [vmem:[#allocation55_spill] sm:$0xff]  ;;  %v3848_v34 = vld [vmem:[#allocation106_spill] sm:$0xff] }
 0x101   : > { %v3809_v20 = vpack.c.bf16 %v3739_v33, %v3808_v22  ;;  %v3820_v33 = vld [vmem:[#allocation69_spill] sm:$0xff]  ;;  %v3849_v0 = vld [vmem:[#allocation14_spill] sm:$0xff] }
 0x103   : > { %1904 = vmatpush1.bf16.msra.mxu1 %v3787_v9  ;;  %2100 = vmatpush1.bf16.msra.mxu0 %v3788_v21  ;;  %v3812_v9 = vld [vmem:[#allocation57_spill] sm:$0xff] }
 0x104   : > { %1906 = vmatprep.subr.bf16.mxu1 %v3789_v51  ;;  %2102 = vmatprep.subr.bf16.mxu0 %v3790_v44  ;;  %v3813_v21 = vpack.c.bf16 %v3811_v16, %v3812_v9  ;;  %v3816_v51 = vld [vmem:[#allocation61_spill] sm:$0xff] }
 0x105   : > { %v3817_v44 = vpack.c.bf16 %v3815_v7, %v3816_v51 }
 0x107   : > { %1908 = vmatpush1.bf16.msra.mxu1 %v3791_v24  ;;  %2104 = vmatpush1.bf16.msra.mxu0 %v3792_v47  ;;  %v3821_v24 = vpack.c.bf16 %v3747_v56, %v3746_v45  ;;  %v3822_v47 = vld [vmem:[#allocation72_spill] sm:$0xff]  ;;  %v3829_v56 = vld [vmem:[#allocation82_spill] sm:$0xff]  ;;  %v3830_v45 = vpack.c.bf16 %v3752_v31, %v3751_v61  ;;  %v3837_v31 = vld [vmem:[#allocation93_spill] sm:$0xff]  ;;  %v3838_v61 = vpack.c.bf16 %v3711_v5, %v3710_v6 }
 0x108   : > { %1910 = vmatprep.subr.bf16.mxu1 %v3794_v39  ;;  %2106 = vmatprep.subr.bf16.mxu0 %v3795_v37  ;;  %v3824_v39 = vld [vmem:[#allocation76_spill] sm:$0xff]  ;;  %v3825_v37 = vpack.c.bf16 %v3695_v3, %v3694_v26  ;;  %v3833_v26 = vld [vmem:[#allocation87_spill] sm:$0xff]  ;;  %v3834_v3 = vpack.c.bf16 %v3705_v8, %v3704_v27  ;;  %v3841_v27 = vld [vmem:[#allocation98_spill] sm:$0xff]  ;;  %v3842_v8 = vpack.c.bf16 %v3717_v11, %v3716_v15 }
 0x109   : > { %v3845_v6 = vld [vmem:[#allocation101_spill] sm:$0xff]  ;;  %v3846_v5 = vpack.c.bf16 %v2806_v60, %v2804_v14 }
 0x10b   : > { %1912 = vmatpush1.bf16.msra.mxu1 %v3798_v12  ;;  %2108 = vmatpush1.bf16.msra.mxu0 %v3799_v59 }
 0x10c   : > { %1914 = vmatprep.subr.bf16.mxu1 %v3802_v13  ;;  %2110 = vmatprep.subr.bf16.mxu0 %v3803_v54 }
 0x10f   : > { %1916 = vmatpush1.bf16.msra.mxu1 %v3804_v18  ;;  %2112 = vmatpush1.bf16.msra.mxu0 %v3805_v41 }
 0x110   : > { %1918 = vmatprep.subr.bf16.mxu1 %v3806_v43  ;;  %2114 = vmatprep.subr.bf16.mxu0 %v3807_v50 }
 0x113   : > { %1920 = vmatpush1.bf16.msra.mxu1 %v3809_v20  ;;  %2116 = vmatpush1.bf16.msra.mxu0 %v3810_v38 }
 0x114   : > { %1922 = vmatprep.subr.bf16.mxu1 %v3813_v21  ;;  %2118 = vmatprep.subr.bf16.mxu0 %v3814_v55 }
 0x117   : > { %1924 = vmatpush1.bf16.msra.mxu1 %v3817_v44  ;;  %2120 = vmatpush1.bf16.msra.mxu0 %v3818_v42 }
 0x118   : > { %1926 = vmatprep.subr.bf16.mxu1 %v3819_v4  ;;  %2122 = vmatprep.subr.bf16.mxu0 %v3820_v33 }
 0x11b   : > { %1928 = vmatpush1.bf16.msra.mxu1 %v3821_v24  ;;  %2124 = vmatpush1.bf16.msra.mxu0 %v3822_v47 }
 0x11c   : > { %1930 = vmatprep.subr.bf16.mxu1 %v3823_v17  ;;  %2126 = vmatprep.subr.bf16.mxu0 %v3824_v39 }
 0x11f   : > { %1932 = vmatpush1.bf16.msra.mxu1 %v3825_v37  ;;  %2128 = vmatpush1.bf16.msra.mxu0 %v3826_v49 }
 0x120   : > { %1934 = vmatprep.subr.bf16.mxu1 %v3828_v28  ;;  %2130 = vmatprep.subr.bf16.mxu0 %v3829_v56 }
 0x123   : > { %1936 = vmatpush1.bf16.msra.mxu1 %v3830_v45  ;;  %2132 = vmatpush1.bf16.msra.mxu0 %v3831_v2 }
 0x124   : > { %1938 = vmatprep.subr.bf16.mxu1 %v3832_v19  ;;  %2134 = vmatprep.subr.bf16.mxu0 %v3833_v26 }
 0x127   : > { %1940 = vmatpush1.bf16.msra.mxu1 %v3834_v3  ;;  %2136 = vmatpush1.bf16.msra.mxu0 %v3835_v63 }
 0x128   : > { %1942 = vmatprep.subr.bf16.mxu1 %v3836_v1  ;;  %2138 = vmatprep.subr.bf16.mxu0 %v3837_v31 }
 0x12b   : > { %1944 = vmatpush1.bf16.msra.mxu1 %v3838_v61  ;;  %2140 = vmatpush1.bf16.msra.mxu0 %v3839_v48 }
 0x12c   : > { %1946 = vmatprep.subr.bf16.mxu1 %v3840_v62  ;;  %2142 = vmatprep.subr.bf16.mxu0 %v3841_v27 }
 0x12f   : > { %1948 = vmatpush1.bf16.msra.mxu1 %v3842_v8  ;;  %2144 = vmatpush1.bf16.msra.mxu0 %v3843_v29 }
 0x130   : > { %1950 = vmatprep.subr.bf16.mxu1 %v3844_v58  ;;  %2146 = vmatprep.subr.bf16.mxu0 %v3845_v6 }
 0x133   : > { %1952 = vmatpush1.bf16.msra.mxu1 %v3846_v5  ;;  %2148 = vmatpush1.bf16.msra.mxu0 %v3847_v53 }
 0x134   : > { %1954 = vmatprep.subr.bf16.mxu1 %v1953_v25 }
 0x136   : > { %1601 = vmatmul.mubr.f32.vlgmr.msra.gmra.mrb[0].mxu0 %v3766_v23 }
 0x137   : > { %1956 = vmatpush1.bf16.msra.mxu1 %v1955_v46 }
 0x13a   : > { %1058 = vmatmul.mubr.f32.vlgmr.msra.gmra.mrb[0].mxu1 %v3848_v34 }
 0x209   : > { %v1602_v10 = vpop.f32.mrb[0].mxu0 }
 0x20a   : > { %v1604_v15 = vpop.f32.mrb[1].mxu0 }
 0x20d   : > { %v1059_v11 = vpop.f32.mrb[0].mxu1 }
 0x20e   : > { %v2149_v14 = vadd.f32 %v1602_v10, %v1059_v11  ;;  %v1061_v60 = vpop.f32.mrb[1].mxu1 }
 0x20f   : > { %v2150_v52 = vadd.f32 %v1604_v15, %v1061_v60 }
 0x210   : > { %v1756_v12 = vmul.f32 -1.442695, %v2149_v14 }
 0x211   : > { %v1757_v59 = vmul.f32 -1.442695, %v2150_v52 }
 0x212   : > { %2237 = vpow2.f32 %v1756_v12 }
 0x213   : > { %2239 = vpow2.f32 %v1757_v59 }
 0x21c   : > { %v2238_v36 = vpop.eup %2237 }
 0x21d   : > { %v2240_v32 = vpop.eup %2239  ;;  %v1613_v25 = vadd.f32 1.0, %v2238_v36 }
 0x21e   : > { %v1614_v30 = vadd.f32 1.0, %v2240_v32 }
 0x21f   : > { %2241 = vrcp.f32 %v1613_v25 }
 0x220   : > { %2243 = vrcp.f32 %v1614_v30 }
 0x229   : > { %v2242_v57 = vpop.eup %2241 }
 0x22a   : > { %v2244_v46 = vpop.eup %2243 }
 0x22b   : > { %v1621_v23 = vcombine.low %v2242_v57, %v2244_v46 }
 0x22d   : > { %v1628_v35 = vrot.slane %v1621_v23, %v3849_v0 }
 0x22f   : > { %v1635_v13 = vrot.slane %v1628_v35, %v3849_v0 }
 0x231   : > { %1637 = vst.msk [vmem:[%s190_s21] sm:$0x3] %vm2576_vm0, %v1635_v13 }
 0x232   : > { %2316 = shalt.err (!%p2313_p5)
}
 0x233   : > { %s2317_s29 = scalar_lea.hbm %s3379_s7, 32  ;;  %s2321_s18 = scalar_lea.hbm %s3432_s2, 64 }
 0x234   : > { %p2318_p9 = scmp.ne.s32.totalorder %s3379_s7, %s2317_s29  ;;  %p2322_p7 = scmp.lt.u32.totalorder %s3379_s7, %s3432_s2 }
 0x235   : > { %p2323_p3 = scmp.lt.u32.totalorder %s2321_s18, %s2317_s29  ;;  %p2325_p4 = scmp.lt.u32.totalorder %s2317_s29, %s3379_s7 }
 0x236   : > { %p2319_p1 = pnand %p2318_p9, %p2509_p10 }
 0x237   : > { %p2324_p13 = por %p2323_p3, %p2322_p7 }
 0x238   : > { %p2320_p2 = pneg %p2319_p1 }
 0x239   : > { %p2326_p6 = por %p2325_p4, %p2324_p13 }
 0x23b   : > { %p2327_p8 = pnand %p2326_p6, %p2320_p2 }
 0x23d   : > { %2330 = shalt.err (!%p2327_p8)
}
 0x23e   : > { %2165 = dma.vmem_to_hbm [thread:$0]  (%p2509_p10), %s3381_s4, 32, %s3379_s7, %s1639_s12  }
 0x23f PF: > { %s1665_s16 = sand.u32 1, %s2369_s9   ;;  %p3851_p12 = scmp.ne.s32.totalorder %s3571_s20, 0 }
 0x240   : > { %p3852_p11 = scmp.ge.s32.totalorder %s2389_s14, 2  ;;  %s1666_s17 = scalar_lea.sflag [#allocation5], %s1665_s16 }
 0x242   : > { %p2176_p0 = pnand %p3852_p11, %p3851_p12 }
 0x244   : > { %2364 = dma.done.wait (!%p2176_p0), %s1666_s17, 32  }
 0x245   : > { %2366 = vsyncadd (!%p2176_p0), %s1666_s17, 4294967264  ;;  %s19_s14 = sadd.s32 1, %s2389_s14   ;;  %s3853_s9 = smov %s2373_s10 }
 0x246   : > { %p16_p5 = scmp.ge.s32.totalorder %s19_s14, 4   ;;  %s3854_s10 = smov %s2377_s11 }
 0x247   : > { %s3855_s11 = smov %s2518_s28  ;;  %s3856_s12 = smov %s2385_s13 }
 0x248   : > { %s3857_s13 = smov %s3859_s25  ;;  %18 = sbr.rel (!%p16_p5) target bundleno = 7 (0x7), region = 85 }
 0x24f   :  { %1671 = vsyncpa [#allocation4], 1 }
 0x250   :  { %1673 = vsyncpa [#allocation4 + $0x1], 1 }
 0x251   :  { %1674 = vsyncpa [#allocation7], 1 }
 0x252   :  { %1675 = vsyncpa [#allocation5], 1 }
 0x253   :  { %1677 = vsyncpa [#allocation5 + $0x1], 1 }

</bundles_post_ra>
